<compile_context>
chip_gen: v5e
topology: v5e:2x2
jax: 0.10.0
libtpu: 0.0.40
codegen_flags: <defaults>
</compile_context>

<pallas_src>
import jax
import jax.numpy as jnp
from jax import lax
from jax.experimental import pallas as pl
from jax.experimental.pallas import tpu as pltpu


# ----------------------------------------------------------------- helpers --

def _round_up(x, m):
    return (x + m - 1) // m * m


# ------------------------------------------------------------------ kernels --

def conv_relu_pool_kernel(patches_ref, w_ref, b_ref, out_ref):
    """Fused conv (im2col matmul) + bias + ReLU + 2x2/2 max-pool.

    patches_ref: (4, TR, K) bf16   w_ref: (K, C) bf16
    b_ref: (1, C) f32              out_ref: (TR, C) bf16
    """
    w = w_ref[...]            # hoisted out of the tap loop
    b = b_ref[...]            # hoisted: JAX does not CSE broadcast_in_dim
    acc = None
    for s in range(4):        # the 4 positions of each 2x2 pooling window
        y = jnp.dot(patches_ref[s], w, preferred_element_type=jnp.float32)
        y = jnp.maximum(y + b, 0.0)
        acc = y if acc is None else jnp.maximum(acc, y)
    out_ref[...] = acc.astype(out_ref.dtype)


def conv_relu_pool_conv1x1_kernel(patches_ref, w2_ref, b2_ref,
                                  w3_ref, b3_ref, out_ref):
    """layer2 (conv+bias+ReLU+pool) fused with layer3 (1x1 conv + ReLU).

    patches_ref: (4, TR, K) bf16   w2_ref: (K, C2) bf16   b2_ref: (1, C2) f32
    w3_ref: (1, C2) f32            b3_ref: (1, 1) f32 in SMEM (scalar)
    out_ref: (TR, 1) f32
    """
    w2 = w2_ref[...]
    b2 = b2_ref[...]
    acc = None
    for s in range(4):
        y = jnp.dot(patches_ref[s], w2, preferred_element_type=jnp.float32)
        y = jnp.maximum(y + b2, 0.0)
        acc = y if acc is None else jnp.maximum(acc, y)
    # 1x1 conv with C_out == 1: VPU multiply + lane reduction instead of a
    # (TR,32)@(32,1) matmul that would waste 127/128 MXU columns.
    z = jnp.sum(acc * w3_ref[...], axis=-1, keepdims=True)
    out_ref[...] = jnp.maximum(z + b3_ref[0, 0], 0.0)


# ------------------------------------------------------------- pallas calls --

def _layer1_call(patches, w, b, tr):
    _, r_pad, k = patches.shape
    c = w.shape[1]
    return pl.pallas_call(
        conv_relu_pool_kernel,
        out_shape=jax.ShapeDtypeStruct((r_pad, c), jnp.bfloat16),
        grid=(r_pad // tr,),
        in_specs=[
            pl.BlockSpec((4, tr, k), lambda i: (0, i, 0)),
            pl.BlockSpec((k, c), lambda i: (0, 0)),
            pl.BlockSpec((1, c), lambda i: (0, 0)),
        ],
        out_specs=pl.BlockSpec((tr, c), lambda i: (i, 0)),
        compiler_params=pltpu.CompilerParams(
            dimension_semantics=("parallel",)),
    )(patches, w, b)


def _layer23_call(patches, w2, b2, w3, b3, tr):
    _, r_pad, k = patches.shape
    c2 = w2.shape[1]
    return pl.pallas_call(
        conv_relu_pool_conv1x1_kernel,
        out_shape=jax.ShapeDtypeStruct((r_pad, 1), jnp.float32),
        grid=(r_pad // tr,),
        in_specs=[
            pl.BlockSpec((4, tr, k), lambda i: (0, i, 0)),
            pl.BlockSpec((k, c2), lambda i: (0, 0)),
            pl.BlockSpec((1, c2), lambda i: (0, 0)),
            pl.BlockSpec((1, c2), lambda i: (0, 0)),
            pl.BlockSpec(memory_space=pltpu.MemorySpace.SMEM),
        ],
        out_specs=pl.BlockSpec((tr, 1), lambda i: (i, 0)),
        compiler_params=pltpu.CompilerParams(
            dimension_semantics=("parallel",)),
    )(patches, w2, b2, w3, b3)


# ----------------------------------------------------------------- JAX glue --

def _pool_tap_patches1(xp, di, dj):
    """xp: (N, 32, 32) padded input.  im2col rows centered at pooled-grid
    positions (2i+di, 2j+dj).  Built from strided slices (no XLA gather).
    Returns (N*14*14, 25), columns ordered (ki*5 + kj)."""
    cols = []
    for ki in range(5):
        for kj in range(5):
            cols.append(xp[:, di + ki: di + ki + 27: 2,
                           dj + kj: dj + kj + 27: 2])       # (N, 14, 14)
    p = jnp.stack(cols, axis=-1)                            # (N, 14, 14, 25)
    return p.reshape(-1, 25)


def _pool_tap_patches2(p1p, di, dj):
    """p1p: (N, 18, 18, 16) padded feature map.
    Returns (N*7*7, 400), columns ordered ((ki*5 + kj)*16 + c)."""
    cols = []
    for ki in range(5):
        for kj in range(5):
            cols.append(p1p[:, di + ki: di + ki + 13: 2,
                            dj + kj: dj + kj + 13: 2, :])   # (N, 7, 7, 16)
    p = jnp.stack(cols, axis=3)                             # (N, 7, 7, 25, 16)
    return p.reshape(-1, 400)


def prepare_params(params):
    """One-time weight re-layout + dtype prep (hoisted out of forward)."""
    w1m = jnp.transpose(params["w1"], (2, 3, 1, 0)).reshape(25, 16)
    w1m = jnp.pad(w1m, ((0, 7), (0, 0)))                    # K: 25 -> 32
    w2m = jnp.transpose(params["w2"], (2, 3, 1, 0)).reshape(400, 32)
    return dict(
        w1m=w1m.astype(jnp.bfloat16),
        b1=params["b1"].reshape(1, 16).astype(jnp.float32),
        w2m=w2m.astype(jnp.bfloat16),
        b2=params["b2"].reshape(1, 32).astype(jnp.float32),
        w3row=params["w3"].reshape(1, 32).astype(jnp.float32),
        b3=params["b3"].reshape(1, 1).astype(jnp.float32),
    )


def convnet_forward(x, prep, *, tr1=2048, tr2=1024):
    """x: (N, 1, 28, 28) f32 NCHW -> (N, 1, 7, 7) f32 (== PyTorch forward)."""
    n = x.shape[0]

    # ----- layer1: conv(1->16, k5, p2) + ReLU + maxpool2 -----
    xp = jnp.pad(x[:, 0], ((0, 0), (2, 2), (2, 2))).astype(jnp.bfloat16)
    patches1 = jnp.stack([_pool_tap_patches1(xp, di, dj)
                          for di in (0, 1) for dj in (0, 1)])   # (4, N*196, 25)
    patches1 = jnp.pad(patches1, ((0, 0), (0, 0), (0, 7)))      # K 25 -> 32
    r1 = n * 196
    t1 = min(tr1, _round_up(r1, 8))
    r1p = _round_up(r1, t1)
    patches1 = jnp.pad(patches1, ((0, 0), (0, r1p - r1), (0, 0)))
    p1 = _layer1_call(patches1, prep["w1m"], prep["b1"], t1)[:r1]  # (r1,16) bf16

    # ----- layer2: conv(16->32, k5, p2) + ReLU + maxpool2, fused with
    # ----- layer3: conv(32->1, k1) + ReLU
    p1p = jnp.pad(p1.reshape(n, 14, 14, 16),
                  ((0, 0), (2, 2), (2, 2), (0, 0)))             # (N,18,18,16)
    patches2 = jnp.stack([_pool_tap_patches2(p1p, di, dj)
                          for di in (0, 1) for dj in (0, 1)])   # (4, N*49, 400)
    r2 = n * 49
    t2 = min(tr2, _round_up(r2, 8))
    r2p = _round_up(r2, t2)
    patches2 = jnp.pad(patches2, ((0, 0), (0, r2p - r2), (0, 0)))
    out = _layer23_call(patches2, prep["w2m"], prep["b2"],
                        prep["w3row"], prep["b3"], t2)[:r2]     # (r2, 1) f32
    return out.reshape(n, 7, 7, 1).transpose(0, 3, 1, 2)        # NCHW (N,1,7,7)


# ------------------------------------------------------ params & reference --

def init_params(key):
    ks = jax.random.split(key, 6)

    def u(k, shape, fan_in):
        bound = 1.0 / jnp.sqrt(float(fan_in))
        return jax.random.uniform(k, shape, jnp.float32, -bound, bound)

    return dict(
        w1=u(ks[0], (16, 1, 5, 5), 1 * 5 * 5),
        b1=u(ks[1], (16,), 1 * 5 * 5),
        w2=u(ks[2], (32, 16, 5, 5), 16 * 5 * 5),
        b2=u(ks[3], (32,), 16 * 5 * 5),
        w3=u(ks[4], (1, 32, 1, 1), 32),
        b3=u(ks[5], (1,), 32),
    )


def reference_forward(x, p):
    """Pure-JAX NCHW reference of the PyTorch forward()."""
    dn = ("NCHW", "OIHW", "NCHW")
    y = lax.conv_general_dilated(x, p["w1"], (1, 1), ((2, 2), (2, 2)),
                                 dimension_numbers=dn)
    y = jax.nn.relu(y + p["b1"][None, :, None, None])
    y = lax.reduce_window(y, -jnp.inf, lax.max, (1, 1, 2, 2), (1, 1, 2, 2),
                          "VALID")
    y = lax.conv_general_dilated(y, p["w2"], (1, 1), ((2, 2), (2, 2)),
                                 dimension_numbers=dn)
    y = jax.nn.relu(y + p["b2"][None, :, None, None])
    y = lax.reduce_window(y, -jnp.inf, lax.max, (1, 1, 2, 2), (1, 1, 2, 2),
                          "VALID")
    y = lax.conv_general_dilated(y, p["w3"], (1, 1), ((0, 0), (0, 0)),
                                 dimension_numbers=dn)
    return jax.nn.relu(y + p["b3"][None, :, None, None])


if __name__ == "__main__":
    key = jax.random.PRNGKey(0)
    pkey, xkey = jax.random.split(key)
    params = init_params(pkey)
    x = jax.random.normal(xkey, (2, 1, 28, 28), jnp.float32)  # MNIST-sized NCHW

    prep = prepare_params(params)
    fwd = jax.jit(convnet_forward)
    out = jax.block_until_ready(fwd(x, prep))
    ref = jax.block_until_ready(reference_forward(x, params))

    assert out.shape == (2, 1, 7, 7), out.shape
    assert out.dtype == jnp.float32, out.dtype
    err = float(jnp.max(jnp.abs(out - ref)))
    assert err < 5e-2, f"max abs error {err}"   # bf16 streaming, f32 accumulate
    print("KERNEL_OK")
</pallas_src>

<mosaic_0001>
module attributes {stable_mosaic.version = 11 : i64} {
  func.func @conv_relu_pool_kernel(%arg0: i32, %arg1: memref<4x392x32xbf16, #tpu.memory_space<vmem>>, %arg2: memref<32x16xbf16, #tpu.memory_space<vmem>>, %arg3: memref<1x16xf32, #tpu.memory_space<vmem>>, %arg4: memref<392x16xbf16, #tpu.memory_space<vmem>>) attributes {dimension_semantics = [#tpu.dimension_semantics<parallel>], iteration_bounds = array<i64: 1>, scalar_prefetch = 0 : i64, scratch_operands = 0 : i64, tpu.core_type = #tpu.core_type<tc>, window_params = [{transform_indices = @transform_0, window_bounds = array<i64: 4, 392, 32>}, {pipeline_mode = #tpu.pipeline_mode<synchronous>, transform_indices = @transform_1, window_bounds = array<i64: 32, 16>}, {pipeline_mode = #tpu.pipeline_mode<synchronous>, transform_indices = @transform_2, window_bounds = array<i64: 1, 16>}, {transform_indices = @transform_3, window_bounds = array<i64: 392, 16>}]} {
    %c0 = arith.constant 0 : index
    %c0_0 = arith.constant 0 : index
    %0 = vector.load %arg2[%c0, %c0_0] : memref<32x16xbf16, #tpu.memory_space<vmem>>, vector<32x16xbf16>
    %c0_1 = arith.constant 0 : index
    %c0_2 = arith.constant 0 : index
    %1 = vector.load %arg3[%c0_1, %c0_2] : memref<1x16xf32, #tpu.memory_space<vmem>>, vector<1x16xf32>
    %c0_3 = arith.constant 0 : index
    %c0_4 = arith.constant 0 : index
    %c0_5 = arith.constant 0 : index
    %2 = vector.load %arg1[%c0_3, %c0_4, %c0_5] : memref<4x392x32xbf16, #tpu.memory_space<vmem>>, vector<1x392x32xbf16>
    %3 = vector.shape_cast %2 : vector<1x392x32xbf16> to vector<392x32xbf16>
    %cst = arith.constant dense<0.000000e+00> : vector<392x16xf32>
    %4 = tpu.matmul %3, %0, %cst {dimension_numbers = #tpu.dot_dimension_numbers<[1], [0], [0], [1], [0, 0, 1, 1], [], []>} : vector<392x32xbf16>, vector<32x16xbf16>, vector<392x16xf32> -> vector<392x16xf32>
    %5 = vector.broadcast %1 : vector<1x16xf32> to vector<392x16xf32>
    %6 = arith.addf %4, %5 : vector<392x16xf32>
    %cst_6 = arith.constant 0.000000e+00 : f32
    %7 = vector.broadcast %cst_6 : f32 to vector<392x16xf32>
    %8 = arith.maximumf %6, %7 : vector<392x16xf32>
    %c1 = arith.constant 1 : index
    %c0_7 = arith.constant 0 : index
    %c0_8 = arith.constant 0 : index
    %9 = vector.load %arg1[%c1, %c0_7, %c0_8] : memref<4x392x32xbf16, #tpu.memory_space<vmem>>, vector<1x392x32xbf16>
    %10 = vector.shape_cast %9 : vector<1x392x32xbf16> to vector<392x32xbf16>
    %cst_9 = arith.constant dense<0.000000e+00> : vector<392x16xf32>
    %11 = tpu.matmul %10, %0, %cst_9 {dimension_numbers = #tpu.dot_dimension_numbers<[1], [0], [0], [1], [0, 0, 1, 1], [], []>} : vector<392x32xbf16>, vector<32x16xbf16>, vector<392x16xf32> -> vector<392x16xf32>
    %12 = vector.broadcast %1 : vector<1x16xf32> to vector<392x16xf32>
    %13 = arith.addf %11, %12 : vector<392x16xf32>
    %cst_10 = arith.constant 0.000000e+00 : f32
    %14 = vector.broadcast %cst_10 : f32 to vector<392x16xf32>
    %15 = arith.maximumf %13, %14 : vector<392x16xf32>
    %16 = arith.maximumf %8, %15 : vector<392x16xf32>
    %c2 = arith.constant 2 : index
    %c0_11 = arith.constant 0 : index
    %c0_12 = arith.constant 0 : index
    %17 = vector.load %arg1[%c2, %c0_11, %c0_12] : memref<4x392x32xbf16, #tpu.memory_space<vmem>>, vector<1x392x32xbf16>
    %18 = vector.shape_cast %17 : vector<1x392x32xbf16> to vector<392x32xbf16>
    %cst_13 = arith.constant dense<0.000000e+00> : vector<392x16xf32>
    %19 = tpu.matmul %18, %0, %cst_13 {dimension_numbers = #tpu.dot_dimension_numbers<[1], [0], [0], [1], [0, 0, 1, 1], [], []>} : vector<392x32xbf16>, vector<32x16xbf16>, vector<392x16xf32> -> vector<392x16xf32>
    %20 = vector.broadcast %1 : vector<1x16xf32> to vector<392x16xf32>
    %21 = arith.addf %19, %20 : vector<392x16xf32>
    %cst_14 = arith.constant 0.000000e+00 : f32
    %22 = vector.broadcast %cst_14 : f32 to vector<392x16xf32>
    %23 = arith.maximumf %21, %22 : vector<392x16xf32>
    %24 = arith.maximumf %16, %23 : vector<392x16xf32>
    %c3 = arith.constant 3 : index
    %c0_15 = arith.constant 0 : index
    %c0_16 = arith.constant 0 : index
    %25 = vector.load %arg1[%c3, %c0_15, %c0_16] : memref<4x392x32xbf16, #tpu.memory_space<vmem>>, vector<1x392x32xbf16>
    %26 = vector.shape_cast %25 : vector<1x392x32xbf16> to vector<392x32xbf16>
    %cst_17 = arith.constant dense<0.000000e+00> : vector<392x16xf32>
    %27 = tpu.matmul %26, %0, %cst_17 {dimension_numbers = #tpu.dot_dimension_numbers<[1], [0], [0], [1], [0, 0, 1, 1], [], []>} : vector<392x32xbf16>, vector<32x16xbf16>, vector<392x16xf32> -> vector<392x16xf32>
    %28 = vector.broadcast %1 : vector<1x16xf32> to vector<392x16xf32>
    %29 = arith.addf %27, %28 : vector<392x16xf32>
    %cst_18 = arith.constant 0.000000e+00 : f32
    %30 = vector.broadcast %cst_18 : f32 to vector<392x16xf32>
    %31 = arith.maximumf %29, %30 : vector<392x16xf32>
    %32 = arith.maximumf %24, %31 : vector<392x16xf32>
    %33 = arith.truncf %32 : vector<392x16xf32> to vector<392x16xbf16>
    %c0_19 = arith.constant 0 : index
    %c0_20 = arith.constant 0 : index
    %34 = vector.load %arg4[%c0_19, %c0_20] : memref<392x16xbf16, #tpu.memory_space<vmem>>, vector<392x16xbf16>
    tpu.vector_store %arg4[%c0_19, %c0_20], %33 {strides = array<i32>} : memref<392x16xbf16, #tpu.memory_space<vmem>>, vector<392x16xbf16>,
    return
  }
  func.func @transform_0(%arg0: i32) -> (i32, i32, i32) {
    %c0_i32 = arith.constant 0 : i32
    %c0_i32_0 = arith.constant 0 : i32
    %c0_i32_1 = arith.constant 0 : i32
    return %c0_i32, %arg0, %c0_i32_0 : i32, i32, i32
  }
  func.func @transform_1(%arg0: i32) -> (i32, i32) {
    %c0_i32 = arith.constant 0 : i32
    %c0_i32_0 = arith.constant 0 : i32
    %c0_i32_1 = arith.constant 0 : i32
    return %c0_i32, %c0_i32_0 : i32, i32
  }
  func.func @transform_2(%arg0: i32) -> (i32, i32) {
    %c0_i32 = arith.constant 0 : i32
    %c0_i32_0 = arith.constant 0 : i32
    %c0_i32_1 = arith.constant 0 : i32
    return %c0_i32, %c0_i32_0 : i32, i32
  }
  func.func @transform_3(%arg0: i32) -> (i32, i32) {
    %c0_i32 = arith.constant 0 : i32
    %c0_i32_0 = arith.constant 0 : i32
    return %arg0, %c0_i32 : i32, i32
  }
}

module attributes {stable_mosaic.version = 11 : i64} {
  func.func @conv_relu_pool_conv1x1_kernel(%arg0: i32, %arg1: memref<4x104x400xbf16, #tpu.memory_space<vmem>>, %arg2: memref<400x32xbf16, #tpu.memory_space<vmem>>, %arg3: memref<1x32xf32, #tpu.memory_space<vmem>>, %arg4: memref<1x32xf32, #tpu.memory_space<vmem>>, %arg5: memref<1x1xf32, #tpu.memory_space<smem>>, %arg6: memref<104x1xf32, #tpu.memory_space<vmem>>) attributes {dimension_semantics = [#tpu.dimension_semantics<parallel>], iteration_bounds = array<i64: 1>, scalar_prefetch = 0 : i64, scratch_operands = 0 : i64, tpu.core_type = #tpu.core_type<tc>, window_params = [{transform_indices = @transform_0, window_bounds = array<i64: 4, 104, 400>}, {pipeline_mode = #tpu.pipeline_mode<synchronous>, transform_indices = @transform_1, window_bounds = array<i64: 400, 32>}, {pipeline_mode = #tpu.pipeline_mode<synchronous>, transform_indices = @transform_2, window_bounds = array<i64: 1, 32>}, {pipeline_mode = #tpu.pipeline_mode<synchronous>, transform_indices = @transform_3, window_bounds = array<i64: 1, 32>}, {transform_indices = @transform_4, window_bounds = array<i64: 1, 1>}, {transform_indices = @transform_5, window_bounds = array<i64: 104, 1>}]} {
    %c0 = arith.constant 0 : index
    %c0_0 = arith.constant 0 : index
    %0 = vector.load %arg2[%c0, %c0_0] : memref<400x32xbf16, #tpu.memory_space<vmem>>, vector<400x32xbf16>
    %c0_1 = arith.constant 0 : index
    %c0_2 = arith.constant 0 : index
    %1 = vector.load %arg3[%c0_1, %c0_2] : memref<1x32xf32, #tpu.memory_space<vmem>>, vector<1x32xf32>
    %c0_3 = arith.constant 0 : index
    %c0_4 = arith.constant 0 : index
    %c0_5 = arith.constant 0 : index
    %2 = vector.load %arg1[%c0_3, %c0_4, %c0_5] : memref<4x104x400xbf16, #tpu.memory_space<vmem>>, vector<1x104x400xbf16>
    %3 = vector.shape_cast %2 : vector<1x104x400xbf16> to vector<104x400xbf16>
    %cst = arith.constant dense<0.000000e+00> : vector<104x32xf32>
    %4 = tpu.matmul %3, %0, %cst {dimension_numbers = #tpu.dot_dimension_numbers<[1], [0], [0], [1], [0, 0, 1, 1], [], []>} : vector<104x400xbf16>, vector<400x32xbf16>, vector<104x32xf32> -> vector<104x32xf32>
    %5 = vector.broadcast %1 : vector<1x32xf32> to vector<104x32xf32>
    %6 = arith.addf %4, %5 : vector<104x32xf32>
    %cst_6 = arith.constant 0.000000e+00 : f32
    %7 = vector.broadcast %cst_6 : f32 to vector<104x32xf32>
    %8 = arith.maximumf %6, %7 : vector<104x32xf32>
    %c1 = arith.constant 1 : index
    %c0_7 = arith.constant 0 : index
    %c0_8 = arith.constant 0 : index
    %9 = vector.load %arg1[%c1, %c0_7, %c0_8] : memref<4x104x400xbf16, #tpu.memory_space<vmem>>, vector<1x104x400xbf16>
    %10 = vector.shape_cast %9 : vector<1x104x400xbf16> to vector<104x400xbf16>
    %cst_9 = arith.constant dense<0.000000e+00> : vector<104x32xf32>
    %11 = tpu.matmul %10, %0, %cst_9 {dimension_numbers = #tpu.dot_dimension_numbers<[1], [0], [0], [1], [0, 0, 1, 1], [], []>} : vector<104x400xbf16>, vector<400x32xbf16>, vector<104x32xf32> -> vector<104x32xf32>
    %12 = vector.broadcast %1 : vector<1x32xf32> to vector<104x32xf32>
    %13 = arith.addf %11, %12 : vector<104x32xf32>
    %cst_10 = arith.constant 0.000000e+00 : f32
    %14 = vector.broadcast %cst_10 : f32 to vector<104x32xf32>
    %15 = arith.maximumf %13, %14 : vector<104x32xf32>
    %16 = arith.maximumf %8, %15 : vector<104x32xf32>
    %c2 = arith.constant 2 : index
    %c0_11 = arith.constant 0 : index
    %c0_12 = arith.constant 0 : index
    %17 = vector.load %arg1[%c2, %c0_11, %c0_12] : memref<4x104x400xbf16, #tpu.memory_space<vmem>>, vector<1x104x400xbf16>
    %18 = vector.shape_cast %17 : vector<1x104x400xbf16> to vector<104x400xbf16>
    %cst_13 = arith.constant dense<0.000000e+00> : vector<104x32xf32>
    %19 = tpu.matmul %18, %0, %cst_13 {dimension_numbers = #tpu.dot_dimension_numbers<[1], [0], [0], [1], [0, 0, 1, 1], [], []>} : vector<104x400xbf16>, vector<400x32xbf16>, vector<104x32xf32> -> vector<104x32xf32>
    %20 = vector.broadcast %1 : vector<1x32xf32> to vector<104x32xf32>
    %21 = arith.addf %19, %20 : vector<104x32xf32>
    %cst_14 = arith.constant 0.000000e+00 : f32
    %22 = vector.broadcast %cst_14 : f32 to vector<104x32xf32>
    %23 = arith.maximumf %21, %22 : vector<104x32xf32>
    %24 = arith.maximumf %16, %23 : vector<104x32xf32>
    %c3 = arith.constant 3 : index
    %c0_15 = arith.constant 0 : index
    %c0_16 = arith.constant 0 : index
    %25 = vector.load %arg1[%c3, %c0_15, %c0_16] : memref<4x104x400xbf16, #tpu.memory_space<vmem>>, vector<1x104x400xbf16>
    %26 = vector.shape_cast %25 : vector<1x104x400xbf16> to vector<104x400xbf16>
    %cst_17 = arith.constant dense<0.000000e+00> : vector<104x32xf32>
    %27 = tpu.matmul %26, %0, %cst_17 {dimension_numbers = #tpu.dot_dimension_numbers<[1], [0], [0], [1], [0, 0, 1, 1], [], []>} : vector<104x400xbf16>, vector<400x32xbf16>, vector<104x32xf32> -> vector<104x32xf32>
    %28 = vector.broadcast %1 : vector<1x32xf32> to vector<104x32xf32>
    %29 = arith.addf %27, %28 : vector<104x32xf32>
    %cst_18 = arith.constant 0.000000e+00 : f32
    %30 = vector.broadcast %cst_18 : f32 to vector<104x32xf32>
    %31 = arith.maximumf %29, %30 : vector<104x32xf32>
    %32 = arith.maximumf %24, %31 : vector<104x32xf32>
    %c0_19 = arith.constant 0 : index
    %c0_20 = arith.constant 0 : index
    %33 = vector.load %arg4[%c0_19, %c0_20] : memref<1x32xf32, #tpu.memory_space<vmem>>, vector<1x32xf32>
    %34 = vector.broadcast %33 : vector<1x32xf32> to vector<104x32xf32>
    %35 = arith.mulf %32, %34 : vector<104x32xf32>
    %cst_21 = arith.constant dense<0.000000e+00> : vector<104xf32>
    %36 = vector.multi_reduction <add>, %35, %cst_21 [1] : vector<104x32xf32> to vector<104xf32>
    %37 = vector.shape_cast %36 : vector<104xf32> to vector<104x1xf32>
    %c0_22 = arith.constant 0 : index
    %c0_23 = arith.constant 0 : index
    %38 = memref.load %arg5[%c0_22, %c0_23] : memref<1x1xf32, #tpu.memory_space<smem>>
    %39 = vector.broadcast %38 : f32 to vector<104x1xf32>
    %40 = arith.addf %37, %39 : vector<104x1xf32>
    %cst_24 = arith.constant 0.000000e+00 : f32
    %41 = vector.broadcast %cst_24 : f32 to vector<104x1xf32>
    %42 = arith.maximumf %40, %41 : vector<104x1xf32>
    %c0_25 = arith.constant 0 : index
    %c0_26 = arith.constant 0 : index
    %43 = vector.load %arg6[%c0_25, %c0_26] : memref<104x1xf32, #tpu.memory_space<vmem>>, vector<104x1xf32>
    tpu.vector_store %arg6[%c0_25, %c0_26], %42 {strides = array<i32>} : memref<104x1xf32, #tpu.memory_space<vmem>>, vector<104x1xf32>,
    return
  }
  func.func @transform_0(%arg0: i32) -> (i32, i32, i32) {
    %c0_i32 = arith.constant 0 : i32
    %c0_i32_0 = arith.constant 0 : i32
    %c0_i32_1 = arith.constant 0 : i32
    return %c0_i32, %arg0, %c0_i32_0 : i32, i32, i32
  }
  func.func @transform_1(%arg0: i32) -> (i32, i32) {
    %c0_i32 = arith.constant 0 : i32
    %c0_i32_0 = arith.constant 0 : i32
    %c0_i32_1 = arith.constant 0 : i32
    return %c0_i32, %c0_i32_0 : i32, i32
  }
  func.func @transform_2(%arg0: i32) -> (i32, i32) {
    %c0_i32 = arith.constant 0 : i32
    %c0_i32_0 = arith.constant 0 : i32
    %c0_i32_1 = arith.constant 0 : i32
    return %c0_i32, %c0_i32_0 : i32, i32
  }
  func.func @transform_3(%arg0: i32) -> (i32, i32) {
    %c0_i32 = arith.constant 0 : i32
    %c0_i32_0 = arith.constant 0 : i32
    %c0_i32_1 = arith.constant 0 : i32
    return %c0_i32, %c0_i32_0 : i32, i32
  }
  func.func @transform_4(%arg0: i32) -> (i32, i32) {
    %c0_i32 = arith.constant 0 : i32
    %c0_i32_0 = arith.constant 0 : i32
    %c0_i32_1 = arith.constant 0 : i32
    return %c0_i32, %c0_i32_0 : i32, i32
  }
  func.func @transform_5(%arg0: i32) -> (i32, i32) {
    %c0_i32 = arith.constant 0 : i32
    %c0_i32_0 = arith.constant 0 : i32
    return %arg0, %c0_i32 : i32, i32
  }
}

</mosaic_0001>

<bundles_post_ra>
// kernel: convnet_forward.2
= control target key start
LH: loop header
LB: loop body
LE: loop exit
PB: predicated region body
PF: predicated region fallthrough
CT: control target
= control target key end

     0   :  { %vm207_vm0 = vcmask 261120   ;;  %vm1951_vm1 = vcmask 125952   ;;  %s3572_s1 = inlined_call_operand.vmem [shape: bf16[32,16], index: 1, kind: input, shape index: {}]   ;;  %s3573_s0 = inlined_call_operand.vmem [shape: bf16[4,392,32], index: 0, kind: input, shape index: {}]   ;;  %s3574_s2 = inlined_call_operand.vmem [shape: f32[1,16], index: 2, kind: input, shape index: {}]   ;;  %s3575_s3 = inlined_call_operand.vmem [shape: bf16[392,16], index: 3, kind: output, shape index: {}]  }
   0x1   :  { %v2645_v0 = vld [vmem:[%s3572_s1 + $0x8] sm:$0xff]  ;;  %v2644_v1 = vld [vmem:[%s3572_s1] sm:$0xff]  ;;  %v2695_v8 = vld [vmem:[%s3573_s0 + $0x190] sm:$0xff] }
   0x2   :  { %289 = vmatpush.bf16.msra.mxu0 %v2645_v0  ;;  %719 = vmatpush.bf16.msra.mxu1 %v2645_v0  ;;  %v2646_v2 = vld [vmem:[%s3573_s0] sm:$0xff]  ;;  %v2694_v4 = vld [vmem:[%s3573_s0 + $0x188] sm:$0xff]  ;;  %v2719_v9 = vld [vmem:[%s3573_s0 + $0x254] sm:$0xff] }
   0x3   :  { %1198 = vmatpush.bf16.msra.mxu2 %v2645_v0  ;;  %1677 = vmatpush.bf16.msra.mxu3 %v2645_v0  ;;  %v2670_v3 = vld [vmem:[%s3573_s0 + $0xc4] sm:$0xff]  ;;  %v2718_v5 = vld [vmem:[%s3573_s0 + $0x24c] sm:$0xff]  ;;  %v2672_v11 = vld [vmem:[%s3573_s0 + $0xd4] sm:$0xff] }
   0x4   :  { %v2647_v6 = vld [vmem:[%s3573_s0 + $0x8] sm:$0xff]  ;;  %v2648_v10 = vld [vmem:[%s3573_s0 + $0x10] sm:$0xff]  ;;  %v2696_v12 = vld [vmem:[%s3573_s0 + $0x198] sm:$0xff] }
   0x5   :  { %v2671_v7 = vld [vmem:[%s3573_s0 + $0xcc] sm:$0xff]  ;;  %v2720_v13 = vld [vmem:[%s3573_s0 + $0x25c] sm:$0xff]  ;;  %v2721_v17 = vld [vmem:[%s3573_s0 + $0x264] sm:$0xff] }
   0x6   :  { %290 = vmatpush.bf16.msra.mxu0 %v2644_v1  ;;  %720 = vmatpush.bf16.msra.mxu1 %v2644_v1  ;;  %v2649_v14 = vld [vmem:[%s3573_s0 + $0x18] sm:$0xff]  ;;  %v2697_v16 = vld [vmem:[%s3573_s0 + $0x1a0] sm:$0xff]  ;;  %v2698_v20 = vld [vmem:[%s3573_s0 + $0x1a8] sm:$0xff] }
   0x7   :  { %1199 = vmatpush.bf16.msra.mxu2 %v2644_v1  ;;  %1678 = vmatpush.bf16.msra.mxu3 %v2644_v1  ;;  %v2673_v15 = vld [vmem:[%s3573_s0 + $0xdc] sm:$0xff]  ;;  %v2674_v19 = vld [vmem:[%s3573_s0 + $0xe4] sm:$0xff]  ;;  %v2722_v21 = vld [vmem:[%s3573_s0 + $0x26c] sm:$0xff] }
   0x8   :  { %v2650_v18 = vld [vmem:[%s3573_s0 + $0x20] sm:$0xff]  ;;  %v2651_v22 = vld [vmem:[%s3573_s0 + $0x28] sm:$0xff]  ;;  %v2699_v24 = vld [vmem:[%s3573_s0 + $0x1b0] sm:$0xff] }
   0x9   :  { %2109 = vmatmul.msk.bf16.vlgmr.msra.gmra.mxu0 %vm207_vm0, %v2646_v2  ;;  %2279 = vmatmul.msk.bf16.vlgmr.msra.gmra.mxu1 %vm207_vm0, %v2670_v3  ;;  %v2675_v23 = vld [vmem:[%s3573_s0 + $0xec] sm:$0xff]  ;;  %v2723_v25 = vld [vmem:[%s3573_s0 + $0x274] sm:$0xff]  ;;  %v2724_v29 = vld [vmem:[%s3573_s0 + $0x27c] sm:$0xff] }
   0xa   :  { %2449 = vmatmul.msk.bf16.vlgmr.msra.gmra.mxu2 %vm207_vm0, %v2694_v4  ;;  %2619 = vmatmul.msk.bf16.vlgmr.msra.gmra.mxu3 %vm207_vm0, %v2718_v5  ;;  %v2652_v26 = vld [vmem:[%s3573_s0 + $0x30] sm:$0xff]  ;;  %v2700_v28 = vld [vmem:[%s3573_s0 + $0x1b8] sm:$0xff]  ;;  %v2701_v32 = vld [vmem:[%s3573_s0 + $0x1c0] sm:$0xff] }
   0xb   :  { %v2676_v27 = vld [vmem:[%s3573_s0 + $0xf4] sm:$0xff]  ;;  %v2677_v31 = vld [vmem:[%s3573_s0 + $0xfc] sm:$0xff]  ;;  %v2725_v33 = vld [vmem:[%s3573_s0 + $0x284] sm:$0xff] }
   0xc   :  { %v2653_v30 = vld [vmem:[%s3573_s0 + $0x38] sm:$0xff]  ;;  %v2901_v34 = vld [vmem:[%s3574_s2] ss:$0 sm:$0xff]  ;;  %v2678_v36 = vld [vmem:[%s3573_s0 + $0x104] sm:$0xff] }
   0xd   :  { %v2654_v35 = vld [vmem:[%s3573_s0 + $0x40] sm:$0xff]  ;;  %v2702_v39 = vld [vmem:[%s3573_s0 + $0x1c8] sm:$0xff]  ;;  %v2703_v5 = vld [vmem:[%s3573_s0 + $0x1d0] sm:$0xff] }
   0xe   :  { %v2726_v40 = vld [vmem:[%s3573_s0 + $0x28c] sm:$0xff] }
   0xf   :  { %v2655_v62 = vld [vmem:[%s3573_s0 + $0x48] sm:$0xff] }
  0x10   :  { %v2679_v63 = vld [vmem:[%s3573_s0 + $0x10c] sm:$0xff] }
  0x19   :  { %2110 = vmatmul.msk.bf16.gmra.mxu0 %vm207_vm0, %v2647_v6  ;;  %2280 = vmatmul.msk.bf16.gmra.mxu1 %vm207_vm0, %v2671_v7  ;;  %v2727_v6 = vld [vmem:[%s3573_s0 + $0x294] sm:$0xff] }
  0x1a   :  { %2450 = vmatmul.msk.bf16.gmra.mxu2 %vm207_vm0, %v2695_v8  ;;  %2620 = vmatmul.msk.bf16.gmra.mxu3 %vm207_vm0, %v2719_v9 }
  0x29   :  { %2111 = vmatmul.msk.bf16.gmra.mxu0 %vm207_vm0, %v2648_v10  ;;  %2281 = vmatmul.msk.bf16.gmra.mxu1 %vm207_vm0, %v2672_v11 }
  0x2a   :  { %2451 = vmatmul.msk.bf16.gmra.mxu2 %vm207_vm0, %v2696_v12  ;;  %2621 = vmatmul.msk.bf16.gmra.mxu3 %vm207_vm0, %v2720_v13 }
  0x39   :  { %2112 = vmatmul.msk.bf16.gmra.mxu0 %vm207_vm0, %v2649_v14  ;;  %2282 = vmatmul.msk.bf16.gmra.mxu1 %vm207_vm0, %v2673_v15 }
  0x3a   :  { %2452 = vmatmul.msk.bf16.gmra.mxu2 %vm207_vm0, %v2697_v16  ;;  %2622 = vmatmul.msk.bf16.gmra.mxu3 %vm207_vm0, %v2721_v17 }
  0x49   :  { %2113 = vmatmul.msk.bf16.gmra.mxu0 %vm207_vm0, %v2650_v18  ;;  %2283 = vmatmul.msk.bf16.gmra.mxu1 %vm207_vm0, %v2674_v19 }
  0x4a   :  { %2453 = vmatmul.msk.bf16.gmra.mxu2 %vm207_vm0, %v2698_v20  ;;  %2623 = vmatmul.msk.bf16.gmra.mxu3 %vm207_vm0, %v2722_v21 }
  0x59   :  { %2114 = vmatmul.msk.bf16.gmra.mxu0 %vm207_vm0, %v2651_v22  ;;  %2284 = vmatmul.msk.bf16.gmra.mxu1 %vm207_vm0, %v2675_v23 }
  0x5a   :  { %2454 = vmatmul.msk.bf16.gmra.mxu2 %vm207_vm0, %v2699_v24  ;;  %2624 = vmatmul.msk.bf16.gmra.mxu3 %vm207_vm0, %v2723_v25 }
  0x69   :  { %2115 = vmatmul.msk.bf16.gmra.mxu0 %vm207_vm0, %v2652_v26  ;;  %2285 = vmatmul.msk.bf16.gmra.mxu1 %vm207_vm0, %v2676_v27 }
  0x6a   :  { %2455 = vmatmul.msk.bf16.gmra.mxu2 %vm207_vm0, %v2700_v28  ;;  %2625 = vmatmul.msk.bf16.gmra.mxu3 %vm207_vm0, %v2724_v29 }
  0x79   :  { %2116 = vmatmul.msk.bf16.gmra.mxu0 %vm207_vm0, %v2653_v30  ;;  %2286 = vmatmul.msk.bf16.gmra.mxu1 %vm207_vm0, %v2677_v31 }
  0x7a   :  { %2456 = vmatmul.msk.bf16.gmra.mxu2 %vm207_vm0, %v2701_v32  ;;  %2626 = vmatmul.msk.bf16.gmra.mxu3 %vm207_vm0, %v2725_v33 }
  0x86   :  { %v292_v37 = vpop.f32.mrf.mxu0  ;;  %v722_v38 = vpop.f32.mrf.mxu1 }
  0x87   :  { %v293_v41 = vadd.f32 %v2901_v34, %v292_v37  ;;  %v723_v42 = vadd.f32 %v2901_v34, %v722_v38 }
  0x89   :  { %2117 = vmatmul.msk.bf16.gmra.mxu0 %vm207_vm0, %v2654_v35  ;;  %2287 = vmatmul.msk.bf16.gmra.mxu1 %vm207_vm0, %v2678_v36  ;;  %v416_v43 = vmax.f32 %v293_v41, 0.0  ;;  %v846_v44 = vmax.f32 %v723_v42, 0.0  ;;  %v2656_v35 = vld [vmem:[%s3573_s0 + $0x50] sm:$0xff]  ;;  %v2704_v42 = vld [vmem:[%s3573_s0 + $0x1d8] sm:$0xff] }
  0x8a   :  { %2457 = vmatmul.msk.bf16.gmra.mxu2 %vm207_vm0, %v2702_v39  ;;  %2627 = vmatmul.msk.bf16.gmra.mxu3 %vm207_vm0, %v2726_v40  ;;  %v2680_v36 = vld [vmem:[%s3573_s0 + $0x114] sm:$0xff] }
  0x8b   :  { %v895_v47 = vmax.f32 %v416_v43, %v846_v44  ;;  %v2728_v43 = vld [vmem:[%s3573_s0 + $0x29c] sm:$0xff] }
  0x8d   :  { %v1201_v45 = vpop.f32.mrf.mxu2  ;;  %v1680_v46 = vpop.f32.mrf.mxu3 }
  0x8e   :  { %v1202_v48 = vadd.f32 %v2901_v34, %v1201_v45  ;;  %v1681_v49 = vadd.f32 %v2901_v34, %v1680_v46  ;;  %v294_v50 = vpop.f32.mrf.mxu0  ;;  %v724_v51 = vpop.f32.mrf.mxu1 }
  0x8f   :  { %v295_v54 = vadd.f32 %v2901_v34, %v294_v50  ;;  %v725_v55 = vadd.f32 %v2901_v34, %v724_v51 }
  0x90   :  { %v1325_v52 = vmax.f32 %v1202_v48, 0.0  ;;  %v1804_v53 = vmax.f32 %v1681_v49, 0.0 }
  0x91   :  { %v417_v58 = vmax.f32 %v295_v54, 0.0  ;;  %v847_v59 = vmax.f32 %v725_v55, 0.0 }
  0x92   :  { %v1374_v56 = vmax.f32 %v895_v47, %v1325_v52 }
  0x93   :  { %v896_v9 = vmax.f32 %v417_v58, %v847_v59 }
  0x94   :  { %v1853_v57 = vmax.f32 %v1374_v56, %v1804_v53 }
  0x95   :  { %v1203_v60 = vpop.f32.mrf.mxu2  ;;  %v1682_v61 = vpop.f32.mrf.mxu3 }
  0x96   :  { %v1902_v0 = vpack.c.bf16 %v1853_v57, %v1853_v57  ;;  %v1204_v1 = vadd.f32 %v2901_v34, %v1203_v60  ;;  %v1683_v2 = vadd.f32 %v2901_v34, %v1682_v61  ;;  %v297_v3 = vpop.f32.mrf.mxu0  ;;  %v727_v4 = vpop.f32.mrf.mxu1 }
  0x97   :  { %v298_v7 = vadd.f32 %v2901_v34, %v297_v3  ;;  %v728_v8 = vadd.f32 %v2901_v34, %v727_v4 }
  0x98   :  { %1952 = vst.msk [vmem:[%s3575_s3] sm:$0xf] %vm1951_vm1, %v1902_v0  ;;  %v1326_v10 = vmax.f32 %v1204_v1, 0.0  ;;  %v1805_v12 = vmax.f32 %v1683_v2, 0.0 }
  0x99   :  { %2118 = vmatmul.msk.bf16.gmra.mxu0 %vm207_vm0, %v2655_v62  ;;  %2288 = vmatmul.msk.bf16.gmra.mxu1 %vm207_vm0, %v2679_v63  ;;  %v418_v13 = vmax.f32 %v298_v7, 0.0  ;;  %v848_v14 = vmax.f32 %v728_v8, 0.0  ;;  %v2657_v7 = vld [vmem:[%s3573_s0 + $0x58] sm:$0xff] }
  0x9a   :  { %v1375_v11 = vmax.f32 %v896_v9, %v1326_v10  ;;  %2458 = vmatmul.msk.bf16.gmra.mxu2 %vm207_vm0, %v2703_v5  ;;  %2628 = vmatmul.msk.bf16.gmra.mxu3 %vm207_vm0, %v2727_v6  ;;  %v2681_v8 = vld [vmem:[%s3573_s0 + $0x11c] sm:$0xff] }
  0x9b   :  { %v897_v19 = vmax.f32 %v418_v13, %v848_v14  ;;  %v2705_v14 = vld [vmem:[%s3573_s0 + $0x1e0] sm:$0xff] }
  0x9c   :  { %v1854_v15 = vmax.f32 %v1375_v11, %v1805_v12 }
  0x9d   :  { %v1206_v16 = vpop.f32.mrf.mxu2  ;;  %v1685_v17 = vpop.f32.mrf.mxu3 }
  0x9e   :  { %v1903_v18 = vpack.c.bf16 %v1854_v15, %v1854_v15  ;;  %v1207_v20 = vadd.f32 %v2901_v34, %v1206_v16  ;;  %v1686_v21 = vadd.f32 %v2901_v34, %v1685_v17  ;;  %v299_v22 = vpop.f32.mrf.mxu0  ;;  %v729_v23 = vpop.f32.mrf.mxu1  ;;  %v2729_v15 = vld [vmem:[%s3573_s0 + $0x2a4] sm:$0xff] }
  0x9f   :  { %v300_v26 = vadd.f32 %v2901_v34, %v299_v22  ;;  %v730_v27 = vadd.f32 %v2901_v34, %v729_v23 }
  0xa0   :  { %1953 = vst.msk [vmem:[%s3575_s3 + $0x4] sm:$0xf] %vm1951_vm1, %v1903_v18  ;;  %v1327_v24 = vmax.f32 %v1207_v20, 0.0  ;;  %v1806_v25 = vmax.f32 %v1686_v21, 0.0 }
  0xa1   :  { %v419_v30 = vmax.f32 %v300_v26, 0.0  ;;  %v849_v31 = vmax.f32 %v730_v27, 0.0 }
  0xa2   :  { %v1376_v28 = vmax.f32 %v897_v19, %v1327_v24 }
  0xa3   :  { %v898_v46 = vmax.f32 %v419_v30, %v849_v31 }
  0xa4   :  { %v1855_v29 = vmax.f32 %v1376_v28, %v1806_v25 }
  0xa5   :  { %v1208_v32 = vpop.f32.mrf.mxu2  ;;  %v1687_v33 = vpop.f32.mrf.mxu3 }
  0xa6   :  { %v1904_v37 = vpack.c.bf16 %v1855_v29, %v1855_v29  ;;  %v1209_v38 = vadd.f32 %v2901_v34, %v1208_v32  ;;  %v1688_v39 = vadd.f32 %v2901_v34, %v1687_v33  ;;  %v302_v40 = vpop.f32.mrf.mxu0  ;;  %v732_v41 = vpop.f32.mrf.mxu1 }
  0xa7   :  { %v303_v44 = vadd.f32 %v2901_v34, %v302_v40  ;;  %v733_v45 = vadd.f32 %v2901_v34, %v732_v41 }
  0xa8   :  { %1954 = vst.msk [vmem:[%s3575_s3 + $0x8] sm:$0xf] %vm1951_vm1, %v1904_v37  ;;  %v1328_v47 = vmax.f32 %v1209_v38, 0.0  ;;  %v1807_v49 = vmax.f32 %v1688_v39, 0.0 }
  0xa9   :  { %2119 = vmatmul.msk.bf16.gmra.mxu0 %vm207_vm0, %v2656_v35  ;;  %2289 = vmatmul.msk.bf16.gmra.mxu1 %vm207_vm0, %v2680_v36  ;;  %v420_v50 = vmax.f32 %v303_v44, 0.0  ;;  %v850_v51 = vmax.f32 %v733_v45, 0.0  ;;  %v2658_v44 = vld [vmem:[%s3573_s0 + $0x60] sm:$0xff] }
  0xaa   :  { %v1377_v48 = vmax.f32 %v898_v46, %v1328_v47  ;;  %2459 = vmatmul.msk.bf16.gmra.mxu2 %vm207_vm0, %v2704_v42  ;;  %2629 = vmatmul.msk.bf16.gmra.mxu3 %vm207_vm0, %v2728_v43  ;;  %v2682_v45 = vld [vmem:[%s3573_s0 + $0x124] sm:$0xff] }
  0xab   :  { %v899_v56 = vmax.f32 %v420_v50, %v850_v51  ;;  %v2706_v51 = vld [vmem:[%s3573_s0 + $0x1e8] sm:$0xff] }
  0xac   :  { %v1856_v52 = vmax.f32 %v1377_v48, %v1807_v49 }
  0xad   :  { %v1211_v53 = vpop.f32.mrf.mxu2  ;;  %v1690_v54 = vpop.f32.mrf.mxu3 }
  0xae   :  { %v1905_v55 = vpack.c.bf16 %v1856_v52, %v1856_v52  ;;  %v1212_v57 = vadd.f32 %v2901_v34, %v1211_v53  ;;  %v1691_v58 = vadd.f32 %v2901_v34, %v1690_v54  ;;  %v304_v59 = vpop.f32.mrf.mxu0  ;;  %v734_v60 = vpop.f32.mrf.mxu1  ;;  %v2730_v52 = vld [vmem:[%s3573_s0 + $0x2ac] sm:$0xff] }
  0xaf   :  { %v305_v63 = vadd.f32 %v2901_v34, %v304_v59  ;;  %v735_v0 = vadd.f32 %v2901_v34, %v734_v60 }
  0xb0   :  { %1955 = vst.msk [vmem:[%s3575_s3 + $0xc] sm:$0xf] %vm1951_vm1, %v1905_v55  ;;  %v1329_v61 = vmax.f32 %v1212_v57, 0.0  ;;  %v1808_v62 = vmax.f32 %v1691_v58, 0.0 }
  0xb1   :  { %v421_v3 = vmax.f32 %v305_v63, 0.0  ;;  %v851_v4 = vmax.f32 %v735_v0, 0.0 }
  0xb2   :  { %v1378_v1 = vmax.f32 %v899_v56, %v1329_v61 }
  0xb3   :  { %v900_v18 = vmax.f32 %v421_v3, %v851_v4 }
  0xb4   :  { %v1857_v2 = vmax.f32 %v1378_v1, %v1808_v62 }
  0xb5   :  { %v1213_v5 = vpop.f32.mrf.mxu2  ;;  %v1692_v6 = vpop.f32.mrf.mxu3 }
  0xb6   :  { %v1906_v9 = vpack.c.bf16 %v1857_v2, %v1857_v2  ;;  %v1214_v10 = vadd.f32 %v2901_v34, %v1213_v5  ;;  %v1693_v11 = vadd.f32 %v2901_v34, %v1692_v6  ;;  %v307_v12 = vpop.f32.mrf.mxu0  ;;  %v737_v13 = vpop.f32.mrf.mxu1 }
  0xb7   :  { %v308_v16 = vadd.f32 %v2901_v34, %v307_v12  ;;  %v738_v17 = vadd.f32 %v2901_v34, %v737_v13 }
  0xb8   :  { %1956 = vst.msk [vmem:[%s3575_s3 + $0x10] sm:$0xf] %vm1951_vm1, %v1906_v9  ;;  %v1330_v19 = vmax.f32 %v1214_v10, 0.0  ;;  %v1809_v21 = vmax.f32 %v1693_v11, 0.0 }
  0xb9   :  { %2120 = vmatmul.msk.bf16.gmra.mxu0 %vm207_vm0, %v2657_v7  ;;  %2290 = vmatmul.msk.bf16.gmra.mxu1 %vm207_vm0, %v2681_v8  ;;  %v422_v22 = vmax.f32 %v308_v16, 0.0  ;;  %v852_v23 = vmax.f32 %v738_v17, 0.0  ;;  %v2659_v16 = vld [vmem:[%s3573_s0 + $0x68] sm:$0xff] }
  0xba   :  { %v1379_v20 = vmax.f32 %v900_v18, %v1330_v19  ;;  %2460 = vmatmul.msk.bf16.gmra.mxu2 %vm207_vm0, %v2705_v14  ;;  %2630 = vmatmul.msk.bf16.gmra.mxu3 %vm207_vm0, %v2729_v15  ;;  %v2683_v17 = vld [vmem:[%s3573_s0 + $0x12c] sm:$0xff] }
  0xbb   :  { %v901_v28 = vmax.f32 %v422_v22, %v852_v23  ;;  %v2707_v23 = vld [vmem:[%s3573_s0 + $0x1f0] sm:$0xff] }
  0xbc   :  { %v1858_v24 = vmax.f32 %v1379_v20, %v1809_v21 }
  0xbd   :  { %v1216_v25 = vpop.f32.mrf.mxu2  ;;  %v1695_v26 = vpop.f32.mrf.mxu3 }
  0xbe   :  { %v1907_v27 = vpack.c.bf16 %v1858_v24, %v1858_v24  ;;  %v1217_v29 = vadd.f32 %v2901_v34, %v1216_v25  ;;  %v1696_v30 = vadd.f32 %v2901_v34, %v1695_v26  ;;  %v309_v31 = vpop.f32.mrf.mxu0  ;;  %v739_v32 = vpop.f32.mrf.mxu1  ;;  %v2731_v24 = vld [vmem:[%s3573_s0 + $0x2b4] sm:$0xff] }
  0xbf   :  { %v310_v36 = vadd.f32 %v2901_v34, %v309_v31  ;;  %v740_v37 = vadd.f32 %v2901_v34, %v739_v32 }
  0xc0   :  { %1957 = vst.msk [vmem:[%s3575_s3 + $0x14] sm:$0xf] %vm1951_vm1, %v1907_v27  ;;  %v1331_v33 = vmax.f32 %v1217_v29, 0.0  ;;  %v1810_v35 = vmax.f32 %v1696_v30, 0.0 }
  0xc1   :  { %v423_v40 = vmax.f32 %v310_v36, 0.0  ;;  %v853_v41 = vmax.f32 %v740_v37, 0.0 }
  0xc2   :  { %v1380_v38 = vmax.f32 %v901_v28, %v1331_v33 }
  0xc3   :  { %v902_v55 = vmax.f32 %v423_v40, %v853_v41 }
  0xc4   :  { %v1859_v39 = vmax.f32 %v1380_v38, %v1810_v35 }
  0xc5   :  { %v1218_v42 = vpop.f32.mrf.mxu2  ;;  %v1697_v43 = vpop.f32.mrf.mxu3 }
  0xc6   :  { %v1908_v46 = vpack.c.bf16 %v1859_v39, %v1859_v39  ;;  %v1219_v47 = vadd.f32 %v2901_v34, %v1218_v42  ;;  %v1698_v48 = vadd.f32 %v2901_v34, %v1697_v43  ;;  %v312_v49 = vpop.f32.mrf.mxu0  ;;  %v742_v50 = vpop.f32.mrf.mxu1 }
  0xc7   :  { %v313_v53 = vadd.f32 %v2901_v34, %v312_v49  ;;  %v743_v54 = vadd.f32 %v2901_v34, %v742_v50 }
  0xc8   :  { %1958 = vst.msk [vmem:[%s3575_s3 + $0x18] sm:$0xf] %vm1951_vm1, %v1908_v46  ;;  %v1332_v56 = vmax.f32 %v1219_v47, 0.0  ;;  %v1811_v58 = vmax.f32 %v1698_v48, 0.0 }
  0xc9   :  { %2121 = vmatmul.msk.bf16.gmra.mxu0 %vm207_vm0, %v2658_v44  ;;  %2291 = vmatmul.msk.bf16.gmra.mxu1 %vm207_vm0, %v2682_v45  ;;  %v424_v59 = vmax.f32 %v313_v53, 0.0  ;;  %v854_v60 = vmax.f32 %v743_v54, 0.0  ;;  %v2660_v53 = vld [vmem:[%s3573_s0 + $0x70] sm:$0xff] }
  0xca   :  { %v1381_v57 = vmax.f32 %v902_v55, %v1332_v56  ;;  %2461 = vmatmul.msk.bf16.gmra.mxu2 %vm207_vm0, %v2706_v51  ;;  %2631 = vmatmul.msk.bf16.gmra.mxu3 %vm207_vm0, %v2730_v52  ;;  %v2684_v54 = vld [vmem:[%s3573_s0 + $0x134] sm:$0xff] }
  0xcb   :  { %v903_v1 = vmax.f32 %v424_v59, %v854_v60  ;;  %v2708_v60 = vld [vmem:[%s3573_s0 + $0x1f8] sm:$0xff] }
  0xcc   :  { %v1860_v61 = vmax.f32 %v1381_v57, %v1811_v58 }
  0xcd   :  { %v1221_v62 = vpop.f32.mrf.mxu2  ;;  %v1700_v63 = vpop.f32.mrf.mxu3 }
  0xce   :  { %v1909_v0 = vpack.c.bf16 %v1860_v61, %v1860_v61  ;;  %v1222_v2 = vadd.f32 %v2901_v34, %v1221_v62  ;;  %v1701_v3 = vadd.f32 %v2901_v34, %v1700_v63  ;;  %v314_v4 = vpop.f32.mrf.mxu0  ;;  %v744_v5 = vpop.f32.mrf.mxu1  ;;  %v2732_v61 = vld [vmem:[%s3573_s0 + $0x2bc] sm:$0xff] }
  0xcf   :  { %v315_v8 = vadd.f32 %v2901_v34, %v314_v4  ;;  %v745_v9 = vadd.f32 %v2901_v34, %v744_v5 }
  0xd0   :  { %1959 = vst.msk [vmem:[%s3575_s3 + $0x1c] sm:$0xf] %vm1951_vm1, %v1909_v0  ;;  %v1333_v6 = vmax.f32 %v1222_v2, 0.0  ;;  %v1812_v7 = vmax.f32 %v1701_v3, 0.0 }
  0xd1   :  { %v425_v12 = vmax.f32 %v315_v8, 0.0  ;;  %v855_v13 = vmax.f32 %v745_v9, 0.0 }
  0xd2   :  { %v1382_v10 = vmax.f32 %v903_v1, %v1333_v6 }
  0xd3   :  { %v904_v27 = vmax.f32 %v425_v12, %v855_v13 }
  0xd4   :  { %v1861_v11 = vmax.f32 %v1382_v10, %v1812_v7 }
  0xd5   :  { %v1223_v14 = vpop.f32.mrf.mxu2  ;;  %v1702_v15 = vpop.f32.mrf.mxu3 }
  0xd6   :  { %v1910_v18 = vpack.c.bf16 %v1861_v11, %v1861_v11  ;;  %v1224_v19 = vadd.f32 %v2901_v34, %v1223_v14  ;;  %v1703_v20 = vadd.f32 %v2901_v34, %v1702_v15  ;;  %v317_v21 = vpop.f32.mrf.mxu0  ;;  %v747_v22 = vpop.f32.mrf.mxu1 }
  0xd7   :  { %v318_v25 = vadd.f32 %v2901_v34, %v317_v21  ;;  %v748_v26 = vadd.f32 %v2901_v34, %v747_v22 }
  0xd8   :  { %1960 = vst.msk [vmem:[%s3575_s3 + $0x20] sm:$0xf] %vm1951_vm1, %v1910_v18  ;;  %v1334_v28 = vmax.f32 %v1224_v19, 0.0  ;;  %v1813_v30 = vmax.f32 %v1703_v20, 0.0 }
  0xd9   :  { %2122 = vmatmul.msk.bf16.gmra.mxu0 %vm207_vm0, %v2659_v16  ;;  %2292 = vmatmul.msk.bf16.gmra.mxu1 %vm207_vm0, %v2683_v17  ;;  %v426_v31 = vmax.f32 %v318_v25, 0.0  ;;  %v856_v32 = vmax.f32 %v748_v26, 0.0  ;;  %v2661_v25 = vld [vmem:[%s3573_s0 + $0x78] sm:$0xff] }
  0xda   :  { %v1383_v29 = vmax.f32 %v904_v27, %v1334_v28  ;;  %2462 = vmatmul.msk.bf16.gmra.mxu2 %vm207_vm0, %v2707_v23  ;;  %2632 = vmatmul.msk.bf16.gmra.mxu3 %vm207_vm0, %v2731_v24  ;;  %v2685_v26 = vld [vmem:[%s3573_s0 + $0x13c] sm:$0xff] }
  0xdb   :  { %v905_v38 = vmax.f32 %v426_v31, %v856_v32  ;;  %v2709_v32 = vld [vmem:[%s3573_s0 + $0x200] sm:$0xff] }
  0xdc   :  { %v1862_v33 = vmax.f32 %v1383_v29, %v1813_v30 }
  0xdd   :  { %v1226_v35 = vpop.f32.mrf.mxu2  ;;  %v1705_v36 = vpop.f32.mrf.mxu3 }
  0xde   :  { %v1911_v37 = vpack.c.bf16 %v1862_v33, %v1862_v33  ;;  %v1227_v39 = vadd.f32 %v2901_v34, %v1226_v35  ;;  %v1706_v40 = vadd.f32 %v2901_v34, %v1705_v36  ;;  %v319_v41 = vpop.f32.mrf.mxu0  ;;  %v749_v42 = vpop.f32.mrf.mxu1  ;;  %v2733_v33 = vld [vmem:[%s3573_s0 + $0x2c4] sm:$0xff] }
  0xdf   :  { %v320_v45 = vadd.f32 %v2901_v34, %v319_v41  ;;  %v750_v46 = vadd.f32 %v2901_v34, %v749_v42 }
  0xe0   :  { %1961 = vst.msk [vmem:[%s3575_s3 + $0x24] sm:$0xf] %vm1951_vm1, %v1911_v37  ;;  %v1335_v43 = vmax.f32 %v1227_v39, 0.0  ;;  %v1814_v44 = vmax.f32 %v1706_v40, 0.0 }
  0xe1   :  { %v427_v49 = vmax.f32 %v320_v45, 0.0  ;;  %v857_v50 = vmax.f32 %v750_v46, 0.0 }
  0xe2   :  { %v1384_v47 = vmax.f32 %v905_v38, %v1335_v43 }
  0xe3   :  { %v906_v0 = vmax.f32 %v427_v49, %v857_v50 }
  0xe4   :  { %v1863_v48 = vmax.f32 %v1384_v47, %v1814_v44 }
  0xe5   :  { %v1228_v51 = vpop.f32.mrf.mxu2  ;;  %v1707_v52 = vpop.f32.mrf.mxu3 }
  0xe6   :  { %v1912_v55 = vpack.c.bf16 %v1863_v48, %v1863_v48  ;;  %v1229_v56 = vadd.f32 %v2901_v34, %v1228_v51  ;;  %v1708_v57 = vadd.f32 %v2901_v34, %v1707_v52  ;;  %v322_v58 = vpop.f32.mrf.mxu0  ;;  %v752_v59 = vpop.f32.mrf.mxu1 }
  0xe7   :  { %v323_v62 = vadd.f32 %v2901_v34, %v322_v58  ;;  %v753_v63 = vadd.f32 %v2901_v34, %v752_v59 }
  0xe8   :  { %1962 = vst.msk [vmem:[%s3575_s3 + $0x28] sm:$0xf] %vm1951_vm1, %v1912_v55  ;;  %v1336_v1 = vmax.f32 %v1229_v56, 0.0  ;;  %v1815_v3 = vmax.f32 %v1708_v57, 0.0 }
  0xe9   :  { %2123 = vmatmul.msk.bf16.gmra.mxu0 %vm207_vm0, %v2660_v53  ;;  %2293 = vmatmul.msk.bf16.gmra.mxu1 %vm207_vm0, %v2684_v54  ;;  %v428_v4 = vmax.f32 %v323_v62, 0.0  ;;  %v858_v5 = vmax.f32 %v753_v63, 0.0  ;;  %v2662_v62 = vld [vmem:[%s3573_s0 + $0x80] sm:$0xff] }
  0xea   :  { %v1385_v2 = vmax.f32 %v906_v0, %v1336_v1  ;;  %2463 = vmatmul.msk.bf16.gmra.mxu2 %vm207_vm0, %v2708_v60  ;;  %2633 = vmatmul.msk.bf16.gmra.mxu3 %vm207_vm0, %v2732_v61  ;;  %v2686_v63 = vld [vmem:[%s3573_s0 + $0x144] sm:$0xff] }
  0xeb   :  { %v907_v10 = vmax.f32 %v428_v4, %v858_v5  ;;  %v2710_v5 = vld [vmem:[%s3573_s0 + $0x208] sm:$0xff] }
  0xec   :  { %v1864_v6 = vmax.f32 %v1385_v2, %v1815_v3 }
  0xed   :  { %v1231_v7 = vpop.f32.mrf.mxu2  ;;  %v1710_v8 = vpop.f32.mrf.mxu3 }
  0xee   :  { %v1913_v9 = vpack.c.bf16 %v1864_v6, %v1864_v6  ;;  %v1232_v11 = vadd.f32 %v2901_v34, %v1231_v7  ;;  %v1711_v12 = vadd.f32 %v2901_v34, %v1710_v8  ;;  %v324_v13 = vpop.f32.mrf.mxu0  ;;  %v754_v14 = vpop.f32.mrf.mxu1  ;;  %v2734_v6 = vld [vmem:[%s3573_s0 + $0x2cc] sm:$0xff] }
  0xef   :  { %v325_v17 = vadd.f32 %v2901_v34, %v324_v13  ;;  %v755_v18 = vadd.f32 %v2901_v34, %v754_v14 }
  0xf0   :  { %1963 = vst.msk [vmem:[%s3575_s3 + $0x2c] sm:$0xf] %vm1951_vm1, %v1913_v9  ;;  %v1337_v15 = vmax.f32 %v1232_v11, 0.0  ;;  %v1816_v16 = vmax.f32 %v1711_v12, 0.0 }
  0xf1   :  { %v429_v21 = vmax.f32 %v325_v17, 0.0  ;;  %v859_v22 = vmax.f32 %v755_v18, 0.0 }
  0xf2   :  { %v1386_v19 = vmax.f32 %v907_v10, %v1337_v15 }
  0xf3   :  { %v908_v37 = vmax.f32 %v429_v21, %v859_v22 }
  0xf4   :  { %v1865_v20 = vmax.f32 %v1386_v19, %v1816_v16 }
  0xf5   :  { %v1233_v23 = vpop.f32.mrf.mxu2  ;;  %v1712_v24 = vpop.f32.mrf.mxu3 }
  0xf6   :  { %v1914_v27 = vpack.c.bf16 %v1865_v20, %v1865_v20  ;;  %v1234_v28 = vadd.f32 %v2901_v34, %v1233_v23  ;;  %v1713_v29 = vadd.f32 %v2901_v34, %v1712_v24  ;;  %v327_v30 = vpop.f32.mrf.mxu0  ;;  %v757_v31 = vpop.f32.mrf.mxu1 }
  0xf7   :  { %v328_v35 = vadd.f32 %v2901_v34, %v327_v30  ;;  %v758_v36 = vadd.f32 %v2901_v34, %v757_v31 }
  0xf8   :  { %1964 = vst.msk [vmem:[%s3575_s3 + $0x30] sm:$0xf] %vm1951_vm1, %v1914_v27  ;;  %v1338_v38 = vmax.f32 %v1234_v28, 0.0  ;;  %v1817_v40 = vmax.f32 %v1713_v29, 0.0 }
  0xf9   :  { %2124 = vmatmul.msk.bf16.gmra.mxu0 %vm207_vm0, %v2661_v25  ;;  %2294 = vmatmul.msk.bf16.gmra.mxu1 %vm207_vm0, %v2685_v26  ;;  %v430_v41 = vmax.f32 %v328_v35, 0.0  ;;  %v860_v42 = vmax.f32 %v758_v36, 0.0  ;;  %v2663_v35 = vld [vmem:[%s3573_s0 + $0x88] sm:$0xff] }
  0xfa   :  { %v1387_v39 = vmax.f32 %v908_v37, %v1338_v38  ;;  %2464 = vmatmul.msk.bf16.gmra.mxu2 %vm207_vm0, %v2709_v32  ;;  %2634 = vmatmul.msk.bf16.gmra.mxu3 %vm207_vm0, %v2733_v33  ;;  %v2687_v36 = vld [vmem:[%s3573_s0 + $0x14c] sm:$0xff] }
  0xfb   :  { %v909_v47 = vmax.f32 %v430_v41, %v860_v42  ;;  %v2711_v42 = vld [vmem:[%s3573_s0 + $0x210] sm:$0xff] }
  0xfc   :  { %v1866_v43 = vmax.f32 %v1387_v39, %v1817_v40 }
  0xfd   :  { %v1236_v44 = vpop.f32.mrf.mxu2  ;;  %v1715_v45 = vpop.f32.mrf.mxu3 }
  0xfe   :  { %v1915_v46 = vpack.c.bf16 %v1866_v43, %v1866_v43  ;;  %v1237_v48 = vadd.f32 %v2901_v34, %v1236_v44  ;;  %v1716_v49 = vadd.f32 %v2901_v34, %v1715_v45  ;;  %v329_v50 = vpop.f32.mrf.mxu0  ;;  %v759_v51 = vpop.f32.mrf.mxu1  ;;  %v2735_v43 = vld [vmem:[%s3573_s0 + $0x2d4] sm:$0xff] }
  0xff   :  { %v330_v54 = vadd.f32 %v2901_v34, %v329_v50  ;;  %v760_v55 = vadd.f32 %v2901_v34, %v759_v51 }
 0x100   :  { %1965 = vst.msk [vmem:[%s3575_s3 + $0x34] sm:$0xf] %vm1951_vm1, %v1915_v46  ;;  %v1339_v52 = vmax.f32 %v1237_v48, 0.0  ;;  %v1818_v53 = vmax.f32 %v1716_v49, 0.0 }
 0x101   :  { %v431_v58 = vmax.f32 %v330_v54, 0.0  ;;  %v861_v59 = vmax.f32 %v760_v55, 0.0 }
 0x102   :  { %v1388_v56 = vmax.f32 %v909_v47, %v1339_v52 }
 0x103   :  { %v910_v9 = vmax.f32 %v431_v58, %v861_v59 }
 0x104   :  { %v1867_v57 = vmax.f32 %v1388_v56, %v1818_v53 }
 0x105   :  { %v1238_v60 = vpop.f32.mrf.mxu2  ;;  %v1717_v61 = vpop.f32.mrf.mxu3 }
 0x106   :  { %v1916_v0 = vpack.c.bf16 %v1867_v57, %v1867_v57  ;;  %v1239_v1 = vadd.f32 %v2901_v34, %v1238_v60  ;;  %v1718_v2 = vadd.f32 %v2901_v34, %v1717_v61  ;;  %v332_v3 = vpop.f32.mrf.mxu0  ;;  %v762_v4 = vpop.f32.mrf.mxu1 }
 0x107   :  { %v333_v7 = vadd.f32 %v2901_v34, %v332_v3  ;;  %v763_v8 = vadd.f32 %v2901_v34, %v762_v4 }
 0x108   :  { %1966 = vst.msk [vmem:[%s3575_s3 + $0x38] sm:$0xf] %vm1951_vm1, %v1916_v0  ;;  %v1340_v10 = vmax.f32 %v1239_v1, 0.0  ;;  %v1819_v12 = vmax.f32 %v1718_v2, 0.0 }
 0x109   :  { %2125 = vmatmul.msk.bf16.gmra.mxu0 %vm207_vm0, %v2662_v62  ;;  %2295 = vmatmul.msk.bf16.gmra.mxu1 %vm207_vm0, %v2686_v63  ;;  %v432_v13 = vmax.f32 %v333_v7, 0.0  ;;  %v862_v14 = vmax.f32 %v763_v8, 0.0  ;;  %v2664_v7 = vld [vmem:[%s3573_s0 + $0x90] sm:$0xff] }
 0x10a   :  { %v1389_v11 = vmax.f32 %v910_v9, %v1340_v10  ;;  %2465 = vmatmul.msk.bf16.gmra.mxu2 %vm207_vm0, %v2710_v5  ;;  %2635 = vmatmul.msk.bf16.gmra.mxu3 %vm207_vm0, %v2734_v6  ;;  %v2688_v8 = vld [vmem:[%s3573_s0 + $0x154] sm:$0xff] }
 0x10b   :  { %v911_v19 = vmax.f32 %v432_v13, %v862_v14  ;;  %v2712_v14 = vld [vmem:[%s3573_s0 + $0x218] sm:$0xff] }
 0x10c   :  { %v1868_v15 = vmax.f32 %v1389_v11, %v1819_v12 }
 0x10d   :  { %v1241_v16 = vpop.f32.mrf.mxu2  ;;  %v1720_v17 = vpop.f32.mrf.mxu3 }
 0x10e   :  { %v1917_v18 = vpack.c.bf16 %v1868_v15, %v1868_v15  ;;  %v1242_v20 = vadd.f32 %v2901_v34, %v1241_v16  ;;  %v1721_v21 = vadd.f32 %v2901_v34, %v1720_v17  ;;  %v334_v22 = vpop.f32.mrf.mxu0  ;;  %v764_v23 = vpop.f32.mrf.mxu1  ;;  %v2736_v15 = vld [vmem:[%s3573_s0 + $0x2dc] sm:$0xff] }
 0x10f   :  { %v335_v26 = vadd.f32 %v2901_v34, %v334_v22  ;;  %v765_v27 = vadd.f32 %v2901_v34, %v764_v23 }
 0x110   :  { %1967 = vst.msk [vmem:[%s3575_s3 + $0x3c] sm:$0xf] %vm1951_vm1, %v1917_v18  ;;  %v1341_v24 = vmax.f32 %v1242_v20, 0.0  ;;  %v1820_v25 = vmax.f32 %v1721_v21, 0.0 }
 0x111   :  { %v433_v30 = vmax.f32 %v335_v26, 0.0  ;;  %v863_v31 = vmax.f32 %v765_v27, 0.0 }
 0x112   :  { %v1390_v28 = vmax.f32 %v911_v19, %v1341_v24 }
 0x113   :  { %v912_v46 = vmax.f32 %v433_v30, %v863_v31 }
 0x114   :  { %v1869_v29 = vmax.f32 %v1390_v28, %v1820_v25 }
 0x115   :  { %v1243_v32 = vpop.f32.mrf.mxu2  ;;  %v1722_v33 = vpop.f32.mrf.mxu3 }
 0x116   :  { %v1918_v37 = vpack.c.bf16 %v1869_v29, %v1869_v29  ;;  %v1244_v38 = vadd.f32 %v2901_v34, %v1243_v32  ;;  %v1723_v39 = vadd.f32 %v2901_v34, %v1722_v33  ;;  %v337_v40 = vpop.f32.mrf.mxu0  ;;  %v767_v41 = vpop.f32.mrf.mxu1 }
 0x117   :  { %v338_v44 = vadd.f32 %v2901_v34, %v337_v40  ;;  %v768_v45 = vadd.f32 %v2901_v34, %v767_v41 }
 0x118   :  { %1968 = vst.msk [vmem:[%s3575_s3 + $0x40] sm:$0xf] %vm1951_vm1, %v1918_v37  ;;  %v1342_v47 = vmax.f32 %v1244_v38, 0.0  ;;  %v1821_v49 = vmax.f32 %v1723_v39, 0.0 }
 0x119   :  { %2126 = vmatmul.msk.bf16.gmra.mxu0 %vm207_vm0, %v2663_v35  ;;  %2296 = vmatmul.msk.bf16.gmra.mxu1 %vm207_vm0, %v2687_v36  ;;  %v434_v50 = vmax.f32 %v338_v44, 0.0  ;;  %v864_v51 = vmax.f32 %v768_v45, 0.0  ;;  %v2665_v44 = vld [vmem:[%s3573_s0 + $0x98] sm:$0xff] }
 0x11a   :  { %v1391_v48 = vmax.f32 %v912_v46, %v1342_v47  ;;  %2466 = vmatmul.msk.bf16.gmra.mxu2 %vm207_vm0, %v2711_v42  ;;  %2636 = vmatmul.msk.bf16.gmra.mxu3 %vm207_vm0, %v2735_v43  ;;  %v2689_v45 = vld [vmem:[%s3573_s0 + $0x15c] sm:$0xff] }
 0x11b   :  { %v913_v56 = vmax.f32 %v434_v50, %v864_v51  ;;  %v2713_v51 = vld [vmem:[%s3573_s0 + $0x220] sm:$0xff] }
 0x11c   :  { %v1870_v52 = vmax.f32 %v1391_v48, %v1821_v49 }
 0x11d   :  { %v1246_v53 = vpop.f32.mrf.mxu2  ;;  %v1725_v54 = vpop.f32.mrf.mxu3 }
 0x11e   :  { %v1919_v55 = vpack.c.bf16 %v1870_v52, %v1870_v52  ;;  %v1247_v57 = vadd.f32 %v2901_v34, %v1246_v53  ;;  %v1726_v58 = vadd.f32 %v2901_v34, %v1725_v54  ;;  %v339_v59 = vpop.f32.mrf.mxu0  ;;  %v769_v60 = vpop.f32.mrf.mxu1  ;;  %v2737_v52 = vld [vmem:[%s3573_s0 + $0x2e4] sm:$0xff] }
 0x11f   :  { %v340_v63 = vadd.f32 %v2901_v34, %v339_v59  ;;  %v770_v0 = vadd.f32 %v2901_v34, %v769_v60 }
 0x120   :  { %1969 = vst.msk [vmem:[%s3575_s3 + $0x44] sm:$0xf] %vm1951_vm1, %v1919_v55  ;;  %v1343_v61 = vmax.f32 %v1247_v57, 0.0  ;;  %v1822_v62 = vmax.f32 %v1726_v58, 0.0 }
 0x121   :  { %v435_v3 = vmax.f32 %v340_v63, 0.0  ;;  %v865_v4 = vmax.f32 %v770_v0, 0.0 }
 0x122   :  { %v1392_v1 = vmax.f32 %v913_v56, %v1343_v61 }
 0x123   :  { %v914_v18 = vmax.f32 %v435_v3, %v865_v4 }
 0x124   :  { %v1871_v2 = vmax.f32 %v1392_v1, %v1822_v62 }
 0x125   :  { %v1248_v5 = vpop.f32.mrf.mxu2  ;;  %v1727_v6 = vpop.f32.mrf.mxu3 }
 0x126   :  { %v1920_v9 = vpack.c.bf16 %v1871_v2, %v1871_v2  ;;  %v1249_v10 = vadd.f32 %v2901_v34, %v1248_v5  ;;  %v1728_v11 = vadd.f32 %v2901_v34, %v1727_v6  ;;  %v342_v12 = vpop.f32.mrf.mxu0  ;;  %v772_v13 = vpop.f32.mrf.mxu1 }
 0x127   :  { %v343_v16 = vadd.f32 %v2901_v34, %v342_v12  ;;  %v773_v17 = vadd.f32 %v2901_v34, %v772_v13 }
 0x128   :  { %1970 = vst.msk [vmem:[%s3575_s3 + $0x48] sm:$0xf] %vm1951_vm1, %v1920_v9  ;;  %v1344_v19 = vmax.f32 %v1249_v10, 0.0  ;;  %v1823_v21 = vmax.f32 %v1728_v11, 0.0 }
 0x129   :  { %2127 = vmatmul.msk.bf16.gmra.mxu0 %vm207_vm0, %v2664_v7  ;;  %2297 = vmatmul.msk.bf16.gmra.mxu1 %vm207_vm0, %v2688_v8  ;;  %v436_v22 = vmax.f32 %v343_v16, 0.0  ;;  %v866_v23 = vmax.f32 %v773_v17, 0.0  ;;  %v2666_v16 = vld [vmem:[%s3573_s0 + $0xa0] sm:$0xff] }
 0x12a   :  { %v1393_v20 = vmax.f32 %v914_v18, %v1344_v19  ;;  %2467 = vmatmul.msk.bf16.gmra.mxu2 %vm207_vm0, %v2712_v14  ;;  %2637 = vmatmul.msk.bf16.gmra.mxu3 %vm207_vm0, %v2736_v15  ;;  %v2690_v17 = vld [vmem:[%s3573_s0 + $0x164] sm:$0xff] }
 0x12b   :  { %v915_v28 = vmax.f32 %v436_v22, %v866_v23  ;;  %v2714_v23 = vld [vmem:[%s3573_s0 + $0x228] sm:$0xff] }
 0x12c   :  { %v1872_v24 = vmax.f32 %v1393_v20, %v1823_v21 }
 0x12d   :  { %v1251_v25 = vpop.f32.mrf.mxu2  ;;  %v1730_v26 = vpop.f32.mrf.mxu3 }
 0x12e   :  { %v1921_v27 = vpack.c.bf16 %v1872_v24, %v1872_v24  ;;  %v1252_v29 = vadd.f32 %v2901_v34, %v1251_v25  ;;  %v1731_v30 = vadd.f32 %v2901_v34, %v1730_v26  ;;  %v344_v31 = vpop.f32.mrf.mxu0  ;;  %v774_v32 = vpop.f32.mrf.mxu1  ;;  %v2738_v24 = vld [vmem:[%s3573_s0 + $0x2ec] sm:$0xff] }
 0x12f   :  { %v345_v36 = vadd.f32 %v2901_v34, %v344_v31  ;;  %v775_v37 = vadd.f32 %v2901_v34, %v774_v32 }
 0x130   :  { %1971 = vst.msk [vmem:[%s3575_s3 + $0x4c] sm:$0xf] %vm1951_vm1, %v1921_v27  ;;  %v1345_v33 = vmax.f32 %v1252_v29, 0.0  ;;  %v1824_v35 = vmax.f32 %v1731_v30, 0.0 }
 0x131   :  { %v437_v40 = vmax.f32 %v345_v36, 0.0  ;;  %v867_v41 = vmax.f32 %v775_v37, 0.0 }
 0x132   :  { %v1394_v38 = vmax.f32 %v915_v28, %v1345_v33 }
 0x133   :  { %v916_v55 = vmax.f32 %v437_v40, %v867_v41 }
 0x134   :  { %v1873_v39 = vmax.f32 %v1394_v38, %v1824_v35  ;;  %v3304_v38 = vld [vmem:[%s3574_s2] ss:$0 sm:$0xff] }
 0x135   :  { %v1253_v42 = vpop.f32.mrf.mxu2  ;;  %v1732_v43 = vpop.f32.mrf.mxu3 }
 0x136   :  { %v1922_v46 = vpack.c.bf16 %v1873_v39, %v1873_v39  ;;  %v1254_v47 = vadd.f32 %v2901_v34, %v1253_v42  ;;  %v1733_v48 = vadd.f32 %v2901_v34, %v1732_v43  ;;  %v347_v49 = vpop.f32.mrf.mxu0  ;;  %v777_v50 = vpop.f32.mrf.mxu1 }
 0x137   :  { %v348_v53 = vadd.f32 %v2901_v34, %v347_v49  ;;  %v778_v54 = vadd.f32 %v2901_v34, %v777_v50 }
 0x138   :  { %1972 = vst.msk [vmem:[%s3575_s3 + $0x50] sm:$0xf] %vm1951_vm1, %v1922_v46  ;;  %v1346_v56 = vmax.f32 %v1254_v47, 0.0  ;;  %v1825_v58 = vmax.f32 %v1733_v48, 0.0 }
 0x139   :  { %2128 = vmatmul.msk.bf16.gmra.mxu0 %vm207_vm0, %v2665_v44  ;;  %2298 = vmatmul.msk.bf16.gmra.mxu1 %vm207_vm0, %v2689_v45  ;;  %v438_v59 = vmax.f32 %v348_v53, 0.0  ;;  %v868_v60 = vmax.f32 %v778_v54, 0.0  ;;  %v2667_v53 = vld [vmem:[%s3573_s0 + $0xa8] sm:$0xff] }
 0x13a   :  { %v1395_v57 = vmax.f32 %v916_v55, %v1346_v56  ;;  %2468 = vmatmul.msk.bf16.gmra.mxu2 %vm207_vm0, %v2713_v51  ;;  %2638 = vmatmul.msk.bf16.gmra.mxu3 %vm207_vm0, %v2737_v52  ;;  %v2691_v54 = vld [vmem:[%s3573_s0 + $0x16c] sm:$0xff] }
 0x13b   :  { %v917_v1 = vmax.f32 %v438_v59, %v868_v60  ;;  %v2715_v60 = vld [vmem:[%s3573_s0 + $0x230] sm:$0xff] }
 0x13c   :  { %v1874_v61 = vmax.f32 %v1395_v57, %v1825_v58 }
 0x13d   :  { %v1256_v62 = vpop.f32.mrf.mxu2  ;;  %v1735_v63 = vpop.f32.mrf.mxu3 }
 0x13e   :  { %v1923_v0 = vpack.c.bf16 %v1874_v61, %v1874_v61  ;;  %v1257_v2 = vadd.f32 %v2901_v34, %v1256_v62  ;;  %v1736_v3 = vadd.f32 %v2901_v34, %v1735_v63  ;;  %v349_v4 = vpop.f32.mrf.mxu0  ;;  %v779_v5 = vpop.f32.mrf.mxu1  ;;  %v2739_v61 = vld [vmem:[%s3573_s0 + $0x2f4] sm:$0xff] }
 0x13f   :  { %v350_v8 = vadd.f32 %v2901_v34, %v349_v4  ;;  %v780_v9 = vadd.f32 %v2901_v34, %v779_v5 }
 0x140   :  { %1973 = vst.msk [vmem:[%s3575_s3 + $0x54] sm:$0xf] %vm1951_vm1, %v1923_v0  ;;  %v1347_v6 = vmax.f32 %v1257_v2, 0.0  ;;  %v1826_v7 = vmax.f32 %v1736_v3, 0.0 }
 0x141   :  { %v439_v12 = vmax.f32 %v350_v8, 0.0  ;;  %v869_v13 = vmax.f32 %v780_v9, 0.0 }
 0x142   :  { %v1396_v10 = vmax.f32 %v917_v1, %v1347_v6 }
 0x143   :  { %v918_v27 = vmax.f32 %v439_v12, %v869_v13 }
 0x144   :  { %v1875_v11 = vmax.f32 %v1396_v10, %v1826_v7 }
 0x145   :  { %v1258_v14 = vpop.f32.mrf.mxu2  ;;  %v1737_v15 = vpop.f32.mrf.mxu3 }
 0x146   :  { %v1924_v18 = vpack.c.bf16 %v1875_v11, %v1875_v11  ;;  %v1259_v19 = vadd.f32 %v2901_v34, %v1258_v14  ;;  %v1738_v20 = vadd.f32 %v2901_v34, %v1737_v15  ;;  %v352_v21 = vpop.f32.mrf.mxu0  ;;  %v782_v22 = vpop.f32.mrf.mxu1 }
 0x147   :  { %v353_v25 = vadd.f32 %v2901_v34, %v352_v21  ;;  %v783_v26 = vadd.f32 %v2901_v34, %v782_v22 }
 0x148   :  { %1974 = vst.msk [vmem:[%s3575_s3 + $0x58] sm:$0xf] %vm1951_vm1, %v1924_v18  ;;  %v1348_v28 = vmax.f32 %v1259_v19, 0.0  ;;  %v1827_v30 = vmax.f32 %v1738_v20, 0.0 }
 0x149   :  { %2129 = vmatmul.msk.bf16.gmra.mxu0 %vm207_vm0, %v2666_v16  ;;  %2299 = vmatmul.msk.bf16.gmra.mxu1 %vm207_vm0, %v2690_v17  ;;  %v440_v31 = vmax.f32 %v353_v25, 0.0  ;;  %v870_v32 = vmax.f32 %v783_v26, 0.0  ;;  %v2668_v25 = vld [vmem:[%s3573_s0 + $0xb0] sm:$0xff] }
 0x14a   :  { %v1397_v29 = vmax.f32 %v918_v27, %v1348_v28  ;;  %2469 = vmatmul.msk.bf16.gmra.mxu2 %vm207_vm0, %v2714_v23  ;;  %2639 = vmatmul.msk.bf16.gmra.mxu3 %vm207_vm0, %v2738_v24  ;;  %v2692_v26 = vld [vmem:[%s3573_s0 + $0x174] sm:$0xff] }
 0x14b   :  { %v919_v37 = vmax.f32 %v440_v31, %v870_v32  ;;  %v2716_v32 = vld [vmem:[%s3573_s0 + $0x238] sm:$0xff] }
 0x14c   :  { %v1876_v34 = vmax.f32 %v1397_v29, %v1827_v30 }
 0x14d   :  { %v1261_v33 = vpop.f32.mrf.mxu2  ;;  %v1740_v35 = vpop.f32.mrf.mxu3 }
 0x14e   :  { %v1925_v36 = vpack.c.bf16 %v1876_v34, %v1876_v34  ;;  %v1262_v39 = vadd.f32 %v3304_v38, %v1261_v33  ;;  %v1741_v40 = vadd.f32 %v3304_v38, %v1740_v35  ;;  %v354_v41 = vpop.f32.mrf.mxu0  ;;  %v784_v42 = vpop.f32.mrf.mxu1  ;;  %v2740_v34 = vld [vmem:[%s3573_s0 + $0x2fc] sm:$0xff] }
 0x14f   :  { %v355_v45 = vadd.f32 %v3304_v38, %v354_v41  ;;  %v785_v46 = vadd.f32 %v3304_v38, %v784_v42 }
 0x150   :  { %1975 = vst.msk [vmem:[%s3575_s3 + $0x5c] sm:$0xf] %vm1951_vm1, %v1925_v36  ;;  %v1349_v43 = vmax.f32 %v1262_v39, 0.0  ;;  %v1828_v44 = vmax.f32 %v1741_v40, 0.0 }
 0x151   :  { %v441_v49 = vmax.f32 %v355_v45, 0.0  ;;  %v871_v50 = vmax.f32 %v785_v46, 0.0 }
 0x152   :  { %v1398_v47 = vmax.f32 %v919_v37, %v1349_v43 }
 0x153   :  { %v920_v0 = vmax.f32 %v441_v49, %v871_v50 }
 0x154   :  { %v1877_v48 = vmax.f32 %v1398_v47, %v1828_v44 }
 0x155   :  { %v1263_v51 = vpop.f32.mrf.mxu2  ;;  %v1742_v52 = vpop.f32.mrf.mxu3 }
 0x156   :  { %v1926_v55 = vpack.c.bf16 %v1877_v48, %v1877_v48  ;;  %v1264_v56 = vadd.f32 %v3304_v38, %v1263_v51  ;;  %v1743_v57 = vadd.f32 %v3304_v38, %v1742_v52  ;;  %v357_v58 = vpop.f32.mrf.mxu0  ;;  %v787_v59 = vpop.f32.mrf.mxu1 }
 0x157   :  { %v358_v62 = vadd.f32 %v3304_v38, %v357_v58  ;;  %v788_v63 = vadd.f32 %v3304_v38, %v787_v59 }
 0x158   :  { %1976 = vst.msk [vmem:[%s3575_s3 + $0x60] sm:$0xf] %vm1951_vm1, %v1926_v55  ;;  %v1350_v1 = vmax.f32 %v1264_v56, 0.0  ;;  %v1829_v3 = vmax.f32 %v1743_v57, 0.0 }
 0x159   :  { %2130 = vmatmul.msk.bf16.gmra.mxu0 %vm207_vm0, %v2667_v53  ;;  %2300 = vmatmul.msk.bf16.gmra.mxu1 %vm207_vm0, %v2691_v54  ;;  %v442_v4 = vmax.f32 %v358_v62, 0.0  ;;  %v872_v5 = vmax.f32 %v788_v63, 0.0  ;;  %v2669_v62 = vld [vmem:[%s3573_s0 + $0xb8] sm:$0xff] }
 0x15a   :  { %v1399_v2 = vmax.f32 %v920_v0, %v1350_v1  ;;  %2470 = vmatmul.msk.bf16.gmra.mxu2 %vm207_vm0, %v2715_v60  ;;  %2640 = vmatmul.msk.bf16.gmra.mxu3 %vm207_vm0, %v2739_v61  ;;  %v2693_v63 = vld [vmem:[%s3573_s0 + $0x17c] sm:$0xff] }
 0x15b   :  { %v921_v10 = vmax.f32 %v442_v4, %v872_v5  ;;  %v2717_v5 = vld [vmem:[%s3573_s0 + $0x240] sm:$0xff] }
 0x15c   :  { %v1878_v6 = vmax.f32 %v1399_v2, %v1829_v3 }
 0x15d   :  { %v1266_v7 = vpop.f32.mrf.mxu2  ;;  %v1745_v8 = vpop.f32.mrf.mxu3 }
 0x15e   :  { %v1927_v9 = vpack.c.bf16 %v1878_v6, %v1878_v6  ;;  %v1267_v11 = vadd.f32 %v3304_v38, %v1266_v7  ;;  %v1746_v12 = vadd.f32 %v3304_v38, %v1745_v8  ;;  %v359_v13 = vpop.f32.mrf.mxu0  ;;  %v789_v14 = vpop.f32.mrf.mxu1  ;;  %v2741_v6 = vld [vmem:[%s3573_s0 + $0x304] sm:$0xff] }
 0x15f   :  { %v360_v17 = vadd.f32 %v3304_v38, %v359_v13  ;;  %v790_v18 = vadd.f32 %v3304_v38, %v789_v14 }
 0x160   :  { %1977 = vst.msk [vmem:[%s3575_s3 + $0x64] sm:$0xf] %vm1951_vm1, %v1927_v9  ;;  %v1351_v15 = vmax.f32 %v1267_v11, 0.0  ;;  %v1830_v16 = vmax.f32 %v1746_v12, 0.0 }
 0x161   :  { %v443_v21 = vmax.f32 %v360_v17, 0.0  ;;  %v873_v22 = vmax.f32 %v790_v18, 0.0 }
 0x162   :  { %v1400_v19 = vmax.f32 %v921_v10, %v1351_v15 }
 0x163   :  { %v922_v36 = vmax.f32 %v443_v21, %v873_v22 }
 0x164   :  { %v1879_v20 = vmax.f32 %v1400_v19, %v1830_v16 }
 0x165   :  { %v1268_v23 = vpop.f32.mrf.mxu2  ;;  %v1747_v24 = vpop.f32.mrf.mxu3 }
 0x166   :  { %v1928_v27 = vpack.c.bf16 %v1879_v20, %v1879_v20  ;;  %v1269_v28 = vadd.f32 %v3304_v38, %v1268_v23  ;;  %v1748_v29 = vadd.f32 %v3304_v38, %v1747_v24  ;;  %v362_v30 = vpop.f32.mrf.mxu0  ;;  %v792_v31 = vpop.f32.mrf.mxu1  ;;  %v68_v24 = vld [vmem:[%s3573_s0 + $0xc0] sm:$0xf] }
 0x167   :  { %v363_v33 = vadd.f32 %v3304_v38, %v362_v30  ;;  %v793_v35 = vadd.f32 %v3304_v38, %v792_v31 }
 0x168   :  { %1978 = vst.msk [vmem:[%s3575_s3 + $0x68] sm:$0xf] %vm1951_vm1, %v1928_v27  ;;  %v1352_v37 = vmax.f32 %v1269_v28, 0.0  ;;  %v1831_v40 = vmax.f32 %v1748_v29, 0.0  ;;  %v2522_v27 = vld [vmem:[%s3573_s0 + $0x30c] sm:$0xf] }
 0x169   :  { %2131 = vmatmul.msk.bf16.gmra.mxu0 %vm207_vm0, %v2668_v25  ;;  %2301 = vmatmul.msk.bf16.gmra.mxu1 %vm207_vm0, %v2692_v26  ;;  %v444_v41 = vmax.f32 %v363_v33, 0.0  ;;  %v874_v42 = vmax.f32 %v793_v35, 0.0  ;;  %v2182_v25 = vld [vmem:[%s3573_s0 + $0x184] sm:$0xf]  ;;  %v2352_v26 = vld [vmem:[%s3573_s0 + $0x248] sm:$0xf] }
 0x16a   :  { %v1401_v39 = vmax.f32 %v922_v36, %v1352_v37  ;;  %2471 = vmatmul.msk.bf16.gmra.mxu2 %vm207_vm0, %v2716_v32  ;;  %2641 = vmatmul.msk.bf16.gmra.mxu3 %vm207_vm0, %v2740_v34  ;;  %v169_v32 = vunpack.c.l.b16 %v68_v24  ;;  %v612_v34 = vunpack.c.l.b16 %v2182_v25  ;;  %v1091_v33 = vunpack.c.l.b16 %v2352_v26 }
 0x16b   :  { %v923_v47 = vmax.f32 %v444_v41, %v874_v42  ;;  %v1570_v36 = vunpack.c.l.b16 %v2522_v27 }
 0x16c   :  { %v1880_v43 = vmax.f32 %v1401_v39, %v1831_v40 }
 0x16d   :  { %v1271_v44 = vpop.f32.mrf.mxu2  ;;  %v1750_v45 = vpop.f32.mrf.mxu3 }
 0x16e   :  { %v1929_v46 = vpack.c.bf16 %v1880_v43, %v1880_v43  ;;  %v1272_v48 = vadd.f32 %v3304_v38, %v1271_v44  ;;  %v1751_v49 = vadd.f32 %v3304_v38, %v1750_v45  ;;  %v364_v50 = vpop.f32.mrf.mxu0  ;;  %v794_v51 = vpop.f32.mrf.mxu1  ;;  %v194_v43 = vpack.c.b16 %v169_v32, %v169_v32 }
 0x16f   :  { %v365_v54 = vadd.f32 %v3304_v38, %v364_v50  ;;  %v795_v55 = vadd.f32 %v3304_v38, %v794_v51  ;;  %v637_v44 = vpack.c.b16 %v612_v34, %v612_v34  ;;  %v1116_v45 = vpack.c.b16 %v1091_v33, %v1091_v33 }
 0x170   :  { %1979 = vst.msk [vmem:[%s3575_s3 + $0x6c] sm:$0xf] %vm1951_vm1, %v1929_v46  ;;  %v1353_v52 = vmax.f32 %v1272_v48, 0.0  ;;  %v1832_v53 = vmax.f32 %v1751_v49, 0.0  ;;  %v1595_v51 = vpack.c.b16 %v1570_v36, %v1570_v36 }
 0x171   :  { %v445_v58 = vmax.f32 %v365_v54, 0.0  ;;  %v875_v59 = vmax.f32 %v795_v55, 0.0 }
 0x172   :  { %v1402_v56 = vmax.f32 %v923_v47, %v1353_v52 }
 0x173   :  { %v924_v9 = vmax.f32 %v445_v58, %v875_v59 }
 0x174   :  { %v1881_v57 = vmax.f32 %v1402_v56, %v1832_v53 }
 0x175   :  { %v1273_v60 = vpop.f32.mrf.mxu2  ;;  %v1752_v61 = vpop.f32.mrf.mxu3 }
 0x176   :  { %v1930_v0 = vpack.c.bf16 %v1881_v57, %v1881_v57  ;;  %v1274_v1 = vadd.f32 %v3304_v38, %v1273_v60  ;;  %v1753_v2 = vadd.f32 %v3304_v38, %v1752_v61  ;;  %v367_v3 = vpop.f32.mrf.mxu0  ;;  %v797_v4 = vpop.f32.mrf.mxu1 }
 0x177   :  { %v368_v7 = vadd.f32 %v3304_v38, %v367_v3  ;;  %v798_v8 = vadd.f32 %v3304_v38, %v797_v4 }
 0x178   :  { %1980 = vst.msk [vmem:[%s3575_s3 + $0x70] sm:$0xf] %vm1951_vm1, %v1930_v0  ;;  %v1354_v10 = vmax.f32 %v1274_v1, 0.0  ;;  %v1833_v12 = vmax.f32 %v1753_v2, 0.0 }
 0x179   :  { %2132 = vmatmul.msk.bf16.gmra.mxu0 %vm207_vm0, %v2669_v62  ;;  %2302 = vmatmul.msk.bf16.gmra.mxu1 %vm207_vm0, %v2693_v63  ;;  %v446_v13 = vmax.f32 %v368_v7, 0.0  ;;  %v876_v14 = vmax.f32 %v798_v8, 0.0 }
 0x17a   :  { %v1403_v11 = vmax.f32 %v924_v9, %v1354_v10  ;;  %2472 = vmatmul.msk.bf16.gmra.mxu2 %vm207_vm0, %v2717_v5  ;;  %2642 = vmatmul.msk.bf16.gmra.mxu3 %vm207_vm0, %v2741_v6 }
 0x17b   :  { %v925_v19 = vmax.f32 %v446_v13, %v876_v14 }
 0x17c   :  { %v1882_v15 = vmax.f32 %v1403_v11, %v1833_v12 }
 0x17d   :  { %v1276_v16 = vpop.f32.mrf.mxu2  ;;  %v1755_v17 = vpop.f32.mrf.mxu3 }
 0x17e   :  { %v1931_v18 = vpack.c.bf16 %v1882_v15, %v1882_v15  ;;  %v1277_v20 = vadd.f32 %v3304_v38, %v1276_v16  ;;  %v1756_v21 = vadd.f32 %v3304_v38, %v1755_v17  ;;  %v369_v22 = vpop.f32.mrf.mxu0  ;;  %v799_v23 = vpop.f32.mrf.mxu1 }
 0x17f   :  { %v370_v30 = vadd.f32 %v3304_v38, %v369_v22  ;;  %v800_v31 = vadd.f32 %v3304_v38, %v799_v23 }
 0x180   :  { %1981 = vst.msk [vmem:[%s3575_s3 + $0x74] sm:$0xf] %vm1951_vm1, %v1931_v18  ;;  %v1355_v28 = vmax.f32 %v1277_v20, 0.0  ;;  %v1834_v29 = vmax.f32 %v1756_v21, 0.0 }
 0x181   :  { %v447_v39 = vmax.f32 %v370_v30, 0.0  ;;  %v877_v40 = vmax.f32 %v800_v31, 0.0 }
 0x182   :  { %v1404_v35 = vmax.f32 %v925_v19, %v1355_v28 }
 0x183   :  { %v926_v54 = vmax.f32 %v447_v39, %v877_v40 }
 0x184   :  { %v1883_v37 = vmax.f32 %v1404_v35, %v1834_v29 }
 0x185   :  { %v1278_v41 = vpop.f32.mrf.mxu2  ;;  %v1757_v42 = vpop.f32.mrf.mxu3 }
 0x186   :  { %v1932_v46 = vpack.c.bf16 %v1883_v37, %v1883_v37  ;;  %v1279_v47 = vadd.f32 %v3304_v38, %v1278_v41  ;;  %v1758_v48 = vadd.f32 %v3304_v38, %v1757_v42  ;;  %v372_v49 = vpop.f32.mrf.mxu0  ;;  %v802_v50 = vpop.f32.mrf.mxu1 }
 0x187   :  { %v373_v52 = vadd.f32 %v3304_v38, %v372_v49  ;;  %v803_v53 = vadd.f32 %v3304_v38, %v802_v50 }
 0x188   :  { %1982 = vst.msk [vmem:[%s3575_s3 + $0x78] sm:$0xf] %vm1951_vm1, %v1932_v46  ;;  %v1356_v55 = vmax.f32 %v1279_v47, 0.0  ;;  %v1835_v57 = vmax.f32 %v1758_v48, 0.0 }
 0x189   :  { %2133 = vmatmul.msk.bf16.gmra.mxu0 %vm207_vm0, %v194_v43  ;;  %2303 = vmatmul.msk.bf16.gmra.mxu1 %vm207_vm0, %v637_v44  ;;  %v448_v58 = vmax.f32 %v373_v52, 0.0  ;;  %v878_v59 = vmax.f32 %v803_v53, 0.0 }
 0x18a   :  { %v1405_v56 = vmax.f32 %v926_v54, %v1356_v55  ;;  %2473 = vmatmul.msk.bf16.gmra.mxu2 %vm207_vm0, %v1116_v45  ;;  %2643 = vmatmul.msk.bf16.gmra.mxu3 %vm207_vm0, %v1595_v51 }
 0x18b   :  { %v927_v0 = vmax.f32 %v448_v58, %v878_v59 }
 0x18c   :  { %v1884_v60 = vmax.f32 %v1405_v56, %v1835_v57 }
 0x18d   :  { %v1281_v61 = vpop.f32.mrf.mxu2  ;;  %v1760_v62 = vpop.f32.mrf.mxu3 }
 0x18e   :  { %v1933_v63 = vpack.c.bf16 %v1884_v60, %v1884_v60  ;;  %v1282_v1 = vadd.f32 %v3304_v38, %v1281_v61  ;;  %v1761_v2 = vadd.f32 %v3304_v38, %v1760_v62  ;;  %v374_v3 = vpop.f32.mrf.mxu0  ;;  %v804_v4 = vpop.f32.mrf.mxu1 }
 0x18f   :  { %v375_v7 = vadd.f32 %v3304_v38, %v374_v3  ;;  %v805_v8 = vadd.f32 %v3304_v38, %v804_v4 }
 0x190   :  { %1983 = vst.msk [vmem:[%s3575_s3 + $0x7c] sm:$0xf] %vm1951_vm1, %v1933_v63  ;;  %v1357_v5 = vmax.f32 %v1282_v1, 0.0  ;;  %v1836_v6 = vmax.f32 %v1761_v2, 0.0 }
 0x191   :  { %v449_v11 = vmax.f32 %v375_v7, 0.0  ;;  %v879_v12 = vmax.f32 %v805_v8, 0.0 }
 0x192   :  { %v1406_v9 = vmax.f32 %v927_v0, %v1357_v5 }
 0x193   :  { %v928_v22 = vmax.f32 %v449_v11, %v879_v12 }
 0x194   :  { %v1885_v10 = vmax.f32 %v1406_v9, %v1836_v6 }
 0x195   :  { %v1283_v13 = vpop.f32.mrf.mxu2  ;;  %v1762_v14 = vpop.f32.mrf.mxu3 }
 0x196   :  { %v1934_v15 = vpack.c.bf16 %v1885_v10, %v1885_v10  ;;  %v1284_v16 = vadd.f32 %v3304_v38, %v1283_v13  ;;  %v1763_v17 = vadd.f32 %v3304_v38, %v1762_v14  ;;  %v377_v18 = vpop.f32.mrf.mxu0  ;;  %v807_v19 = vpop.f32.mrf.mxu1 }
 0x197   :  { %v378_v20 = vadd.f32 %v3304_v38, %v377_v18  ;;  %v808_v21 = vadd.f32 %v3304_v38, %v807_v19 }
 0x198   :  { %1984 = vst.msk [vmem:[%s3575_s3 + $0x80] sm:$0xf] %vm1951_vm1, %v1934_v15  ;;  %v1358_v23 = vmax.f32 %v1284_v16, 0.0  ;;  %v1837_v25 = vmax.f32 %v1763_v17, 0.0 }
 0x199   :  { %v450_v26 = vmax.f32 %v378_v20, 0.0  ;;  %v880_v27 = vmax.f32 %v808_v21, 0.0 }
 0x19a   :  { %v1407_v24 = vmax.f32 %v928_v22, %v1358_v23 }
 0x19b   :  { %v929_v32 = vmax.f32 %v450_v26, %v880_v27 }
 0x19c   :  { %v1886_v28 = vmax.f32 %v1407_v24, %v1837_v25 }
 0x19d   :  { %v1286_v29 = vpop.f32.mrf.mxu2  ;;  %v1765_v30 = vpop.f32.mrf.mxu3 }
 0x19e   :  { %v1935_v31 = vpack.c.bf16 %v1886_v28, %v1886_v28  ;;  %v1287_v34 = vadd.f32 %v3304_v38, %v1286_v29  ;;  %v1766_v33 = vadd.f32 %v3304_v38, %v1765_v30  ;;  %v379_v35 = vpop.f32.mrf.mxu0  ;;  %v809_v36 = vpop.f32.mrf.mxu1 }
 0x19f   :  { %v380_v40 = vadd.f32 %v3304_v38, %v379_v35  ;;  %v810_v41 = vadd.f32 %v3304_v38, %v809_v36 }
 0x1a0   :  { %1985 = vst.msk [vmem:[%s3575_s3 + $0x84] sm:$0xf] %vm1951_vm1, %v1935_v31  ;;  %v1359_v37 = vmax.f32 %v1287_v34, 0.0  ;;  %v1838_v39 = vmax.f32 %v1766_v33, 0.0 }
 0x1a1   :  { %v451_v44 = vmax.f32 %v380_v40, 0.0  ;;  %v881_v45 = vmax.f32 %v810_v41, 0.0 }
 0x1a2   :  { %v1408_v42 = vmax.f32 %v929_v32, %v1359_v37 }
 0x1a3   :  { %v930_v55 = vmax.f32 %v451_v44, %v881_v45 }
 0x1a4   :  { %v1887_v43 = vmax.f32 %v1408_v42, %v1838_v39 }
 0x1a5   :  { %v1288_v46 = vpop.f32.mrf.mxu2  ;;  %v1767_v47 = vpop.f32.mrf.mxu3 }
 0x1a6   :  { %v1936_v48 = vpack.c.bf16 %v1887_v43, %v1887_v43  ;;  %v1289_v49 = vadd.f32 %v3304_v38, %v1288_v46  ;;  %v1768_v50 = vadd.f32 %v3304_v38, %v1767_v47  ;;  %v382_v51 = vpop.f32.mrf.mxu0  ;;  %v812_v52 = vpop.f32.mrf.mxu1 }
 0x1a7   :  { %v383_v53 = vadd.f32 %v3304_v38, %v382_v51  ;;  %v813_v54 = vadd.f32 %v3304_v38, %v812_v52 }
 0x1a8   :  { %1986 = vst.msk [vmem:[%s3575_s3 + $0x88] sm:$0xf] %vm1951_vm1, %v1936_v48  ;;  %v1360_v56 = vmax.f32 %v1289_v49, 0.0  ;;  %v1839_v58 = vmax.f32 %v1768_v50, 0.0 }
 0x1a9   :  { %v452_v59 = vmax.f32 %v383_v53, 0.0  ;;  %v882_v60 = vmax.f32 %v813_v54, 0.0 }
 0x1aa   :  { %v1409_v57 = vmax.f32 %v930_v55, %v1360_v56 }
 0x1ab   :  { %v931_v1 = vmax.f32 %v452_v59, %v882_v60 }
 0x1ac   :  { %v1888_v61 = vmax.f32 %v1409_v57, %v1839_v58 }
 0x1ad   :  { %v1291_v62 = vpop.f32.mrf.mxu2  ;;  %v1770_v63 = vpop.f32.mrf.mxu3 }
 0x1ae   :  { %v1937_v0 = vpack.c.bf16 %v1888_v61, %v1888_v61  ;;  %v1292_v2 = vadd.f32 %v3304_v38, %v1291_v62  ;;  %v1771_v3 = vadd.f32 %v3304_v38, %v1770_v63  ;;  %v384_v4 = vpop.f32.mrf.mxu0  ;;  %v814_v5 = vpop.f32.mrf.mxu1 }
 0x1af   :  { %v385_v8 = vadd.f32 %v3304_v38, %v384_v4  ;;  %v815_v9 = vadd.f32 %v3304_v38, %v814_v5 }
 0x1b0   :  { %1987 = vst.msk [vmem:[%s3575_s3 + $0x8c] sm:$0xf] %vm1951_vm1, %v1937_v0  ;;  %v1361_v6 = vmax.f32 %v1292_v2, 0.0  ;;  %v1840_v7 = vmax.f32 %v1771_v3, 0.0 }
 0x1b1   :  { %v453_v12 = vmax.f32 %v385_v8, 0.0  ;;  %v883_v13 = vmax.f32 %v815_v9, 0.0 }
 0x1b2   :  { %v1410_v10 = vmax.f32 %v931_v1, %v1361_v6 }
 0x1b3   :  { %v932_v23 = vmax.f32 %v453_v12, %v883_v13 }
 0x1b4   :  { %v1889_v11 = vmax.f32 %v1410_v10, %v1840_v7 }
 0x1b5   :  { %v1293_v14 = vpop.f32.mrf.mxu2  ;;  %v1772_v15 = vpop.f32.mrf.mxu3 }
 0x1b6   :  { %v1938_v16 = vpack.c.bf16 %v1889_v11, %v1889_v11  ;;  %v1294_v17 = vadd.f32 %v3304_v38, %v1293_v14  ;;  %v1773_v18 = vadd.f32 %v3304_v38, %v1772_v15  ;;  %v387_v19 = vpop.f32.mrf.mxu0  ;;  %v817_v20 = vpop.f32.mrf.mxu1 }
 0x1b7   :  { %v388_v21 = vadd.f32 %v3304_v38, %v387_v19  ;;  %v818_v22 = vadd.f32 %v3304_v38, %v817_v20 }
 0x1b8   :  { %1988 = vst.msk [vmem:[%s3575_s3 + $0x90] sm:$0xf] %vm1951_vm1, %v1938_v16  ;;  %v1362_v24 = vmax.f32 %v1294_v17, 0.0  ;;  %v1841_v26 = vmax.f32 %v1773_v18, 0.0 }
 0x1b9   :  { %v454_v27 = vmax.f32 %v388_v21, 0.0  ;;  %v884_v28 = vmax.f32 %v818_v22, 0.0 }
 0x1ba   :  { %v1411_v25 = vmax.f32 %v932_v23, %v1362_v24 }
 0x1bb   :  { %v933_v34 = vmax.f32 %v454_v27, %v884_v28 }
 0x1bc   :  { %v1890_v29 = vmax.f32 %v1411_v25, %v1841_v26 }
 0x1bd   :  { %v1296_v30 = vpop.f32.mrf.mxu2  ;;  %v1775_v31 = vpop.f32.mrf.mxu3 }
 0x1be   :  { %v1939_v32 = vpack.c.bf16 %v1890_v29, %v1890_v29  ;;  %v1297_v33 = vadd.f32 %v3304_v38, %v1296_v30  ;;  %v1776_v35 = vadd.f32 %v3304_v38, %v1775_v31  ;;  %v389_v36 = vpop.f32.mrf.mxu0  ;;  %v819_v37 = vpop.f32.mrf.mxu1 }
 0x1bf   :  { %v390_v41 = vadd.f32 %v3304_v38, %v389_v36  ;;  %v820_v42 = vadd.f32 %v3304_v38, %v819_v37 }
 0x1c0   :  { %1989 = vst.msk [vmem:[%s3575_s3 + $0x94] sm:$0xf] %vm1951_vm1, %v1939_v32  ;;  %v1363_v39 = vmax.f32 %v1297_v33, 0.0  ;;  %v1842_v40 = vmax.f32 %v1776_v35, 0.0 }
 0x1c1   :  { %v455_v45 = vmax.f32 %v390_v41, 0.0  ;;  %v885_v46 = vmax.f32 %v820_v42, 0.0 }
 0x1c2   :  { %v1412_v43 = vmax.f32 %v933_v34, %v1363_v39 }
 0x1c3   :  { %v934_v56 = vmax.f32 %v455_v45, %v885_v46 }
 0x1c4   :  { %v1891_v44 = vmax.f32 %v1412_v43, %v1842_v40 }
 0x1c5   :  { %v1298_v47 = vpop.f32.mrf.mxu2  ;;  %v1777_v48 = vpop.f32.mrf.mxu3 }
 0x1c6   :  { %v1940_v49 = vpack.c.bf16 %v1891_v44, %v1891_v44  ;;  %v1299_v50 = vadd.f32 %v3304_v38, %v1298_v47  ;;  %v1778_v51 = vadd.f32 %v3304_v38, %v1777_v48  ;;  %v392_v52 = vpop.f32.mrf.mxu0  ;;  %v822_v53 = vpop.f32.mrf.mxu1 }
 0x1c7   :  { %v393_v54 = vadd.f32 %v3304_v38, %v392_v52  ;;  %v823_v55 = vadd.f32 %v3304_v38, %v822_v53 }
 0x1c8   :  { %1990 = vst.msk [vmem:[%s3575_s3 + $0x98] sm:$0xf] %vm1951_vm1, %v1940_v49  ;;  %v1364_v57 = vmax.f32 %v1299_v50, 0.0  ;;  %v1843_v59 = vmax.f32 %v1778_v51, 0.0 }
 0x1c9   :  { %v456_v60 = vmax.f32 %v393_v54, 0.0  ;;  %v886_v61 = vmax.f32 %v823_v55, 0.0 }
 0x1ca   :  { %v1413_v58 = vmax.f32 %v934_v56, %v1364_v57 }
 0x1cb   :  { %v935_v2 = vmax.f32 %v456_v60, %v886_v61 }
 0x1cc   :  { %v1892_v62 = vmax.f32 %v1413_v58, %v1843_v59 }
 0x1cd   :  { %v1301_v63 = vpop.f32.mrf.mxu2  ;;  %v1780_v0 = vpop.f32.mrf.mxu3 }
 0x1ce   :  { %v1941_v1 = vpack.c.bf16 %v1892_v62, %v1892_v62  ;;  %v1302_v3 = vadd.f32 %v3304_v38, %v1301_v63  ;;  %v1781_v4 = vadd.f32 %v3304_v38, %v1780_v0  ;;  %v394_v5 = vpop.f32.mrf.mxu0  ;;  %v824_v6 = vpop.f32.mrf.mxu1 }
 0x1cf   :  { %v395_v9 = vadd.f32 %v3304_v38, %v394_v5  ;;  %v825_v10 = vadd.f32 %v3304_v38, %v824_v6 }
 0x1d0   :  { %1991 = vst.msk [vmem:[%s3575_s3 + $0x9c] sm:$0xf] %vm1951_vm1, %v1941_v1  ;;  %v1365_v7 = vmax.f32 %v1302_v3, 0.0  ;;  %v1844_v8 = vmax.f32 %v1781_v4, 0.0 }
 0x1d1   :  { %v457_v13 = vmax.f32 %v395_v9, 0.0  ;;  %v887_v14 = vmax.f32 %v825_v10, 0.0 }
 0x1d2   :  { %v1414_v11 = vmax.f32 %v935_v2, %v1365_v7 }
 0x1d3   :  { %v936_v24 = vmax.f32 %v457_v13, %v887_v14 }
 0x1d4   :  { %v1893_v12 = vmax.f32 %v1414_v11, %v1844_v8 }
 0x1d5   :  { %v1303_v15 = vpop.f32.mrf.mxu2  ;;  %v1782_v16 = vpop.f32.mrf.mxu3 }
 0x1d6   :  { %v1942_v17 = vpack.c.bf16 %v1893_v12, %v1893_v12  ;;  %v1304_v18 = vadd.f32 %v3304_v38, %v1303_v15  ;;  %v1783_v19 = vadd.f32 %v3304_v38, %v1782_v16  ;;  %v397_v20 = vpop.f32.mrf.mxu0  ;;  %v827_v21 = vpop.f32.mrf.mxu1 }
 0x1d7   :  { %v398_v22 = vadd.f32 %v3304_v38, %v397_v20  ;;  %v828_v23 = vadd.f32 %v3304_v38, %v827_v21 }
 0x1d8   :  { %1992 = vst.msk [vmem:[%s3575_s3 + $0xa0] sm:$0xf] %vm1951_vm1, %v1942_v17  ;;  %v1366_v25 = vmax.f32 %v1304_v18, 0.0  ;;  %v1845_v27 = vmax.f32 %v1783_v19, 0.0 }
 0x1d9   :  { %v458_v28 = vmax.f32 %v398_v22, 0.0  ;;  %v888_v29 = vmax.f32 %v828_v23, 0.0 }
 0x1da   :  { %v1415_v26 = vmax.f32 %v936_v24, %v1366_v25 }
 0x1db   :  { %v937_v33 = vmax.f32 %v458_v28, %v888_v29 }
 0x1dc   :  { %v1894_v30 = vmax.f32 %v1415_v26, %v1845_v27 }
 0x1dd   :  { %v1306_v31 = vpop.f32.mrf.mxu2  ;;  %v1785_v32 = vpop.f32.mrf.mxu3 }
 0x1de   :  { %v1943_v34 = vpack.c.bf16 %v1894_v30, %v1894_v30  ;;  %v1307_v35 = vadd.f32 %v3304_v38, %v1306_v31  ;;  %v1786_v36 = vadd.f32 %v3304_v38, %v1785_v32  ;;  %v399_v37 = vpop.f32.mrf.mxu0  ;;  %v829_v39 = vpop.f32.mrf.mxu1 }
 0x1df   :  { %v400_v42 = vadd.f32 %v3304_v38, %v399_v37  ;;  %v830_v43 = vadd.f32 %v3304_v38, %v829_v39 }
 0x1e0   :  { %1993 = vst.msk [vmem:[%s3575_s3 + $0xa4] sm:$0xf] %vm1951_vm1, %v1943_v34  ;;  %v1367_v40 = vmax.f32 %v1307_v35, 0.0  ;;  %v1846_v41 = vmax.f32 %v1786_v36, 0.0 }
 0x1e1   :  { %v459_v46 = vmax.f32 %v400_v42, 0.0  ;;  %v889_v47 = vmax.f32 %v830_v43, 0.0 }
 0x1e2   :  { %v1416_v44 = vmax.f32 %v937_v33, %v1367_v40 }
 0x1e3   :  { %v938_v57 = vmax.f32 %v459_v46, %v889_v47 }
 0x1e4   :  { %v1895_v45 = vmax.f32 %v1416_v44, %v1846_v41 }
 0x1e5   :  { %v1308_v48 = vpop.f32.mrf.mxu2  ;;  %v1787_v49 = vpop.f32.mrf.mxu3 }
 0x1e6   :  { %v1944_v50 = vpack.c.bf16 %v1895_v45, %v1895_v45  ;;  %v1309_v51 = vadd.f32 %v3304_v38, %v1308_v48  ;;  %v1788_v52 = vadd.f32 %v3304_v38, %v1787_v49  ;;  %v402_v53 = vpop.f32.mrf.mxu0  ;;  %v832_v54 = vpop.f32.mrf.mxu1 }
 0x1e7   :  { %v403_v55 = vadd.f32 %v3304_v38, %v402_v53  ;;  %v833_v56 = vadd.f32 %v3304_v38, %v832_v54 }
 0x1e8   :  { %1994 = vst.msk [vmem:[%s3575_s3 + $0xa8] sm:$0xf] %vm1951_vm1, %v1944_v50  ;;  %v1368_v58 = vmax.f32 %v1309_v51, 0.0  ;;  %v1847_v60 = vmax.f32 %v1788_v52, 0.0 }
 0x1e9   :  { %v460_v61 = vmax.f32 %v403_v55, 0.0  ;;  %v890_v62 = vmax.f32 %v833_v56, 0.0 }
 0x1ea   :  { %v1417_v59 = vmax.f32 %v938_v57, %v1368_v58 }
 0x1eb   :  { %v939_v3 = vmax.f32 %v460_v61, %v890_v62 }
 0x1ec   :  { %v1896_v63 = vmax.f32 %v1417_v59, %v1847_v60 }
 0x1ed   :  { %v1311_v0 = vpop.f32.mrf.mxu2  ;;  %v1790_v1 = vpop.f32.mrf.mxu3 }
 0x1ee   :  { %v1945_v2 = vpack.c.bf16 %v1896_v63, %v1896_v63  ;;  %v1312_v4 = vadd.f32 %v3304_v38, %v1311_v0  ;;  %v1791_v5 = vadd.f32 %v3304_v38, %v1790_v1  ;;  %v404_v6 = vpop.f32.mrf.mxu0  ;;  %v834_v7 = vpop.f32.mrf.mxu1 }
 0x1ef   :  { %v405_v10 = vadd.f32 %v3304_v38, %v404_v6  ;;  %v835_v11 = vadd.f32 %v3304_v38, %v834_v7 }
 0x1f0   :  { %1995 = vst.msk [vmem:[%s3575_s3 + $0xac] sm:$0xf] %vm1951_vm1, %v1945_v2  ;;  %v1369_v8 = vmax.f32 %v1312_v4, 0.0  ;;  %v1848_v9 = vmax.f32 %v1791_v5, 0.0 }
 0x1f1   :  { %v461_v14 = vmax.f32 %v405_v10, 0.0  ;;  %v891_v15 = vmax.f32 %v835_v11, 0.0 }
 0x1f2   :  { %v1418_v12 = vmax.f32 %v939_v3, %v1369_v8 }
 0x1f3   :  { %v940_v25 = vmax.f32 %v461_v14, %v891_v15 }
 0x1f4   :  { %v1897_v13 = vmax.f32 %v1418_v12, %v1848_v9 }
 0x1f5   :  { %v1313_v16 = vpop.f32.mrf.mxu2  ;;  %v1792_v17 = vpop.f32.mrf.mxu3 }
 0x1f6   :  { %v1946_v18 = vpack.c.bf16 %v1897_v13, %v1897_v13  ;;  %v1314_v19 = vadd.f32 %v3304_v38, %v1313_v16  ;;  %v1793_v20 = vadd.f32 %v3304_v38, %v1792_v17  ;;  %v407_v21 = vpop.f32.mrf.mxu0  ;;  %v837_v22 = vpop.f32.mrf.mxu1 }
 0x1f7   :  { %v408_v23 = vadd.f32 %v3304_v38, %v407_v21  ;;  %v838_v24 = vadd.f32 %v3304_v38, %v837_v22 }
 0x1f8   :  { %1996 = vst.msk [vmem:[%s3575_s3 + $0xb0] sm:$0xf] %vm1951_vm1, %v1946_v18  ;;  %v1370_v26 = vmax.f32 %v1314_v19, 0.0  ;;  %v1849_v28 = vmax.f32 %v1793_v20, 0.0 }
 0x1f9   :  { %v462_v29 = vmax.f32 %v408_v23, 0.0  ;;  %v892_v30 = vmax.f32 %v838_v24, 0.0 }
 0x1fa   :  { %v1419_v27 = vmax.f32 %v940_v25, %v1370_v26 }
 0x1fb   :  { %v941_v35 = vmax.f32 %v462_v29, %v892_v30 }
 0x1fc   :  { %v1898_v31 = vmax.f32 %v1419_v27, %v1849_v28 }
 0x1fd   :  { %v1316_v32 = vpop.f32.mrf.mxu2  ;;  %v1795_v34 = vpop.f32.mrf.mxu3 }
 0x1fe   :  { %v1947_v33 = vpack.c.bf16 %v1898_v31, %v1898_v31  ;;  %v1317_v36 = vadd.f32 %v3304_v38, %v1316_v32  ;;  %v1796_v37 = vadd.f32 %v3304_v38, %v1795_v34  ;;  %v409_v39 = vpop.f32.mrf.mxu0  ;;  %v839_v40 = vpop.f32.mrf.mxu1 }
 0x1ff   :  { %v410_v43 = vadd.f32 %v3304_v38, %v409_v39  ;;  %v840_v44 = vadd.f32 %v3304_v38, %v839_v40 }
 0x200   :  { %1997 = vst.msk [vmem:[%s3575_s3 + $0xb4] sm:$0xf] %vm1951_vm1, %v1947_v33  ;;  %v1371_v41 = vmax.f32 %v1317_v36, 0.0  ;;  %v1850_v42 = vmax.f32 %v1796_v37, 0.0 }
 0x201   :  { %v463_v47 = vmax.f32 %v410_v43, 0.0  ;;  %v893_v48 = vmax.f32 %v840_v44, 0.0 }
 0x202   :  { %v1420_v45 = vmax.f32 %v941_v35, %v1371_v41 }
 0x203   :  { %v942_v58 = vmax.f32 %v463_v47, %v893_v48 }
 0x204   :  { %v1899_v46 = vmax.f32 %v1420_v45, %v1850_v42 }
 0x205   :  { %v1318_v49 = vpop.f32.mrf.mxu2  ;;  %v1797_v50 = vpop.f32.mrf.mxu3 }
 0x206   :  { %v1948_v51 = vpack.c.bf16 %v1899_v46, %v1899_v46  ;;  %v1319_v52 = vadd.f32 %v3304_v38, %v1318_v49  ;;  %v1798_v53 = vadd.f32 %v3304_v38, %v1797_v50  ;;  %v412_v54 = vpop.f32.mrf.mxu0  ;;  %v842_v55 = vpop.f32.mrf.mxu1 }
 0x207   :  { %v413_v56 = vadd.f32 %v3304_v38, %v412_v54  ;;  %v843_v57 = vadd.f32 %v3304_v38, %v842_v55 }
 0x208   :  { %1998 = vst.msk [vmem:[%s3575_s3 + $0xb8] sm:$0xf] %vm1951_vm1, %v1948_v51  ;;  %v1372_v59 = vmax.f32 %v1319_v52, 0.0  ;;  %v1851_v61 = vmax.f32 %v1798_v53, 0.0 }
 0x209   :  { %v464_v62 = vmax.f32 %v413_v56, 0.0  ;;  %v894_v63 = vmax.f32 %v843_v57, 0.0 }
 0x20a   :  { %v1421_v60 = vmax.f32 %v942_v58, %v1372_v59 }
 0x20b   :  { %v943_v4 = vmax.f32 %v464_v62, %v894_v63 }
 0x20c   :  { %v1900_v0 = vmax.f32 %v1421_v60, %v1851_v61 }
 0x20d   :  { %v1321_v1 = vpop.f32.mrf.mxu2  ;;  %v1800_v2 = vpop.f32.mrf.mxu3 }
 0x20e   :  { %v1949_v3 = vpack.c.bf16 %v1900_v0, %v1900_v0  ;;  %v1322_v5 = vadd.f32 %v3304_v38, %v1321_v1  ;;  %v1801_v6 = vadd.f32 %v3304_v38, %v1800_v2  ;;  %v414_v7 = vpop.f32.mrf.mxu0  ;;  %v844_v8 = vpop.f32.mrf.mxu1 }
 0x210   :  { %1999 = vst.msk [vmem:[%s3575_s3 + $0xbc] sm:$0xf] %vm1951_vm1, %v1949_v3  ;;  %v1373_v9 = vmax.f32 %v1322_v5, 0.0  ;;  %v1852_v10 = vmax.f32 %v1801_v6, 0.0 }
 0x212   :  { %v1422_v11 = vmax.f32 %v943_v4, %v1373_v9 }
 0x214   :  { %v1901_v12 = vmax.f32 %v1422_v11, %v1852_v10 }
 0x215   :  { %v1323_v13 = vpop.f32.mrf.mxu2  ;;  %v1802_v14 = vpop.f32.mrf.mxu3 }
 0x216   :  { %v1950_v15 = vpack.c.bf16 %v1901_v12, %v1901_v12 }
 0x218   :  { %2000 = vst.msk [vmem:[%s3575_s3 + $0xc0] sm:$0xf] %vm1951_vm1, %v1950_v15 }

// kernel: convnet_forward.3
= control target key start
LH: loop header
LB: loop body
LE: loop exit
PB: predicated region body
PF: predicated region fallthrough
CT: control target
= control target key end

     0   :  { %vm379_vm0 = vcmask 130048   ;;  %vm1722_vm1 = vcmask 261120   ;;  %vm1790_vm2 = vcmask 7168   ;;  %s3677_s1 = inlined_call_operand.vmem [shape: bf16[400,32], index: 1, kind: input, shape index: {}]   ;;  %s3678_s0 = inlined_call_operand.vmem [shape: bf16[4,104,400], index: 0, kind: input, shape index: {}]   ;;  %s3679_s2 = inlined_call_operand.vmem [shape: f32[1,32], index: 2, kind: input, shape index: {}]   ;;  %s3680_s3 = inlined_call_operand.vmem [shape: f32[1,32], index: 3, kind: input, shape index: {}]   ;;  %s3681_s4 = inlined_call_operand.<no memory space> [shape: f32[1,1], index: 4, kind: input, shape index: {}]   ;;  %s3682_s5 = inlined_call_operand.vmem [shape: f32[104,1], index: 5, kind: output, shape index: {}]  }
   0x1   :  { %v2555_v0 = vld [vmem:[%s3677_s1 + $0x38] sm:$0xff]  ;;  %v2572_v3 = vld [vmem:[%s3677_s1 + $0x30] sm:$0xff]  ;;  %v2588_v6 = vld [vmem:[%s3677_s1 + $0xc0] sm:$0xff] }
   0x2   :  { %v2560_v1 = vld [vmem:[%s3677_s1 + $0x78] sm:$0xff]  ;;  %401 = vmatpush.bf16.msra.mxu0 %v2555_v0  ;;  %v2577_v4 = vld [vmem:[%s3677_s1 + $0x70] sm:$0xff]  ;;  %v2424_v7 = vld [vmem:[%s3678_s0 + $0xc] sm:$0xf]  ;;  %537 = vmatpush.bf16.msra.mxu3 %v2588_v6 }
   0x3   :  { %v2565_v2 = vld [vmem:[%s3677_s1 + $0xb8] sm:$0xff]  ;;  %444 = vmatpush.bf16.msra.mxu1 %v2560_v1  ;;  %v2583_v5 = vld [vmem:[%s3677_s1 + $0xb0] sm:$0xff]  ;;  %v2601_v9 = vld [vmem:[%s3677_s1 + $0x28] sm:$0xff] }
   0x4   :  { %487 = vmatpush.bf16.msra.mxu2 %v2565_v2  ;;  %v1820_v8 = vld [vmem:[%s3678_s0 + $0x18] sm:$0xf0]  ;;  %v2606_v10 = vld [vmem:[%s3677_s1 + $0x68] sm:$0xff]  ;;  %v2621_v13 = vld [vmem:[%s3677_s1 + $0x20] sm:$0xff] }
   0x5   :  { %v2612_v11 = vld [vmem:[%s3677_s1 + $0xa8] sm:$0xff]  ;;  %v1823_v12 = vor.u32 %v2424_v7, %v1820_v8  ;;  %v2626_v14 = vld [vmem:[%s3677_s1 + $0x60] sm:$0xff]  ;;  %v2641_v16 = vld [vmem:[%s3677_s1 + $0x18] sm:$0xff] }
   0x6   :  { %402 = vmatpush.bf16.msra.mxu0 %v2572_v3  ;;  %761 = vmatpush.bf16.msrb.mxu3 %v2555_v0  ;;  %v2632_v15 = vld [vmem:[%s3677_s1 + $0xa0] sm:$0xff]  ;;  %v2646_v17 = vld [vmem:[%s3677_s1 + $0x58] sm:$0xff]  ;;  %v2660_v19 = vld [vmem:[%s3677_s1 + $0x10] sm:$0xff] }
   0x7   :  { %445 = vmatpush.bf16.msra.mxu1 %v2577_v4  ;;  %2004 = vmatmul.msk.bf16.vlgmr.msra.gmra.mxu3 %vm379_vm0, %v1823_v12  ;;  %v2652_v18 = vld [vmem:[%s3677_s1 + $0x98] sm:$0xff]  ;;  %v2665_v20 = vld [vmem:[%s3677_s1 + $0x50] sm:$0xff]  ;;  %v2428_v22 = vld [vmem:[%s3678_s0 + $0x2c] sm:$0xf] }
   0x8   :  { %488 = vmatpush.bf16.msra.mxu2 %v2583_v5  ;;  %v2671_v21 = vld [vmem:[%s3677_s1 + $0x90] sm:$0xff]  ;;  %v1836_v23 = vld [vmem:[%s3678_s0 + $0x38] sm:$0xf0]  ;;  %v2685_v24 = vld [vmem:[%s3677_s1 + $0x8] sm:$0xff] }
   0x9   :  { %v2690_v25 = vld [vmem:[%s3677_s1 + $0x48] sm:$0xff]  ;;  %v1839_v27 = vor.u32 %v2428_v22, %v1836_v23  ;;  %v2702_v28 = vld [vmem:[%s3677_s1] sm:$0xff]  ;;  %v2425_v31 = vld [vmem:[%s3678_s0 + $0xc] sm:$0xf0] }
   0xa   :  { %403 = vmatpush.bf16.msra.mxu0 %v2601_v9  ;;  %762 = vmatpush.bf16.msrb.mxu3 %v2572_v3  ;;  %v2696_v26 = vld [vmem:[%s3677_s1 + $0x88] sm:$0xff]  ;;  %v2707_v29 = vld [vmem:[%s3677_s1 + $0x40] sm:$0xff]  ;;  %v1812_v33 = vld [vmem:[%s3678_s0 + $0x10] sm:$0xf0] }
   0xb   :  { %446 = vmatpush.bf16.msra.mxu1 %v2606_v10  ;;  %v1810_v30 = vld [vmem:[%s3678_s0] sm:$0xf]  ;;  %v2423_v32 = vld [vmem:[%s3678_s0 + $0x4] sm:$0xf]  ;;  %v1818_v35 = vld [vmem:[%s3678_s0 + $0x8] sm:$0xf] }
   0xc   :  { %489 = vmatpush.bf16.msra.mxu2 %v2612_v11  ;;  %v2727_v34 = vld [vmem:[%s3677_s1 + $0x80] sm:$0xff]  ;;  %v2426_v36 = vld [vmem:[%s3678_s0 + $0x14] sm:$0xf0]  ;;  %v1811_v37 = vor.u32 %v2425_v31, %v1810_v30  ;;  %v1815_v38 = vor.u32 %v2423_v32, %v1812_v33  ;;  %v2432_v40 = vld [vmem:[%s3678_s0 + $0x4c] sm:$0xf] }
   0xd   :  { %v1819_v39 = vor.u32 %v2426_v36, %v1818_v35  ;;  %v1852_v41 = vld [vmem:[%s3678_s0 + $0x58] sm:$0xf0]  ;;  %v1826_v43 = vld [vmem:[%s3678_s0 + $0x20] sm:$0xf]  ;;  %v2429_v44 = vld [vmem:[%s3678_s0 + $0x2c] sm:$0xf0] }
   0xe   :  { %404 = vmatpush.bf16.msra.mxu0 %v2621_v13  ;;  %763 = vmatpush.bf16.msrb.mxu3 %v2601_v9  ;;  %v1855_v42 = vor.u32 %v2432_v40, %v1852_v41  ;;  %v2427_v45 = vld [vmem:[%s3678_s0 + $0x24] sm:$0xf]  ;;  %v1828_v46 = vld [vmem:[%s3678_s0 + $0x30] sm:$0xf0]  ;;  %v1834_v47 = vld [vmem:[%s3678_s0 + $0x28] sm:$0xf]  ;;  %v1827_v49 = vor.u32 %v2429_v44, %v1826_v43 }
   0xf   :  { %447 = vmatpush.bf16.msra.mxu1 %v2626_v14  ;;  %v2430_v48 = vld [vmem:[%s3678_s0 + $0x34] sm:$0xf0]  ;;  %v1831_v50 = vor.u32 %v2427_v45, %v1828_v46  ;;  %v2436_v52 = vld [vmem:[%s3678_s0 + $0x6c] sm:$0xf]  ;;  %v1868_v53 = vld [vmem:[%s3678_s0 + $0x78] sm:$0xf0] }
  0x10   :  { %490 = vmatpush.bf16.msra.mxu2 %v2632_v15  ;;  %v1835_v51 = vor.u32 %v2430_v48, %v1834_v47  ;;  %v1871_v54 = vor.u32 %v2436_v52, %v1868_v53  ;;  %v1842_v55 = vld [vmem:[%s3678_s0 + $0x40] sm:$0xf]  ;;  %v2433_v56 = vld [vmem:[%s3678_s0 + $0x4c] sm:$0xf0]  ;;  %v2431_v57 = vld [vmem:[%s3678_s0 + $0x44] sm:$0xf] }
  0x11   :  { %v1844_v58 = vld [vmem:[%s3678_s0 + $0x50] sm:$0xf0]  ;;  %v1850_v59 = vld [vmem:[%s3678_s0 + $0x48] sm:$0xf]  ;;  %v2434_v60 = vld [vmem:[%s3678_s0 + $0x54] sm:$0xf0]  ;;  %v1843_v61 = vor.u32 %v2433_v56, %v1842_v55 }
  0x12   :  { %405 = vmatpush.bf16.msra.mxu0 %v2641_v16  ;;  %764 = vmatpush.bf16.msrb.mxu3 %v2621_v13  ;;  %v1847_v62 = vor.u32 %v2431_v57, %v1844_v58  ;;  %v1851_v63 = vor.u32 %v2434_v60, %v1850_v59  ;;  %v2440_v7 = vld [vmem:[%s3678_s0 + $0x8c] sm:$0xf]  ;;  %v1884_v8 = vld [vmem:[%s3678_s0 + $0x98] sm:$0xf0]  ;;  %v1858_v22 = vld [vmem:[%s3678_s0 + $0x60] sm:$0xf] }
  0x13   :  { %448 = vmatpush.bf16.msra.mxu1 %v2646_v17  ;;  %v1887_v12 = vor.u32 %v2440_v7, %v1884_v8  ;;  %v2437_v23 = vld [vmem:[%s3678_s0 + $0x6c] sm:$0xf0]  ;;  %v1860_v30 = vld [vmem:[%s3678_s0 + $0x70] sm:$0xf0]  ;;  %v1866_v31 = vld [vmem:[%s3678_s0 + $0x68] sm:$0xf] }
  0x14   :  { %491 = vmatpush.bf16.msra.mxu2 %v2652_v18  ;;  %v2438_v32 = vld [vmem:[%s3678_s0 + $0x74] sm:$0xf0]  ;;  %v1859_v33 = vor.u32 %v2437_v23, %v1858_v22  ;;  %v1874_v40 = vld [vmem:[%s3678_s0 + $0x80] sm:$0xf]  ;;  %v2441_v41 = vld [vmem:[%s3678_s0 + $0x8c] sm:$0xf0] }
  0x15   :  { %v1867_v36 = vor.u32 %v2438_v32, %v1866_v31  ;;  %v1876_v43 = vld [vmem:[%s3678_s0 + $0x90] sm:$0xf0]  ;;  %v1882_v44 = vld [vmem:[%s3678_s0 + $0x88] sm:$0xf]  ;;  %v2442_v45 = vld [vmem:[%s3678_s0 + $0x94] sm:$0xf0]  ;;  %v1875_v46 = vor.u32 %v2441_v41, %v1874_v40 }
  0x16   :  { %406 = vmatpush.bf16.msra.mxu0 %v2660_v19  ;;  %765 = vmatpush.bf16.msrb.mxu3 %v2641_v16  ;;  %v1883_v48 = vor.u32 %v2442_v45, %v1882_v44  ;;  %v1890_v52 = vld [vmem:[%s3678_s0 + $0xa0] sm:$0xf]  ;;  %v2445_v53 = vld [vmem:[%s3678_s0 + $0xac] sm:$0xf0]  ;;  %v1892_v55 = vld [vmem:[%s3678_s0 + $0xb0] sm:$0xf0] }
  0x17   :  { %449 = vmatpush.bf16.msra.mxu1 %v2665_v20  ;;  %2005 = vmatmul.msk.bf16.gmra.mxu3 %vm379_vm0, %v1839_v27  ;;  %v2435_v27 = vld [vmem:[%s3678_s0 + $0x64] sm:$0xf]  ;;  %v1898_v56 = vld [vmem:[%s3678_s0 + $0xa8] sm:$0xf]  ;;  %v2446_v57 = vld [vmem:[%s3678_s0 + $0xb4] sm:$0xf0]  ;;  %v1891_v58 = vor.u32 %v2445_v53, %v1890_v52 }
  0x18   :  { %492 = vmatpush.bf16.msra.mxu2 %v2671_v21  ;;  %v1863_v35 = vor.u32 %v2435_v27, %v1860_v30  ;;  %v1899_v60 = vor.u32 %v2446_v57, %v1898_v56  ;;  %v2055_v31 = vld [vmem:[%s3678_s0 + $0xf0] sm:$0xf]  ;;  %v2453_v32 = vld [vmem:[%s3678_s0 + $0xfc] sm:$0xf0]  ;;  %v2455_v56 = vld [vmem:[%s3678_s0 + $0x114] sm:$0xf] }
  0x19   :  { %v2457_v41 = vld [vmem:[%s3678_s0 + $0x11c] sm:$0xf0]  ;;  %v2073_v57 = vld [vmem:[%s3678_s0 + $0x120] sm:$0xf0] }
  0x1a   :  { %407 = vmatpush.bf16.msra.mxu0 %v2685_v24  ;;  %766 = vmatpush.bf16.msrb.mxu3 %v2660_v19 }
  0x1b   :  { %450 = vmatpush.bf16.msra.mxu1 %v2690_v25 }
  0x1c   :  { %493 = vmatpush.bf16.msra.mxu2 %v2696_v26 }
  0x1e   :  { %408 = vmatpush.bf16.msra.mxu0 %v2702_v28  ;;  %767 = vmatpush.bf16.msrb.mxu3 %v2685_v24 }
  0x1f   :  { %451 = vmatpush.bf16.msra.mxu1 %v2707_v29 }
  0x20   :  { %494 = vmatpush.bf16.msra.mxu2 %v2727_v34 }
  0x21   :  { %409 = vmatmul.bf16.vlgmr.msra.gmra.mxu0 %v1811_v37  ;;  %v2444_v37 = vld [vmem:[%s3678_s0 + $0xac] sm:$0xf] }
  0x22   :  { %804 = vmatpush.bf16.msrb.mxu0 %v2560_v1  ;;  %452 = vmatmul.bf16.vlgmr.msra.gmra.mxu1 %v1815_v38  ;;  %v1900_v38 = vld [vmem:[%s3678_s0 + $0xb8] sm:$0xf0] }
  0x23   :  { %847 = vmatpush.bf16.msrb.mxu1 %v2565_v2  ;;  %495 = vmatmul.bf16.vlgmr.msra.gmra.mxu2 %v1819_v39  ;;  %v1903_v39 = vor.u32 %v2444_v37, %v1900_v38 }
  0x24   :  { %897 = vmatpush.bf16.msrb.mxu2 %v2588_v6  ;;  %768 = vmatpush.bf16.msrb.mxu3 %v2702_v28 }
  0x26   :  { %805 = vmatpush.bf16.msrb.mxu0 %v2577_v4 }
  0x27   :  { %848 = vmatpush.bf16.msrb.mxu1 %v2583_v5  ;;  %2006 = vmatmul.msk.bf16.gmra.mxu3 %vm379_vm0, %v1855_v42  ;;  %v2439_v42 = vld [vmem:[%s3678_s0 + $0x84] sm:$0xf] }
  0x28   :  { %1270 = vmatpush.bf16.msra.mxu2 %v2588_v6  ;;  %1134 = vmatpush.bf16.msra.mxu3 %v2555_v0  ;;  %v1879_v47 = vor.u32 %v2439_v42, %v1876_v43 }
  0x2a   :  { %806 = vmatpush.bf16.msrb.mxu0 %v2606_v10 }
  0x2b   :  { %849 = vmatpush.bf16.msrb.mxu1 %v2612_v11 }
  0x2c   :  { %1135 = vmatpush.bf16.msra.mxu3 %v2572_v3 }
  0x2e   :  { %807 = vmatpush.bf16.msrb.mxu0 %v2626_v14 }
  0x2f   :  { %850 = vmatpush.bf16.msrb.mxu1 %v2632_v15 }
  0x30   :  { %1136 = vmatpush.bf16.msra.mxu3 %v2601_v9 }
  0x31   :  { %414 = vmatmul.bf16.gmra.mxu0 %v1827_v49  ;;  %v98_v49 = vld [vmem:[%s3678_s0 + $0xc8] sm:$0xff] }
  0x32   :  { %808 = vmatpush.bf16.msrb.mxu0 %v2646_v17  ;;  %457 = vmatmul.bf16.gmra.mxu1 %v1831_v50  ;;  %v179_v50 = vunpack.c.h.b16 %v98_v49  ;;  %v178_v22 = vunpack.c.l.b16 %v98_v49 }
  0x33   :  { %851 = vmatpush.bf16.msrb.mxu1 %v2652_v18  ;;  %500 = vmatmul.bf16.gmra.mxu2 %v1835_v51 }
  0x34   :  { %1137 = vmatpush.bf16.msra.mxu3 %v2621_v13  ;;  %v207_v51 = vpack.c.b16 %v179_v50, %v179_v50  ;;  %v206_v30 = vpack.c.b16 %v178_v22, %v178_v22 }
  0x36   :  { %809 = vmatpush.bf16.msrb.mxu0 %v2665_v20 }
  0x37   :  { %852 = vmatpush.bf16.msrb.mxu1 %v2671_v21  ;;  %2007 = vmatmul.msk.bf16.gmra.mxu3 %vm379_vm0, %v1871_v54  ;;  %v2443_v54 = vld [vmem:[%s3678_s0 + $0xa4] sm:$0xf] }
  0x38   :  { %1138 = vmatpush.bf16.msra.mxu3 %v2641_v16  ;;  %v1895_v59 = vor.u32 %v2443_v54, %v1892_v55 }
  0x3a   :  { %810 = vmatpush.bf16.msrb.mxu0 %v2690_v25 }
  0x3b   :  { %853 = vmatpush.bf16.msrb.mxu1 %v2696_v26 }
  0x3c   :  { %1139 = vmatpush.bf16.msra.mxu3 %v2660_v19 }
  0x3e   :  { %811 = vmatpush.bf16.msrb.mxu0 %v2707_v29 }
  0x3f   :  { %854 = vmatpush.bf16.msrb.mxu1 %v2727_v34 }
  0x40   :  { %1140 = vmatpush.bf16.msra.mxu3 %v2685_v24 }
  0x41   :  { %419 = vmatmul.bf16.gmra.mxu0 %v1843_v61  ;;  %v2039_v61 = vld [vmem:[%s3678_s0 + $0xd0] sm:$0xf] }
  0x42   :  { %1177 = vmatpush.bf16.msra.mxu0 %v2560_v1  ;;  %462 = vmatmul.bf16.gmra.mxu1 %v1847_v62  ;;  %v2449_v62 = vld [vmem:[%s3678_s0 + $0xdc] sm:$0xf0] }
  0x43   :  { %1220 = vmatpush.bf16.msra.mxu1 %v2565_v2  ;;  %505 = vmatmul.bf16.gmra.mxu2 %v1851_v63  ;;  %v97_v63 = vld [vmem:[%s3678_s0 + $0xc0] sm:$0xff]  ;;  %v2040_v7 = vor.u32 %v2449_v62, %v2039_v61  ;;  %v2076_v61 = vor.u32 %v2455_v56, %v2073_v57 }
  0x44   :  { %1141 = vmatpush.bf16.msra.mxu3 %v2702_v28  ;;  %v176_v8 = vunpack.c.l.b16 %v97_v63 }
  0x46   :  { %1178 = vmatpush.bf16.msra.mxu0 %v2577_v4  ;;  %v204_v23 = vpack.c.b16 %v176_v8, %v176_v8 }
  0x47   :  { %1221 = vmatpush.bf16.msra.mxu1 %v2583_v5  ;;  %2008 = vmatmul.msk.bf16.gmra.mxu3 %vm379_vm0, %v1887_v12  ;;  %v177_v12 = vunpack.c.h.b16 %v97_v63 }
  0x49   :  { %v205_v27 = vpack.c.b16 %v177_v12, %v177_v12 }
  0x4a   :  { %1179 = vmatpush.bf16.msra.mxu0 %v2606_v10 }
  0x4b   :  { %1222 = vmatpush.bf16.msra.mxu1 %v2612_v11 }
  0x4e   :  { %1180 = vmatpush.bf16.msra.mxu0 %v2626_v14 }
  0x4f   :  { %1223 = vmatpush.bf16.msra.mxu1 %v2632_v15 }
  0x51   :  { %424 = vmatmul.bf16.gmra.mxu0 %v1859_v33  ;;  %v2056_v33 = vor.u32 %v2453_v32, %v2055_v31 }
  0x52   :  { %1181 = vmatpush.bf16.msra.mxu0 %v2646_v17  ;;  %467 = vmatmul.bf16.gmra.mxu1 %v1863_v35  ;;  %v2047_v35 = vld [vmem:[%s3678_s0 + $0xd8] sm:$0xf] }
  0x53   :  { %1224 = vmatpush.bf16.msra.mxu1 %v2652_v18  ;;  %510 = vmatmul.bf16.gmra.mxu2 %v1867_v36  ;;  %v2450_v36 = vld [vmem:[%s3678_s0 + $0xe4] sm:$0xf0] }
  0x54   :  { %v2048_v38 = vor.u32 %v2450_v36, %v2047_v35 }
  0x56   :  { %1182 = vmatpush.bf16.msra.mxu0 %v2665_v20 }
  0x57   :  { %1225 = vmatpush.bf16.msra.mxu1 %v2671_v21  ;;  %2009 = vmatmul.msk.bf16.gmra.mxu3 %vm379_vm0, %v1903_v39 }
  0x5a   :  { %1183 = vmatpush.bf16.msra.mxu0 %v2690_v25 }
  0x5b   :  { %1226 = vmatpush.bf16.msra.mxu1 %v2696_v26 }
  0x5e   :  { %1184 = vmatpush.bf16.msra.mxu0 %v2707_v29 }
  0x5f   :  { %1227 = vmatpush.bf16.msra.mxu1 %v2727_v34 }
  0x61   :  { %429 = vmatmul.bf16.gmra.mxu0 %v1875_v46 }
  0x62   :  { %472 = vmatmul.bf16.gmra.mxu1 %v1879_v47 }
  0x63   :  { %515 = vmatmul.bf16.gmra.mxu2 %v1883_v48 }
  0x67   :  { %2010 = vmatmul.msk.bf16.gmra.mxu3 %vm379_vm0, %v207_v51 }
  0x71   :  { %434 = vmatmul.bf16.gmra.mxu0 %v1891_v58  ;;  %v2458_v58 = vld [vmem:[%s3678_s0 + $0x124] sm:$0xf0] }
  0x72   :  { %477 = vmatmul.bf16.gmra.mxu1 %v1895_v59  ;;  %v2081_v59 = vld [vmem:[%s3678_s0 + $0x128] sm:$0xf0] }
  0x73   :  { %520 = vmatmul.bf16.gmra.mxu2 %v1899_v60 }
  0x77   :  { %769 = vmatmul.bf16.vlgmr.msrb.gmra.mxu3 %v2040_v7 }
  0x78   :  { %1507 = vmatpush.bf16.msrb.mxu3 %v2555_v0  ;;  %v2447_v0 = vld [vmem:[%s3678_s0 + $0xd4] sm:$0xf] }
  0x7c   :  { %1508 = vmatpush.bf16.msrb.mxu3 %v2572_v3  ;;  %v2041_v3 = vld [vmem:[%s3678_s0 + $0xe0] sm:$0xf0] }
  0x7d   :  { %v2044_v37 = vor.u32 %v2447_v0, %v2041_v3 }
  0x80   :  { %1509 = vmatpush.bf16.msrb.mxu3 %v2601_v9  ;;  %v2448_v9 = vld [vmem:[%s3678_s0 + $0xdc] sm:$0xf] }
  0x81   :  { %439 = vmatmul.bf16.gmra.mxu0 %v204_v23 }
  0x82   :  { %482 = vmatmul.bf16.gmra.mxu1 %v205_v27 }
  0x83   :  { %525 = vmatmul.bf16.gmra.mxu2 %v206_v30 }
  0x84   :  { %1510 = vmatpush.bf16.msrb.mxu3 %v2621_v13  ;;  %v2049_v13 = vld [vmem:[%s3678_s0 + $0xe8] sm:$0xf0] }
  0x85   :  { %v2052_v39 = vor.u32 %v2448_v9, %v2049_v13  ;;  %v2459_v9 = vld [vmem:[%s3678_s0 + $0x134] sm:$0xf]  ;;  %v2089_v13 = vld [vmem:[%s3678_s0 + $0x140] sm:$0xf0] }
  0x87   :  { %774 = vmatmul.bf16.gmra.mxu3 %v2056_v33 }
  0x88   :  { %1511 = vmatpush.bf16.msrb.mxu3 %v2641_v16  ;;  %v2071_v16 = vld [vmem:[%s3678_s0 + $0x110] sm:$0xf] }
  0x89   :  { %v2072_v42 = vor.u32 %v2457_v41, %v2071_v16  ;;  %v2092_v41 = vor.u32 %v2459_v9, %v2089_v13  ;;  %v2468_v9 = vld [vmem:[%s3678_s0 + $0x17c] sm:$0xf]  ;;  %v2129_v13 = vld [vmem:[%s3678_s0 + $0x188] sm:$0xf0] }
  0x8a   :  { %v539_v40 = vpop.f32.mrf.mxu3 }
  0x8c   :  { %1512 = vmatpush.bf16.msrb.mxu3 %v2660_v19 }
  0x90   :  { %1513 = vmatpush.bf16.msrb.mxu3 %v2685_v24  ;;  %v2452_v24 = vld [vmem:[%s3678_s0 + $0xfc] sm:$0xf] }
  0x91   :  { %812 = vmatmul.bf16.vlgmr.msrb.gmra.mxu0 %v2044_v37  ;;  %v2095_v37 = vld [vmem:[%s3678_s0 + $0x138] sm:$0xf] }
  0x92   :  { %855 = vmatmul.bf16.vlgmr.msrb.gmra.mxu1 %v2048_v38  ;;  %1550 = vmatpush.bf16.msrb.mxu0 %v2560_v1  ;;  %v2956_v19 = vpop.f32.mrf.mxu3  ;;  %v2451_v1 = vld [vmem:[%s3678_s0 + $0xf4] sm:$0xf]  ;;  %v2462_v38 = vld [vmem:[%s3678_s0 + $0x144] sm:$0xf0] }
  0x93   :  { %2133 = vmatmul.msk.bf16.vlgmr.msrb.gmra.mxu2 %vm379_vm0, %v2052_v39  ;;  %1593 = vmatpush.bf16.msrb.mxu1 %v2565_v2  ;;  %v2057_v2 = vld [vmem:[%s3678_s0 + $0x100] sm:$0xf0]  ;;  %v2460_v39 = vld [vmem:[%s3678_s0 + $0x13c] sm:$0xf] }
  0x94   :  { %1643 = vmatpush.bf16.msrb.mxu2 %v2588_v6  ;;  %1514 = vmatpush.bf16.msrb.mxu3 %v2702_v28  ;;  %v2063_v6 = vld [vmem:[%s3678_s0 + $0xf8] sm:$0xf]  ;;  %v2065_v28 = vld [vmem:[%s3678_s0 + $0x108] sm:$0xf0]  ;;  %v2060_v43 = vor.u32 %v2451_v1, %v2057_v2 }
  0x95   :  { %v2068_v46 = vor.u32 %v2452_v24, %v2065_v28 }
  0x96   :  { %1551 = vmatpush.bf16.msrb.mxu0 %v2577_v4  ;;  %v2454_v4 = vld [vmem:[%s3678_s0 + $0x104] sm:$0xf0] }
  0x97   :  { %1594 = vmatpush.bf16.msrb.mxu1 %v2583_v5  ;;  %v2977_v5 = vld [vmem:[%s3679_s2] ss:$0 sm:$0xff]  ;;  %779 = vmatmul.bf16.gmra.mxu3 %v2072_v42  ;;  %v2064_v44 = vor.u32 %v2454_v4, %v2063_v6 }
  0x9a   :  { %1552 = vmatpush.bf16.msrb.mxu0 %v2606_v10  ;;  %v544_v48 = vpop.f32.mrf.mxu3 }
  0x9b   :  { %1595 = vmatpush.bf16.msrb.mxu1 %v2612_v11  ;;  %v2087_v11 = vld [vmem:[%s3678_s0 + $0x130] sm:$0xf] }
  0x9e   :  { %v410_v45 = vpop.f32.mrf.mxu0  ;;  %1553 = vmatpush.bf16.msrb.mxu0 %v2626_v14  ;;  %v2461_v14 = vld [vmem:[%s3678_s0 + $0x13c] sm:$0xf0] }
  0x9f   :  { %v453_v10 = vpop.f32.mrf.mxu1  ;;  %v411_v47 = vadd.f32 %v2977_v5, %v410_v45  ;;  %1596 = vmatpush.bf16.msrb.mxu1 %v2632_v15  ;;  %v2469_v45 = vld [vmem:[%s3678_s0 + $0x17c] sm:$0xf0] }
  0xa1   :  { %v454_v49 = vadd.f32 %v453_v10, %v411_v47  ;;  %817 = vmatmul.bf16.gmra.mxu0 %v2060_v43 }
  0xa2   :  { %860 = vmatmul.bf16.gmra.mxu1 %v2064_v44  ;;  %1554 = vmatpush.bf16.msrb.mxu0 %v2646_v17  ;;  %v546_v54 = vpop.f32.mrf.mxu3  ;;  %v2088_v17 = vor.u32 %v2461_v14, %v2087_v11  ;;  %v2119_v44 = vld [vmem:[%s3678_s0 + $0x170] sm:$0xf] }
  0xa3   :  { %2134 = vmatmul.msk.bf16.gmra.mxu2 %vm379_vm0, %v2068_v46  ;;  %1597 = vmatpush.bf16.msrb.mxu1 %v2652_v18  ;;  %v2120_v14 = vor.u32 %v2469_v45, %v2119_v44 }
  0xa6   :  { %v496_v50 = vpop.f32.mrf.mxu2  ;;  %v412_v15 = vpop.f32.mrf.mxu0  ;;  %1555 = vmatpush.bf16.msrb.mxu0 %v2665_v20  ;;  %v2079_v20 = vld [vmem:[%s3678_s0 + $0x118] sm:$0xf] }
  0xa7   :  { %v497_v51 = vadd.f32 %v496_v50, %v454_v49  ;;  %v455_v52 = vpop.f32.mrf.mxu1  ;;  %v413_v53 = vadd.f32 %v2977_v5, %v412_v15  ;;  %1598 = vmatpush.bf16.msrb.mxu1 %v2671_v21  ;;  %v2456_v21 = vld [vmem:[%s3678_s0 + $0x11c] sm:$0xf]  ;;  %784 = vmatmul.bf16.gmra.mxu3 %v2088_v17  ;;  %v2080_v62 = vor.u32 %v2458_v58, %v2079_v20  ;;  %v2463_v15 = vld [vmem:[%s3678_s0 + $0x154] sm:$0xf] }
  0xa8   :  { %v2084_v12 = vor.u32 %v2456_v21, %v2081_v59  ;;  %v2464_v17 = vld [vmem:[%s3678_s0 + $0x15c] sm:$0xf] }
  0xa9   :  { %v3001_v18 = vadd.f32 %v539_v40, %v497_v51  ;;  %v456_v55 = vadd.f32 %v455_v52, %v413_v53  ;;  %v2097_v40 = vld [vmem:[%s3678_s0 + $0x148] sm:$0xf0]  ;;  %v2105_v52 = vld [vmem:[%s3678_s0 + $0x160] sm:$0xf0]  ;;  %v2111_v53 = vld [vmem:[%s3678_s0 + $0x158] sm:$0xf] }
  0xaa   :  { %1556 = vmatpush.bf16.msrb.mxu0 %v2690_v25  ;;  %v549_v22 = vpop.f32.mrf.mxu3  ;;  %v2100_v6 = vor.u32 %v2460_v39, %v2097_v40  ;;  %v2108_v57 = vor.u32 %v2463_v15, %v2105_v52 }
  0xab   :  { %1599 = vmatpush.bf16.msrb.mxu1 %v2696_v26  ;;  %v2103_v26 = vld [vmem:[%s3678_s0 + $0x150] sm:$0xf] }
  0xae   :  { %v498_v60 = vpop.f32.mrf.mxu2  ;;  %v415_v7 = vpop.f32.mrf.mxu0  ;;  %1557 = vmatpush.bf16.msrb.mxu0 %v2707_v29  ;;  %v2465_v29 = vld [vmem:[%s3678_s0 + $0x15c] sm:$0xf0] }
  0xaf   :  { %v499_v63 = vadd.f32 %v498_v60, %v456_v55  ;;  %v458_v8 = vpop.f32.mrf.mxu1  ;;  %v416_v25 = vadd.f32 %v2977_v5, %v415_v7  ;;  %1600 = vmatpush.bf16.msrb.mxu1 %v2727_v34  ;;  %v2104_v3 = vor.u32 %v2465_v29, %v2103_v26  ;;  %v2113_v55 = vld [vmem:[%s3678_s0 + $0x168] sm:$0xf0]  ;;  %v2035_v7 = vld [vmem:[%s3678_s0 + $0x190] sm:$0xff] }
  0xb0   :  { %v2116_v60 = vor.u32 %v2464_v17, %v2113_v55 }
  0xb1   :  { %v3027_v23 = vadd.f32 %v2956_v19, %v499_v63  ;;  %v459_v27 = vadd.f32 %v458_v8, %v416_v25  ;;  %822 = vmatmul.bf16.gmra.mxu0 %v2076_v61  ;;  %v2096_v19 = vor.u32 %v2462_v38, %v2095_v37 }
  0xb2   :  { %865 = vmatmul.bf16.gmra.mxu1 %v2080_v62  ;;  %v551_v0 = vpop.f32.mrf.mxu3 }
  0xb3   :  { %2135 = vmatmul.msk.bf16.gmra.mxu2 %vm379_vm0, %v2084_v12  ;;  %v687_v12 = vunpack.c.l.b16 %v2035_v7 }
  0xb6   :  { %v501_v30 = vpop.f32.mrf.mxu2  ;;  %v417_v32 = vpop.f32.mrf.mxu0 }
  0xb7   :  { %v502_v31 = vadd.f32 %v501_v30, %v459_v27  ;;  %v460_v34 = vpop.f32.mrf.mxu1  ;;  %v418_v33 = vadd.f32 %v2977_v5, %v417_v32  ;;  %789 = vmatmul.bf16.gmra.mxu3 %v2104_v3  ;;  %v2127_v3 = vld [vmem:[%s3678_s0 + $0x178] sm:$0xf] }
  0xb9   :  { %v3037_v35 = vadd.f32 %v544_v48, %v502_v31  ;;  %v461_v36 = vadd.f32 %v460_v34, %v418_v33  ;;  %v715_v31 = vpack.c.b16 %v687_v12, %v687_v12  ;;  %v2467_v33 = vld [vmem:[%s3678_s0 + $0x174] sm:$0xf] }
  0xba   :  { %v554_v24 = vpop.f32.mrf.mxu3 }
  0xbe   :  { %v503_v16 = vpop.f32.mrf.mxu2  ;;  %v420_v1 = vpop.f32.mrf.mxu0 }
  0xbf   :  { %v504_v42 = vadd.f32 %v503_v16, %v461_v36  ;;  %v463_v2 = vpop.f32.mrf.mxu1  ;;  %v421_v4 = vadd.f32 %v2977_v5, %v420_v1  ;;  %v2470_v36 = vld [vmem:[%s3678_s0 + $0x184] sm:$0xf0] }
  0xc0   :  { %v2128_v39 = vor.u32 %v2470_v36, %v2127_v3  ;;  %v2472_v3 = vld [vmem:[%s3678_s0 + $0x1ac] sm:$0xf]  ;;  %v2178_v36 = vld [vmem:[%s3678_s0 + $0x1b8] sm:$0xf0] }
  0xc1   :  { %v3058_v28 = vadd.f32 %v546_v54, %v504_v42  ;;  %v464_v43 = vadd.f32 %v463_v2, %v421_v4  ;;  %827 = vmatmul.bf16.gmra.mxu0 %v2092_v41  ;;  %v2466_v54 = vld [vmem:[%s3678_s0 + $0x164] sm:$0xf0]  ;;  %v2168_v4 = vld [vmem:[%s3678_s0 + $0x1a0] sm:$0xf] }
  0xc2   :  { %870 = vmatmul.bf16.gmra.mxu1 %v2096_v19  ;;  %v556_v11 = vpop.f32.mrf.mxu3  ;;  %v2112_v20 = vor.u32 %v2466_v54, %v2111_v53  ;;  %v2132_v19 = vor.u32 %v2468_v9, %v2129_v13 }
  0xc3   :  { %2136 = vmatmul.msk.bf16.gmra.mxu2 %vm379_vm0, %v2100_v6 }
  0xc6   :  { %v506_v10 = vpop.f32.mrf.mxu2  ;;  %v422_v47 = vpop.f32.mrf.mxu0 }
  0xc7   :  { %v507_v46 = vadd.f32 %v506_v10, %v464_v43  ;;  %v465_v48 = vpop.f32.mrf.mxu1  ;;  %v423_v49 = vadd.f32 %v2977_v5, %v422_v47  ;;  %794 = vmatmul.bf16.gmra.mxu3 %v2120_v14 }
  0xc9   :  { %v3068_v50 = vadd.f32 %v549_v22, %v507_v46  ;;  %v466_v51 = vadd.f32 %v465_v48, %v423_v49  ;;  %v2036_v46 = vld [vmem:[%s3678_s0 + $0x198] sm:$0xff] }
  0xca   :  { %v559_v62 = vpop.f32.mrf.mxu3  ;;  %v689_v15 = vunpack.c.l.b16 %v2036_v46  ;;  %v690_v52 = vunpack.c.h.b16 %v2036_v46 }
  0xcc   :  { %v717_v17 = vpack.c.b16 %v689_v15, %v689_v15 }
  0xce   :  { %v508_v56 = vpop.f32.mrf.mxu2  ;;  %v425_v21 = vpop.f32.mrf.mxu0 }
  0xcf   :  { %v509_v58 = vadd.f32 %v508_v56, %v466_v51  ;;  %v468_v59 = vpop.f32.mrf.mxu1  ;;  %v426_v61 = vadd.f32 %v2977_v5, %v425_v21  ;;  %v688_v51 = vunpack.c.h.b16 %v2035_v7 }
  0xd1   :  { %v3089_v63 = vadd.f32 %v551_v0, %v509_v58  ;;  %v469_v8 = vadd.f32 %v468_v59, %v426_v61  ;;  %832 = vmatmul.bf16.gmra.mxu0 %v2108_v57  ;;  %v2121_v0 = vld [vmem:[%s3678_s0 + $0x180] sm:$0xf0]  ;;  %v716_v54 = vpack.c.b16 %v688_v51, %v688_v51  ;;  %v2184_v61 = vld [vmem:[%s3678_s0 + $0x1c0] sm:$0xf]  ;;  %v2478_v51 = vld [vmem:[%s3678_s0 + $0x1d4] sm:$0xf0] }
  0xd2   :  { %875 = vmatmul.bf16.gmra.mxu1 %v2112_v20  ;;  %v561_v30 = vpop.f32.mrf.mxu3  ;;  %v2124_v38 = vor.u32 %v2467_v33, %v2121_v0  ;;  %v718_v20 = vpack.c.b16 %v690_v52, %v690_v52  ;;  %v2176_v33 = vld [vmem:[%s3678_s0 + $0x1a8] sm:$0xf]  ;;  %v2474_v0 = vld [vmem:[%s3678_s0 + $0x1b4] sm:$0xf0]  ;;  %v2476_v52 = vld [vmem:[%s3678_s0 + $0x1cc] sm:$0xf] }
  0xd3   :  { %2137 = vmatmul.msk.bf16.gmra.mxu2 %vm379_vm0, %v2116_v60 }
  0xd6   :  { %v511_v25 = vpop.f32.mrf.mxu2  ;;  %v427_v27 = vpop.f32.mrf.mxu0 }
  0xd7   :  { %v512_v22 = vadd.f32 %v511_v25, %v469_v8  ;;  %v470_v26 = vpop.f32.mrf.mxu1  ;;  %v428_v29 = vadd.f32 %v2977_v5, %v427_v27  ;;  %799 = vmatmul.bf16.gmra.mxu3 %v715_v31  ;;  %v2471_v31 = vld [vmem:[%s3678_s0 + $0x1a4] sm:$0xf] }
  0xd9   :  { %v3096_v32 = vadd.f32 %v554_v24, %v512_v22  ;;  %v471_v34 = vadd.f32 %v470_v26, %v428_v29  ;;  %v2473_v24 = vld [vmem:[%s3678_s0 + $0x1ac] sm:$0xf0] }
  0xda   :  { %v564_v1 = vpop.f32.mrf.mxu3  ;;  %v2169_v49 = vor.u32 %v2473_v24, %v2168_v4  ;;  %v2481_v4 = vld [vmem:[%s3678_s0 + $0x1ec] sm:$0xf0] }
  0xde   :  { %v513_v37 = vpop.f32.mrf.mxu2  ;;  %v430_v16 = vpop.f32.mrf.mxu0 }
  0xdf   :  { %v514_v40 = vadd.f32 %v513_v37, %v471_v34  ;;  %v473_v41 = vpop.f32.mrf.mxu1  ;;  %v431_v42 = vadd.f32 %v2977_v5, %v430_v16  ;;  %v2170_v34 = vld [vmem:[%s3678_s0 + $0x1b0] sm:$0xf0]  ;;  %v2177_v37 = vor.u32 %v2474_v0, %v2176_v33  ;;  %v2181_v16 = vor.u32 %v2472_v3, %v2178_v36  ;;  %v2479_v0 = vld [vmem:[%s3678_s0 + $0x1e4] sm:$0xf] }
  0xe0   :  { %v2173_v13 = vor.u32 %v2471_v31, %v2170_v34  ;;  %v573_v31 = vmax.f32 %v3001_v18, 0.0  ;;  %v2202_v36 = vld [vmem:[%s3678_s0 + $0x1f0] sm:$0xf0]  ;;  %v2482_v18 = vld [vmem:[%s3678_s0 + $0x1f4] sm:$0xf0] }
  0xe1   :  { %v3117_v2 = vadd.f32 %v556_v11, %v514_v40  ;;  %v474_v6 = vadd.f32 %v473_v41, %v431_v42  ;;  %837 = vmatmul.bf16.gmra.mxu0 %v2124_v38 }
  0xe2   :  { %880 = vmatmul.bf16.gmra.mxu1 %v2128_v39  ;;  %v566_v48 = vpop.f32.mrf.mxu3 }
  0xe3   :  { %2138 = vmatmul.msk.bf16.gmra.mxu2 %vm379_vm0, %v2132_v19 }
  0xe6   :  { %v516_v43 = vpop.f32.mrf.mxu2  ;;  %v432_v45 = vpop.f32.mrf.mxu0 }
  0xe7   :  { %v517_v44 = vadd.f32 %v516_v43, %v474_v6  ;;  %v475_v10 = vpop.f32.mrf.mxu1  ;;  %v433_v47 = vadd.f32 %v2977_v5, %v432_v45  ;;  %1142 = vmatmul.bf16.vlgmr.msra.gmra.mxu3 %v2169_v49  ;;  %v2200_v6 = vld [vmem:[%s3678_s0 + $0x1e0] sm:$0xf]  ;;  %v2186_v49 = vld [vmem:[%s3678_s0 + $0x1d0] sm:$0xf0] }
  0xe8   :  { %v2201_v46 = vor.u32 %v2481_v4, %v2200_v6 }
  0xe9   :  { %v3130_v11 = vadd.f32 %v559_v62, %v517_v44  ;;  %v476_v14 = vadd.f32 %v475_v10, %v433_v47  ;;  %v2477_v62 = vld [vmem:[%s3678_s0 + $0x1cc] sm:$0xf0] }
  0xea   :  { %v569_v21 = vpop.f32.mrf.mxu3  ;;  %v2185_v26 = vor.u32 %v2477_v62, %v2184_v61  ;;  %v2216_v61 = vld [vmem:[%s3678_s0 + $0x200] sm:$0xf]  ;;  %v2485_v62 = vld [vmem:[%s3678_s0 + $0x20c] sm:$0xf0] }
  0xee   :  { %v518_v53 = vpop.f32.mrf.mxu2  ;;  %v435_v56 = vpop.f32.mrf.mxu0 }
  0xef   :  { %v519_v55 = vadd.f32 %v518_v53, %v476_v14  ;;  %v478_v57 = vpop.f32.mrf.mxu1  ;;  %v436_v58 = vadd.f32 %v2977_v5, %v435_v56  ;;  %v2192_v14 = vld [vmem:[%s3678_s0 + $0x1c8] sm:$0xf]  ;;  %v2194_v53 = vld [vmem:[%s3678_s0 + $0x1d8] sm:$0xf0] }
  0xf1   :  { %v3133_v59 = vadd.f32 %v561_v30, %v519_v55  ;;  %v479_v60 = vadd.f32 %v478_v57, %v436_v58  ;;  %842 = vmatmul.bf16.gmra.mxu0 %v716_v54  ;;  %v2193_v55 = vor.u32 %v2478_v51, %v2192_v14 }
  0xf2   :  { %885 = vmatmul.bf16.gmra.mxu1 %v717_v17  ;;  %v571_v27 = vpop.f32.mrf.mxu3 }
  0xf3   :  { %2139 = vmatmul.msk.bf16.gmra.mxu2 %vm379_vm0, %v718_v20  ;;  %v2197_v20 = vor.u32 %v2476_v52, %v2194_v53 }
  0xf6   :  { %v521_v7 = vpop.f32.mrf.mxu2  ;;  %v437_v12 = vpop.f32.mrf.mxu0 }
  0xf7   :  { %v522_v8 = vadd.f32 %v521_v7, %v479_v60  ;;  %v480_v25 = vpop.f32.mrf.mxu1  ;;  %v438_v22 = vadd.f32 %v2977_v5, %v437_v12  ;;  %1147 = vmatmul.bf16.gmra.mxu3 %v2185_v26 }
  0xf9   :  { %v3143_v29 = vadd.f32 %v564_v1, %v522_v8  ;;  %v481_v30 = vadd.f32 %v480_v25, %v438_v22 }
  0xfa   :  { %v770_v19 = vpop.f32.mrf.mxu3 }
  0xfb   :  { %v771_v15 = vadd.f32 %v2977_v5, %v770_v19 }
  0xfe   :  { %v523_v9 = vpop.f32.mrf.mxu2  ;;  %v440_v39 = vpop.f32.mrf.mxu0 }
  0xff   :  { %v524_v38 = vadd.f32 %v523_v9, %v481_v30  ;;  %v483_v40 = vpop.f32.mrf.mxu1  ;;  %v441_v41 = vadd.f32 %v2977_v5, %v440_v39  ;;  %v2217_v30 = vor.u32 %v2485_v62, %v2216_v61  ;;  %v2208_v9 = vld [vmem:[%s3678_s0 + $0x1e8] sm:$0xf]  ;;  %v2484_v61 = vld [vmem:[%s3678_s0 + $0x20c] sm:$0xf]  ;;  %v2226_v62 = vld [vmem:[%s3678_s0 + $0x218] sm:$0xf0] }
 0x101   :  { %v3164_v42 = vadd.f32 %v566_v48, %v524_v38  ;;  %v484_v1 = vadd.f32 %v483_v40, %v441_v41  ;;  %1185 = vmatmul.bf16.vlgmr.msra.gmra.mxu0 %v2173_v13  ;;  %v2475_v48 = vld [vmem:[%s3678_s0 + $0x1c4] sm:$0xf]  ;;  %v2210_v38 = vld [vmem:[%s3678_s0 + $0x1f8] sm:$0xf0]  ;;  %v2205_v40 = vor.u32 %v2479_v0, %v2202_v36 }
 0x102   :  { %1228 = vmatmul.bf16.vlgmr.msra.gmra.mxu1 %v2177_v37  ;;  %v772_v10 = vpop.f32.mrf.mxu3  ;;  %v2189_v17 = vor.u32 %v2475_v48, %v2186_v49  ;;  %v2480_v37 = vld [vmem:[%s3678_s0 + $0x1ec] sm:$0xf]  ;;  %v2489_v48 = vld [vmem:[%s3678_s0 + $0x22c] sm:$0xf0] }
 0x103   :  { %2262 = vmatmul.msk.bf16.vlgmr.msra.gmra.mxu2 %vm379_vm0, %v2181_v16  ;;  %v773_v7 = vadd.f32 %v2977_v5, %v772_v10  ;;  %v2209_v16 = vor.u32 %v2482_v18, %v2208_v9  ;;  %v2213_v6 = vor.u32 %v2480_v37, %v2210_v38  ;;  %v2248_v9 = vld [vmem:[%s3678_s0 + $0x240] sm:$0xf]  ;;  %v2493_v18 = vld [vmem:[%s3678_s0 + $0x24c] sm:$0xf0] }
 0x106   :  { %v526_v24 = vpop.f32.mrf.mxu2  ;;  %v442_v44 = vpop.f32.mrf.mxu0 }
 0x107   :  { %v527_v43 = vadd.f32 %v526_v24, %v484_v1  ;;  %v485_v45 = vpop.f32.mrf.mxu1  ;;  %1152 = vmatmul.bf16.gmra.mxu3 %v2201_v46  ;;  %v2232_v46 = vld [vmem:[%s3678_s0 + $0x220] sm:$0xf] }
 0x109   :  { %v3173_v47 = vadd.f32 %v569_v21, %v527_v43  ;;  %v574_v43 = vmax.f32 %v3027_v23, 0.0 }
 0x10a   :  { %v775_v21 = vpop.f32.mrf.mxu3 }
 0x10b   :  { %v776_v13 = vadd.f32 %v2977_v5, %v775_v21  ;;  %v2224_v21 = vld [vmem:[%s3678_s0 + $0x208] sm:$0xf] }
 0x10e   :  { %v528_v54 = vpop.f32.mrf.mxu2  ;;  %v813_v56 = vpop.f32.mrf.mxu0 }
 0x10f   :  { %v856_v57 = vpop.f32.mrf.mxu1  ;;  %v814_v58 = vadd.f32 %v813_v56, %v771_v15  ;;  %v2233_v54 = vor.u32 %v2489_v48, %v2232_v46  ;;  %v2488_v46 = vld [vmem:[%s3678_s0 + $0x22c] sm:$0xf]  ;;  %v2242_v48 = vld [vmem:[%s3678_s0 + $0x238] sm:$0xf0] }
 0x111   :  { %v857_v60 = vadd.f32 %v856_v57, %v814_v58  ;;  %1190 = vmatmul.bf16.gmra.mxu0 %v2189_v17  ;;  %v575_v17 = vmax.f32 %v3037_v35, 0.0  ;;  %v2483_v57 = vld [vmem:[%s3678_s0 + $0x204] sm:$0xf]  ;;  %v2218_v58 = vld [vmem:[%s3678_s0 + $0x210] sm:$0xf0] }
 0x112   :  { %1233 = vmatmul.bf16.gmra.mxu1 %v2193_v55  ;;  %v777_v26 = vpop.f32.mrf.mxu3  ;;  %v2486_v35 = vld [vmem:[%s3678_s0 + $0x214] sm:$0xf0] }
 0x113   :  { %2263 = vmatmul.msk.bf16.gmra.mxu2 %vm379_vm0, %v2197_v20  ;;  %v778_v49 = vadd.f32 %v2977_v5, %v777_v26  ;;  %v2229_v26 = vor.u32 %v2484_v61, %v2226_v62 }
 0x116   :  { %v899_v8 = vpop.f32.mrf.mxu2  ;;  %v815_v25 = vpop.f32.mrf.mxu0 }
 0x117   :  { %v900_v12 = vadd.f32 %v899_v8, %v857_v60  ;;  %v858_v22 = vpop.f32.mrf.mxu1  ;;  %v816_v27 = vadd.f32 %v815_v25, %v773_v7  ;;  %1157 = vmatmul.bf16.gmra.mxu3 %v2217_v30  ;;  %v2221_v8 = vor.u32 %v2483_v57, %v2218_v58  ;;  %v3294_v57 = vld [vmem:[%s3678_s0 + $0x260] sm:$0xff] }
 0x119   :  { %v933_v34 = vmax.f32 %v900_v12, 0.0  ;;  %v859_v33 = vadd.f32 %v858_v22, %v816_v27  ;;  %v2225_v12 = vor.u32 %v2486_v35, %v2224_v21  ;;  %v1060_v35 = vunpack.c.l.b16 %v3294_v57 }
 0x11a   :  { %v780_v24 = vpop.f32.mrf.mxu3 }
 0x11b   :  { %v3206_v3 = vmax.f32 %v573_v31, %v933_v34  ;;  %v781_v60 = vadd.f32 %v2977_v5, %v780_v24  ;;  %v576_v34 = vmax.f32 %v3058_v28, 0.0 }
 0x11e   :  { %v901_v39 = vpop.f32.mrf.mxu2  ;;  %v818_v19 = vpop.f32.mrf.mxu0 }
 0x11f   :  { %v902_v41 = vadd.f32 %v901_v39, %v859_v33  ;;  %v861_v1 = vpop.f32.mrf.mxu1  ;;  %v819_v4 = vadd.f32 %v818_v19, %v776_v13  ;;  %v577_v19 = vmax.f32 %v3068_v50, 0.0  ;;  %v2490_v50 = vld [vmem:[%s3678_s0 + $0x234] sm:$0xf0] }
 0x121   :  { %v934_v44 = vmax.f32 %v902_v41, 0.0  ;;  %v862_v45 = vadd.f32 %v861_v1, %v819_v4  ;;  %1195 = vmatmul.bf16.gmra.mxu0 %v2205_v40  ;;  %v2249_v41 = vor.u32 %v2493_v18, %v2248_v9  ;;  %v2487_v4 = vld [vmem:[%s3678_s0 + $0x224] sm:$0xf]  ;;  %v2492_v9 = vld [vmem:[%s3678_s0 + $0x24c] sm:$0xf] }
 0x122   :  { %1238 = vmatmul.bf16.gmra.mxu1 %v2209_v16  ;;  %v782_v53 = vpop.f32.mrf.mxu3  ;;  %v2258_v18 = vld [vmem:[%s3678_s0 + $0x258] sm:$0xf0] }
 0x123   :  { %v3225_v10 = vmax.f32 %v574_v43, %v934_v44  ;;  %2264 = vmatmul.msk.bf16.gmra.mxu2 %vm379_vm0, %v2213_v6  ;;  %v783_v13 = vadd.f32 %v2977_v5, %v782_v53  ;;  %v2234_v43 = vld [vmem:[%s3678_s0 + $0x230] sm:$0xf0]  ;;  %v2240_v44 = vld [vmem:[%s3678_s0 + $0x228] sm:$0xf]  ;;  %v2245_v53 = vor.u32 %v2488_v46, %v2242_v48 }
 0x126   :  { %v904_v14 = vpop.f32.mrf.mxu2  ;;  %v820_v51 = vpop.f32.mrf.mxu0 }
 0x127   :  { %v905_v23 = vadd.f32 %v904_v14, %v862_v45  ;;  %v863_v15 = vpop.f32.mrf.mxu1  ;;  %v821_v52 = vadd.f32 %v820_v51, %v778_v49  ;;  %1162 = vmatmul.bf16.gmra.mxu3 %v2233_v54  ;;  %v2237_v14 = vor.u32 %v2487_v4, %v2234_v43 }
 0x129   :  { %v935_v55 = vmax.f32 %v905_v23, 0.0  ;;  %v864_v56 = vadd.f32 %v863_v15, %v821_v52  ;;  %v2241_v23 = vor.u32 %v2490_v50, %v2240_v44  ;;  %v2297_v44 = vld [vmem:[%s3678_s0 + $0x270] sm:$0xf]  ;;  %v2497_v50 = vld [vmem:[%s3678_s0 + $0x27c] sm:$0xf0] }
 0x12a   :  { %v785_v31 = vpop.f32.mrf.mxu3 }
 0x12b   :  { %v3239_v20 = vmax.f32 %v575_v17, %v935_v55  ;;  %v786_v45 = vadd.f32 %v2977_v5, %v785_v31  ;;  %v578_v55 = vmax.f32 %v3089_v63, 0.0 }
 0x12e   :  { %v906_v7 = vpop.f32.mrf.mxu2  ;;  %v823_v22 = vpop.f32.mrf.mxu0 }
 0x12f   :  { %v907_v25 = vadd.f32 %v906_v7, %v864_v56  ;;  %v866_v27 = vpop.f32.mrf.mxu1  ;;  %v824_v30 = vadd.f32 %v823_v22, %v781_v60  ;;  %v579_v22 = vmax.f32 %v3096_v32, 0.0  ;;  %v2494_v32 = vld [vmem:[%s3678_s0 + $0x254] sm:$0xf0] }
 0x131   :  { %v936_v33 = vmax.f32 %v907_v25, 0.0  ;;  %v867_v0 = vadd.f32 %v866_v27, %v824_v30  ;;  %1200 = vmatmul.bf16.gmra.mxu0 %v2221_v8  ;;  %v1088_v25 = vpack.c.b16 %v1060_v35, %v1060_v35  ;;  %v2491_v30 = vld [vmem:[%s3678_s0 + $0x244] sm:$0xf] }
 0x132   :  { %1243 = vmatmul.bf16.gmra.mxu1 %v2225_v12  ;;  %v787_v16 = vpop.f32.mrf.mxu3 }
 0x133   :  { %v3258_v36 = vmax.f32 %v576_v34, %v936_v33  ;;  %2265 = vmatmul.msk.bf16.gmra.mxu2 %vm379_vm0, %v2229_v26  ;;  %v788_v60 = vadd.f32 %v2977_v5, %v787_v16  ;;  %v2250_v34 = vld [vmem:[%s3678_s0 + $0x250] sm:$0xf0]  ;;  %v2256_v33 = vld [vmem:[%s3678_s0 + $0x248] sm:$0xf]  ;;  %v2261_v16 = vor.u32 %v2492_v9, %v2258_v18 }
 0x136   :  { %v909_v37 = vpop.f32.mrf.mxu2  ;;  %v825_v38 = vpop.f32.mrf.mxu0 }
 0x137   :  { %v910_v28 = vadd.f32 %v909_v37, %v867_v0  ;;  %v868_v39 = vpop.f32.mrf.mxu1  ;;  %v826_v40 = vadd.f32 %v825_v38, %v783_v13  ;;  %1167 = vmatmul.bf16.gmra.mxu3 %v2249_v41  ;;  %v2253_v37 = vor.u32 %v2491_v30, %v2250_v34  ;;  %v2313_v30 = vld [vmem:[%s3678_s0 + $0x290] sm:$0xf]  ;;  %v2501_v34 = vld [vmem:[%s3678_s0 + $0x29c] sm:$0xf0] }
 0x139   :  { %v937_v1 = vmax.f32 %v910_v28, 0.0  ;;  %v869_v6 = vadd.f32 %v868_v39, %v826_v40  ;;  %v2257_v28 = vor.u32 %v2494_v32, %v2256_v33 }
 0x13a   :  { %v790_v17 = vpop.f32.mrf.mxu3 }
 0x13b   :  { %v3272_v24 = vmax.f32 %v577_v19, %v937_v1  ;;  %v791_v0 = vadd.f32 %v2977_v5, %v790_v17  ;;  %v580_v1 = vmax.f32 %v3117_v2, 0.0  ;;  %v1061_v17 = vunpack.c.h.b16 %v3294_v57 }
 0x13e   :  { %v911_v49 = vpop.f32.mrf.mxu2  ;;  %v828_v15 = vpop.f32.mrf.mxu0 }
 0x13f   :  { %v912_v51 = vadd.f32 %v911_v49, %v869_v6  ;;  %v871_v52 = vpop.f32.mrf.mxu1  ;;  %v829_v54 = vadd.f32 %v828_v15, %v786_v45  ;;  %v2298_v15 = vor.u32 %v2497_v50, %v2297_v44 }
 0x141   :  { %v938_v56 = vmax.f32 %v912_v51, 0.0  ;;  %v872_v58 = vadd.f32 %v871_v52, %v829_v54  ;;  %1205 = vmatmul.bf16.gmra.mxu0 %v2237_v14  ;;  %v2165_v14 = vld [vmem:[%s3678_s0 + $0x268] sm:$0xff]  ;;  %v581_v52 = vmax.f32 %v3130_v11, 0.0 }
 0x142   :  { %1248 = vmatmul.bf16.gmra.mxu1 %v2241_v23  ;;  %v792_v12 = vpop.f32.mrf.mxu3 }
 0x143   :  { %v3296_v21 = vmax.f32 %v578_v55, %v938_v56  ;;  %2266 = vmatmul.msk.bf16.gmra.mxu2 %vm379_vm0, %v2245_v53  ;;  %v793_v45 = vadd.f32 %v2977_v5, %v792_v12  ;;  %v1062_v55 = vunpack.c.l.b16 %v2165_v14 }
 0x146   :  { %v914_v61 = vpop.f32.mrf.mxu2  ;;  %v830_v63 = vpop.f32.mrf.mxu0 }
 0x147   :  { %v915_v62 = vadd.f32 %v914_v61, %v872_v58  ;;  %v873_v7 = vpop.f32.mrf.mxu1  ;;  %v831_v8 = vadd.f32 %v830_v63, %v788_v60  ;;  %1172 = vmatmul.bf16.gmra.mxu3 %v1088_v25  ;;  %v1063_v58 = vunpack.c.h.b16 %v2165_v14  ;;  %v1089_v61 = vpack.c.b16 %v1061_v17, %v1061_v17  ;;  %v2505_v17 = vld [vmem:[%s3678_s0 + $0x2bc] sm:$0xf0] }
 0x149   :  { %v939_v27 = vmax.f32 %v915_v62, 0.0  ;;  %v874_v26 = vadd.f32 %v873_v7, %v831_v8  ;;  %v1090_v62 = vpack.c.b16 %v1062_v55, %v1062_v55  ;;  %v1091_v12 = vpack.c.b16 %v1063_v58, %v1063_v58 }
 0x14a   :  { %v795_v19 = vpop.f32.mrf.mxu3 }
 0x14b   :  { %v3305_v31 = vmax.f32 %v579_v22, %v939_v27  ;;  %v796_v35 = vadd.f32 %v2977_v5, %v795_v19  ;;  %v582_v22 = vmax.f32 %v3133_v59, 0.0  ;;  %v2305_v19 = vld [vmem:[%s3678_s0 + $0x278] sm:$0xf] }
 0x14e   :  { %v916_v13 = vpop.f32.mrf.mxu2  ;;  %v833_v39 = vpop.f32.mrf.mxu0 }
 0x14f   :  { %v917_v38 = vadd.f32 %v916_v13, %v874_v26  ;;  %v876_v40 = vpop.f32.mrf.mxu1  ;;  %v834_v41 = vadd.f32 %v833_v39, %v791_v0 }
 0x151   :  { %v940_v6 = vmax.f32 %v917_v38, 0.0  ;;  %v877_v4 = vadd.f32 %v876_v40, %v834_v41  ;;  %1210 = vmatmul.bf16.gmra.mxu0 %v2253_v37  ;;  %v2314_v37 = vor.u32 %v2501_v34, %v2313_v30  ;;  %v2495_v40 = vld [vmem:[%s3678_s0 + $0x274] sm:$0xf]  ;;  %v2299_v41 = vld [vmem:[%s3678_s0 + $0x280] sm:$0xf0] }
 0x152   :  { %1253 = vmatmul.bf16.gmra.mxu1 %v2257_v28  ;;  %v797_v51 = vpop.f32.mrf.mxu3  ;;  %v583_v28 = vmax.f32 %v3143_v29, 0.0  ;;  %v2498_v29 = vld [vmem:[%s3678_s0 + $0x284] sm:$0xf0]  ;;  %v2302_v50 = vor.u32 %v2495_v40, %v2299_v41 }
 0x153   :  { %v3324_v43 = vmax.f32 %v580_v1, %v940_v6  ;;  %2267 = vmatmul.msk.bf16.gmra.mxu2 %vm379_vm0, %v2261_v16  ;;  %v798_v33 = vadd.f32 %v2977_v5, %v797_v51  ;;  %v2496_v6 = vld [vmem:[%s3678_s0 + $0x27c] sm:$0xf]  ;;  %v584_v51 = vmax.f32 %v3164_v42, 0.0 }
 0x156   :  { %v919_v46 = vpop.f32.mrf.mxu2  ;;  %v835_v48 = vpop.f32.mrf.mxu0 }
 0x157   :  { %v920_v2 = vadd.f32 %v919_v46, %v877_v4  ;;  %v878_v49 = vpop.f32.mrf.mxu1  ;;  %v836_v23 = vadd.f32 %v835_v48, %v793_v45  ;;  %1515 = vmatmul.bf16.vlgmr.msrb.gmra.mxu3 %v2298_v15  ;;  %v2307_v4 = vld [vmem:[%s3678_s0 + $0x288] sm:$0xf0]  ;;  %v2306_v45 = vor.u32 %v2498_v29, %v2305_v19 }
 0x159   :  { %v941_v53 = vmax.f32 %v920_v2, 0.0  ;;  %v879_v54 = vadd.f32 %v878_v49, %v836_v23  ;;  %v2310_v49 = vor.u32 %v2496_v6, %v2307_v4 }
 0x15a   :  { %v800_v11 = vpop.f32.mrf.mxu3 }
 0x15b   :  { %v3339_v56 = vmax.f32 %v581_v52, %v941_v53  ;;  %v801_v1 = vadd.f32 %v2977_v5, %v800_v11  ;;  %v2502_v11 = vld [vmem:[%s3678_s0 + $0x2a4] sm:$0xf0] }
 0x15e   :  { %v921_v60 = vpop.f32.mrf.mxu2  ;;  %v838_v7 = vpop.f32.mrf.mxu0 }
 0x15f   :  { %v922_v63 = vadd.f32 %v921_v60, %v879_v54  ;;  %v881_v8 = vpop.f32.mrf.mxu1  ;;  %v839_v25 = vadd.f32 %v838_v7, %v796_v35  ;;  %v2329_v54 = vld [vmem:[%s3678_s0 + $0x2b0] sm:$0xf]  ;;  %v2499_v7 = vld [vmem:[%s3678_s0 + $0x294] sm:$0xf] }
 0x161   :  { %v942_v27 = vmax.f32 %v922_v63, 0.0  ;;  %v882_v57 = vadd.f32 %v881_v8, %v839_v25  ;;  %1215 = vmatmul.bf16.gmra.mxu0 %v1089_v61  ;;  %v2330_v61 = vor.u32 %v2505_v17, %v2329_v54  ;;  %v2315_v8 = vld [vmem:[%s3678_s0 + $0x2a0] sm:$0xf0]  ;;  %v2321_v25 = vld [vmem:[%s3678_s0 + $0x298] sm:$0xf] }
 0x162   :  { %1258 = vmatmul.bf16.gmra.mxu1 %v1090_v62  ;;  %v802_v13 = vpop.f32.mrf.mxu3  ;;  %v585_v62 = vmax.f32 %v3173_v47, 0.0  ;;  %v2318_v30 = vor.u32 %v2499_v7, %v2315_v8  ;;  %v2322_v34 = vor.u32 %v2502_v11, %v2321_v25 }
 0x163   :  { %v3343_v26 = vmax.f32 %v582_v22, %v942_v27  ;;  %2268 = vmatmul.msk.bf16.gmra.mxu2 %vm379_vm0, %v1091_v12  ;;  %v2500_v22 = vld [vmem:[%s3678_s0 + $0x29c] sm:$0xf]  ;;  %v2323_v27 = vld [vmem:[%s3678_s0 + $0x2a8] sm:$0xf0]  ;;  %v2345_v13 = vld [vmem:[%s3678_s0 + $0x2d0] sm:$0xf] }
 0x166   :  { %v924_v32 = vpop.f32.mrf.mxu2  ;;  %v840_v0 = vpop.f32.mrf.mxu0 }
 0x167   :  { %v925_v59 = vadd.f32 %v924_v32, %v882_v57  ;;  %v883_v9 = vpop.f32.mrf.mxu1  ;;  %v841_v18 = vadd.f32 %v840_v0, %v798_v33  ;;  %1520 = vmatmul.bf16.gmra.mxu3 %v2314_v37  ;;  %v2509_v37 = vld [vmem:[%s3678_s0 + $0x2dc] sm:$0xf0] }
 0x169   :  { %v943_v38 = vmax.f32 %v925_v59, 0.0  ;;  %v884_v39 = vadd.f32 %v883_v9, %v841_v18  ;;  %v2326_v59 = vor.u32 %v2500_v22, %v2323_v27 }
 0x16a   :  { %v1143_v23 = vpop.f32.mrf.mxu3 }
 0x16b   :  { %v3357_v16 = vmax.f32 %v583_v28, %v943_v38  ;;  %v1144_v47 = vadd.f32 %v2977_v5, %v1143_v23 }
 0x16e   :  { %v926_v44 = vpop.f32.mrf.mxu2  ;;  %v843_v2 = vpop.f32.mrf.mxu0 }
 0x16f   :  { %v927_v46 = vadd.f32 %v926_v44, %v884_v39  ;;  %v886_v48 = vpop.f32.mrf.mxu1  ;;  %v844_v14 = vadd.f32 %v843_v2, %v801_v1  ;;  %v2346_v1 = vor.u32 %v2509_v37, %v2345_v13  ;;  %v2503_v44 = vld [vmem:[%s3678_s0 + $0x2b4] sm:$0xf]  ;;  %v3433_v2 = vld [vmem:[%s3679_s2] ss:$0 sm:$0xff] }
 0x171   :  { %v944_v15 = vmax.f32 %v927_v46, 0.0  ;;  %v887_v52 = vadd.f32 %v886_v48, %v844_v14  ;;  %1558 = vmatmul.bf16.vlgmr.msrb.gmra.mxu0 %v2302_v50  ;;  %v2506_v46 = vld [vmem:[%s3678_s0 + $0x2c4] sm:$0xf0]  ;;  %v2504_v48 = vld [vmem:[%s3678_s0 + $0x2bc] sm:$0xf] }
 0x172   :  { %1601 = vmatmul.bf16.vlgmr.msrb.gmra.mxu1 %v2306_v45  ;;  %v1145_v60 = vpop.f32.mrf.mxu3  ;;  %v2337_v45 = vld [vmem:[%s3678_s0 + $0x2b8] sm:$0xf] }
 0x173   :  { %v3376_v53 = vmax.f32 %v584_v51, %v944_v15  ;;  %2391 = vmatmul.msk.bf16.vlgmr.msrb.gmra.mxu2 %vm379_vm0, %v2310_v49  ;;  %v1146_v28 = vadd.f32 %v2977_v5, %v1145_v60  ;;  %v2331_v5 = vld [vmem:[%s3678_s0 + $0x2c0] sm:$0xf0]  ;;  %v2339_v49 = vld [vmem:[%s3678_s0 + $0x2c8] sm:$0xf0]  ;;  %v2338_v51 = vor.u32 %v2506_v46, %v2337_v45 }
 0x174   :  { %v2334_v23 = vor.u32 %v2503_v44, %v2331_v5  ;;  %v2342_v17 = vor.u32 %v2504_v48, %v2339_v49  ;;  %v2517_v44 = vld [vmem:[%s3678_s0 + $0x31c] sm:$0xf0] }
 0x176   :  { %v929_v55 = vpop.f32.mrf.mxu2  ;;  %v845_v35 = vpop.f32.mrf.mxu0 }
 0x177   :  { %v930_v58 = vadd.f32 %v929_v55, %v887_v52  ;;  %v888_v42 = vpop.f32.mrf.mxu1  ;;  %1525 = vmatmul.bf16.gmra.mxu3 %v2330_v61  ;;  %v2361_v61 = vld [vmem:[%s3678_s0 + $0x2f0] sm:$0xf] }
 0x179   :  { %v945_v63 = vmax.f32 %v930_v58, 0.0 }
 0x17a   :  { %v1148_v9 = vpop.f32.mrf.mxu3 }
 0x17b   :  { %v3392_v12 = vmax.f32 %v585_v62, %v945_v63  ;;  %v2513_v62 = vld [vmem:[%s3678_s0 + $0x2fc] sm:$0xf0] }
 0x17e   :  { %v931_v57 = vpop.f32.mrf.mxu2  ;;  %v1186_v33 = vpop.f32.mrf.mxu0 }
 0x17f   :  { %v1229_v32 = vpop.f32.mrf.mxu1  ;;  %v1187_v0 = vadd.f32 %v1186_v33, %v1144_v47  ;;  %v2347_v33 = vld [vmem:[%s3678_s0 + $0x2e0] sm:$0xf0] }
 0x181   :  { %v1230_v18 = vadd.f32 %v1229_v32, %v1187_v0  ;;  %1563 = vmatmul.bf16.gmra.mxu0 %v2318_v30  ;;  %v2507_v30 = vld [vmem:[%s3678_s0 + $0x2d4] sm:$0xf]  ;;  %v2353_v32 = vld [vmem:[%s3678_s0 + $0x2d8] sm:$0xf] }
 0x182   :  { %1606 = vmatmul.bf16.gmra.mxu1 %v2322_v34  ;;  %v1150_v29 = vpop.f32.mrf.mxu3  ;;  %v2350_v13 = vor.u32 %v2507_v30, %v2347_v33 }
 0x183   :  { %2392 = vmatmul.msk.bf16.gmra.mxu2 %vm379_vm0, %v2326_v59  ;;  %v1151_v63 = vadd.f32 %v3433_v2, %v1150_v29  ;;  %v2510_v59 = vld [vmem:[%s3678_s0 + $0x2e4] sm:$0xf0] }
 0x184   :  { %v2354_v37 = vor.u32 %v2510_v59, %v2353_v32 }
 0x186   :  { %v1272_v38 = vpop.f32.mrf.mxu2  ;;  %v1188_v40 = vpop.f32.mrf.mxu0 }
 0x187   :  { %v1273_v39 = vadd.f32 %v1272_v38, %v1230_v18  ;;  %v1231_v41 = vpop.f32.mrf.mxu1  ;;  %v1189_v19 = vadd.f32 %v1188_v40, %v1146_v28  ;;  %1530 = vmatmul.bf16.gmra.mxu3 %v2346_v1 }
 0x189   :  { %v1306_v6 = vmax.f32 %v1273_v39, 0.0  ;;  %v1232_v4 = vadd.f32 %v1231_v41, %v1189_v19 }
 0x18a   :  { %v1153_v58 = vpop.f32.mrf.mxu3 }
 0x18b   :  { %v3419_v50 = vmax.f32 %v3206_v3, %v1306_v6  ;;  %v1149_v3 = vadd.f32 %v3433_v2, %v1148_v9  ;;  %v1154_v0 = vadd.f32 %v3433_v2, %v1153_v58  ;;  %v2508_v9 = vld [vmem:[%s3678_s0 + $0x2dc] sm:$0xf] }
 0x18e   :  { %v1274_v14 = vpop.f32.mrf.mxu2  ;;  %v1191_v52 = vpop.f32.mrf.mxu0 }
 0x18f   :  { %v1275_v15 = vadd.f32 %v1274_v14, %v1232_v4  ;;  %v1234_v54 = vpop.f32.mrf.mxu1  ;;  %v1192_v55 = vadd.f32 %v1191_v52, %v1149_v3  ;;  %v2377_v4 = vld [vmem:[%s3678_s0 + $0x310] sm:$0xf] }
 0x191   :  { %v1307_v35 = vmax.f32 %v1275_v15, 0.0  ;;  %v1235_v42 = vadd.f32 %v1234_v54, %v1192_v55  ;;  %1568 = vmatmul.bf16.gmra.mxu0 %v2334_v23  ;;  %v2511_v15 = vld [vmem:[%s3678_s0 + $0x2f4] sm:$0xf]  ;;  %v2363_v54 = vld [vmem:[%s3678_s0 + $0x300] sm:$0xf0] }
 0x192   :  { %1611 = vmatmul.bf16.gmra.mxu1 %v2338_v51  ;;  %v1155_v22 = vpop.f32.mrf.mxu3  ;;  %v2514_v55 = vld [vmem:[%s3678_s0 + $0x304] sm:$0xf0] }
 0x193   :  { %v3443_v60 = vmax.f32 %v3225_v10, %v1307_v35  ;;  %2393 = vmatmul.msk.bf16.gmra.mxu2 %vm379_vm0, %v2342_v17  ;;  %v2362_v10 = vor.u32 %v2513_v62, %v2361_v61  ;;  %v1156_v5 = vadd.f32 %v3433_v2, %v1155_v22  ;;  %v2369_v17 = vld [vmem:[%s3678_s0 + $0x2f8] sm:$0xf]  ;;  %v2512_v35 = vld [vmem:[%s3678_s0 + $0x2fc] sm:$0xf]  ;;  %v2366_v61 = vor.u32 %v2511_v15, %v2363_v54 }
 0x194   :  { %v2370_v62 = vor.u32 %v2514_v55, %v2369_v17 }
 0x196   :  { %v1277_v7 = vpop.f32.mrf.mxu2  ;;  %v1193_v25 = vpop.f32.mrf.mxu0 }
 0x197   :  { %v1278_v8 = vadd.f32 %v1277_v7, %v1235_v42  ;;  %v1236_v11 = vpop.f32.mrf.mxu1  ;;  %v1194_v47 = vadd.f32 %v1193_v25, %v1151_v63  ;;  %1535 = vmatmul.bf16.gmra.mxu3 %v2362_v10  ;;  %v2293_v10 = vld [vmem:[%s3678_s0 + $0x330] sm:$0xff] }
 0x198   :  { %v1433_v30 = vunpack.c.l.b16 %v2293_v10 }
 0x199   :  { %v1308_v27 = vmax.f32 %v1278_v8, 0.0  ;;  %v1237_v57 = vadd.f32 %v1236_v11, %v1194_v47 }
 0x19a   :  { %v1158_v19 = vpop.f32.mrf.mxu3 }
 0x19b   :  { %v3457_v34 = vmax.f32 %v3239_v20, %v1308_v27  ;;  %v2355_v20 = vld [vmem:[%s3678_s0 + $0x2e8] sm:$0xf0]  ;;  %v1159_v58 = vadd.f32 %v3433_v2, %v1158_v19 }
 0x19c   :  { %v2358_v40 = vor.u32 %v2508_v9, %v2355_v20 }
 0x19e   :  { %v1279_v18 = vpop.f32.mrf.mxu2  ;;  %v1196_v38 = vpop.f32.mrf.mxu0 }
 0x19f   :  { %v1280_v28 = vadd.f32 %v1279_v18, %v1237_v57  ;;  %v1239_v39 = vpop.f32.mrf.mxu1  ;;  %v1197_v41 = vadd.f32 %v1196_v38, %v1154_v0  ;;  %v2515_v38 = vld [vmem:[%s3678_s0 + $0x314] sm:$0xf] }
 0x1a1   :  { %v1309_v29 = vmax.f32 %v1280_v28, 0.0  ;;  %v1240_v1 = vadd.f32 %v1239_v39, %v1197_v41  ;;  %1573 = vmatmul.bf16.gmra.mxu0 %v2350_v13  ;;  %v1461_v13 = vpack.c.b16 %v1433_v30, %v1433_v30  ;;  %v2379_v39 = vld [vmem:[%s3678_s0 + $0x320] sm:$0xf0]  ;;  %v2518_v41 = vld [vmem:[%s3678_s0 + $0x324] sm:$0xf0] }
 0x1a2   :  { %1616 = vmatmul.bf16.gmra.mxu1 %v2354_v37  ;;  %v1160_v14 = vpop.f32.mrf.mxu3 }
 0x1a3   :  { %v3476_v6 = vmax.f32 %v3258_v36, %v1309_v29  ;;  %2394 = vmatmul.msk.bf16.gmra.mxu2 %vm379_vm0, %v2358_v40  ;;  %v2378_v36 = vor.u32 %v2517_v44, %v2377_v4  ;;  %v1161_v33 = vadd.f32 %v3433_v2, %v1160_v14  ;;  %v2385_v40 = vld [vmem:[%s3678_s0 + $0x318] sm:$0xf]  ;;  %v2516_v29 = vld [vmem:[%s3678_s0 + $0x31c] sm:$0xf]  ;;  %v2382_v4 = vor.u32 %v2515_v38, %v2379_v39 }
 0x1a4   :  { %v2386_v44 = vor.u32 %v2518_v41, %v2385_v40 }
 0x1a6   :  { %v1282_v45 = vpop.f32.mrf.mxu2  ;;  %v1198_v3 = vpop.f32.mrf.mxu0 }
 0x1a7   :  { %v1283_v46 = vadd.f32 %v1282_v45, %v1240_v1  ;;  %v1241_v48 = vpop.f32.mrf.mxu1  ;;  %v1199_v49 = vadd.f32 %v1198_v3, %v1156_v5  ;;  %1540 = vmatmul.bf16.gmra.mxu3 %v2378_v36 }
 0x1a9   :  { %v1310_v23 = vmax.f32 %v1283_v46, 0.0  ;;  %v1242_v51 = vadd.f32 %v1241_v48, %v1199_v49 }
 0x1aa   :  { %v1163_v47 = vpop.f32.mrf.mxu3 }
 0x1ab   :  { %v3490_v52 = vmax.f32 %v3272_v24, %v1310_v23  ;;  %v2371_v24 = vld [vmem:[%s3678_s0 + $0x308] sm:$0xf0]  ;;  %v1164_v19 = vadd.f32 %v3433_v2, %v1163_v47 }
 0x1ac   :  { %v2374_v25 = vor.u32 %v2512_v35, %v2371_v24 }
 0x1ae   :  { %v1284_v42 = vpop.f32.mrf.mxu2  ;;  %v1201_v7 = vpop.f32.mrf.mxu0 }
 0x1af   :  { %v1285_v63 = vadd.f32 %v1284_v42, %v1242_v51  ;;  %v1244_v8 = vpop.f32.mrf.mxu1  ;;  %v1202_v11 = vadd.f32 %v1201_v7, %v1159_v58  ;;  %v2294_v58 = vld [vmem:[%s3678_s0 + $0x338] sm:$0xff] }
 0x1b0   :  { %v1436_v7 = vunpack.c.h.b16 %v2294_v58 }
 0x1b1   :  { %v1311_v22 = vmax.f32 %v1285_v63, 0.0  ;;  %v1245_v27 = vadd.f32 %v1244_v8, %v1202_v11  ;;  %1578 = vmatmul.bf16.gmra.mxu0 %v2366_v61  ;;  %v1435_v63 = vunpack.c.l.b16 %v2294_v58 }
 0x1b2   :  { %1621 = vmatmul.bf16.gmra.mxu1 %v2370_v62  ;;  %v1165_v18 = vpop.f32.mrf.mxu3  ;;  %v1434_v62 = vunpack.c.h.b16 %v2293_v10 }
 0x1b3   :  { %v3512_v57 = vmax.f32 %v3296_v21, %v1311_v22  ;;  %2395 = vmatmul.msk.bf16.gmra.mxu2 %vm379_vm0, %v2374_v25  ;;  %v1166_v51 = vadd.f32 %v3433_v2, %v1165_v18  ;;  %v1463_v47 = vpack.c.b16 %v1435_v63, %v1435_v63 }
 0x1b4   :  { %v1462_v11 = vpack.c.b16 %v1434_v62, %v1434_v62 }
 0x1b6   :  { %v1287_v32 = vpop.f32.mrf.mxu2  ;;  %v1203_v0 = vpop.f32.mrf.mxu0 }
 0x1b7   :  { %v1288_v59 = vadd.f32 %v1287_v32, %v1245_v27  ;;  %v1246_v9 = vpop.f32.mrf.mxu1  ;;  %v1204_v20 = vadd.f32 %v1203_v0, %v1161_v33  ;;  %1545 = vmatmul.bf16.gmra.mxu3 %v1461_v13  ;;  %v1464_v33 = vpack.c.b16 %v1436_v7, %v1436_v7 }
 0x1b9   :  { %v1312_v37 = vmax.f32 %v1288_v59, 0.0  ;;  %v1247_v28 = vadd.f32 %v1246_v9, %v1204_v20 }
 0x1ba   :  { %v1168_v49 = vpop.f32.mrf.mxu3 }
 0x1bb   :  { %v3520_v21 = vmax.f32 %v3305_v31, %v1312_v37  ;;  %v2387_v31 = vld [vmem:[%s3678_s0 + $0x328] sm:$0xf0]  ;;  %v1169_v8 = vadd.f32 %v3433_v2, %v1168_v49 }
 0x1bc   :  { %v2390_v3 = vor.u32 %v2516_v29, %v2387_v31 }
 0x1be   :  { %v1289_v1 = vpop.f32.mrf.mxu2  ;;  %v1206_v45 = vpop.f32.mrf.mxu0 }
 0x1bf   :  { %v1290_v5 = vadd.f32 %v1289_v1, %v1247_v28  ;;  %v1249_v46 = vpop.f32.mrf.mxu1  ;;  %v1207_v48 = vadd.f32 %v1206_v45, %v1164_v19 }
 0x1c1   :  { %v1313_v14 = vmax.f32 %v1290_v5, 0.0  ;;  %v1250_v36 = vadd.f32 %v1249_v46, %v1207_v48  ;;  %1583 = vmatmul.bf16.gmra.mxu0 %v2382_v4 }
 0x1c2   :  { %1626 = vmatmul.bf16.gmra.mxu1 %v2386_v44  ;;  %v1170_v24 = vpop.f32.mrf.mxu3 }
 0x1c3   :  { %v3539_v23 = vmax.f32 %v3324_v43, %v1313_v14  ;;  %2396 = vmatmul.msk.bf16.gmra.mxu2 %vm379_vm0, %v2390_v3 }
 0x1c6   :  { %v1292_v15 = vpop.f32.mrf.mxu2  ;;  %v1208_v17 = vpop.f32.mrf.mxu0 }
 0x1c7   :  { %v1293_v54 = vadd.f32 %v1292_v15, %v1250_v36  ;;  %v1251_v55 = vpop.f32.mrf.mxu1  ;;  %v1209_v35 = vadd.f32 %v1208_v17, %v1166_v51 }
 0x1c9   :  { %v1314_v42 = vmax.f32 %v1293_v54, 0.0  ;;  %v1252_v61 = vadd.f32 %v1251_v55, %v1209_v35 }
 0x1ca   :  { %v1173_v59 = vpop.f32.mrf.mxu3 }
 0x1cb   :  { %v3547_v43 = vmax.f32 %v3339_v56, %v1314_v42  ;;  %v1171_v56 = vadd.f32 %v3433_v2, %v1170_v24  ;;  %v1174_v19 = vadd.f32 %v3433_v2, %v1173_v59 }
 0x1ce   :  { %v1294_v25 = vpop.f32.mrf.mxu2  ;;  %v1211_v27 = vpop.f32.mrf.mxu0 }
 0x1cf   :  { %v1295_v22 = vadd.f32 %v1294_v25, %v1252_v61  ;;  %v1254_v30 = vpop.f32.mrf.mxu1  ;;  %v1212_v32 = vadd.f32 %v1211_v27, %v1169_v8 }
 0x1d1   :  { %v1315_v0 = vmax.f32 %v1295_v22, 0.0  ;;  %v1255_v9 = vadd.f32 %v1254_v30, %v1212_v32  ;;  %1588 = vmatmul.bf16.gmra.mxu0 %v1462_v11 }
 0x1d2   :  { %1631 = vmatmul.bf16.gmra.mxu1 %v1463_v47  ;;  %v1175_v38 = vpop.f32.mrf.mxu3 }
 0x1d3   :  { %v3551_v10 = vmax.f32 %v3343_v26, %v1315_v0  ;;  %2397 = vmatmul.msk.bf16.gmra.mxu2 %vm379_vm0, %v1464_v33 }
 0x1d6   :  { %v1297_v20 = vpop.f32.mrf.mxu2  ;;  %v1213_v13 = vpop.f32.mrf.mxu0 }
 0x1d7   :  { %v1298_v18 = vadd.f32 %v1297_v20, %v1255_v9  ;;  %v1256_v37 = vpop.f32.mrf.mxu1  ;;  %v1214_v28 = vadd.f32 %v1213_v13, %v1171_v56 }
 0x1d9   :  { %v1316_v39 = vmax.f32 %v1298_v18, 0.0  ;;  %v1257_v40 = vadd.f32 %v1256_v37, %v1214_v28 }
 0x1da   :  { %v1516_v44 = vpop.f32.mrf.mxu3 }
 0x1db   :  { %v3556_v41 = vmax.f32 %v3357_v16, %v1316_v39  ;;  %v1517_v15 = vadd.f32 %v3433_v2, %v1516_v44 }
 0x1de   :  { %v1299_v29 = vpop.f32.mrf.mxu2  ;;  %v1216_v31 = vpop.f32.mrf.mxu0 }
 0x1df   :  { %v1300_v26 = vadd.f32 %v1299_v29, %v1257_v40  ;;  %v1259_v1 = vpop.f32.mrf.mxu1  ;;  %v1217_v4 = vadd.f32 %v1216_v31, %v1174_v19 }
 0x1e1   :  { %v1317_v5 = vmax.f32 %v1300_v26, 0.0  ;;  %v1260_v45 = vadd.f32 %v1259_v1, %v1217_v4 }
 0x1e2   :  { %v1518_v36 = vpop.f32.mrf.mxu3 }
 0x1e3   :  { %v3560_v46 = vmax.f32 %v3376_v53, %v1317_v5  ;;  %v1519_v53 = vadd.f32 %v3433_v2, %v1518_v36 }
 0x1e6   :  { %v1302_v3 = vpop.f32.mrf.mxu2  ;;  %v1218_v49 = vpop.f32.mrf.mxu0 }
 0x1e7   :  { %v1303_v48 = vadd.f32 %v1302_v3, %v1260_v45  ;;  %v1261_v14 = vpop.f32.mrf.mxu1 }
 0x1e9   :  { %v1318_v16 = vmax.f32 %v1303_v48, 0.0 }
 0x1ea   :  { %v1521_v35 = vpop.f32.mrf.mxu3 }
 0x1eb   :  { %v3563_v51 = vmax.f32 %v3392_v12, %v1318_v16  ;;  %v3570_v12 = vld [vmem:[%s3680_s3] ss:$0 sm:$0xff]  ;;  %v1522_v47 = vadd.f32 %v3433_v2, %v1521_v35 }
 0x1ee   :  { %v1304_v54 = vpop.f32.mrf.mxu2  ;;  %v1559_v17 = vpop.f32.mrf.mxu0 }
 0x1ef   :  { %v1602_v55 = vpop.f32.mrf.mxu1  ;;  %v1560_v58 = vadd.f32 %v1559_v17, %v1517_v15 }
 0x1f1   :  { %v1603_v24 = vadd.f32 %v1602_v55, %v1560_v58 }
 0x1f2   :  { %v1523_v7 = vpop.f32.mrf.mxu3 }
 0x1f3   :  { %v1524_v28 = vadd.f32 %v3433_v2, %v1523_v7 }
 0x1f6   :  { %v1645_v42 = vpop.f32.mrf.mxu2  ;;  %v1561_v62 = vpop.f32.mrf.mxu0 }
 0x1f7   :  { %v1646_v61 = vadd.f32 %v1645_v42, %v1603_v24  ;;  %v1604_v63 = vpop.f32.mrf.mxu1  ;;  %v1562_v25 = vadd.f32 %v1561_v62, %v1519_v53 }
 0x1f9   :  { %v1679_v8 = vmax.f32 %v1646_v61, 0.0  ;;  %v1605_v22 = vadd.f32 %v1604_v63, %v1562_v25 }
 0x1fa   :  { %v1526_v56 = vpop.f32.mrf.mxu3 }
 0x1fb   :  { %v1692_v11 = vmax.f32 %v3419_v50, %v1679_v8  ;;  %v1527_v4 = vadd.f32 %v3433_v2, %v1526_v56 }
 0x1fd   :  { %v1709_v27 = vmul.f32 %v3570_v12, %v1692_v11 }
 0x1fe   :  { %v1647_v30 = vpop.f32.mrf.mxu2  ;;  %v1564_v32 = vpop.f32.mrf.mxu0 }
 0x1ff   :  { %v1648_v33 = vadd.f32 %v1647_v30, %v1605_v22  ;;  %v1607_v59 = vpop.f32.mrf.mxu1  ;;  %v1723_v0 = vsel %vm1722_vm1, %v1709_v27, 0.0  ;;  %v1565_v9 = vadd.f32 %v1564_v32, %v1522_v47 }
 0x200   :  { %1724 = vadd.xlane.f32.xlu0 %v1723_v0 }
 0x201   :  { %v1680_v20 = vmax.f32 %v1648_v33, 0.0  ;;  %v1608_v13 = vadd.f32 %v1607_v59, %v1565_v9 }
 0x202   :  { %v1528_v29 = vpop.f32.mrf.mxu3 }
 0x203   :  { %v1693_v18 = vmax.f32 %v3443_v60, %v1680_v20  ;;  %v1529_v55 = vadd.f32 %v3433_v2, %v1528_v29 }
 0x205   :  { %v1710_v50 = vmul.f32 %v3570_v12, %v1693_v18 }
 0x206   :  { %v1650_v37 = vpop.f32.mrf.mxu2  ;;  %v1566_v39 = vpop.f32.mrf.mxu0 }
 0x207   :  { %v1651_v38 = vadd.f32 %v1650_v37, %v1608_v13  ;;  %v1609_v40 = vpop.f32.mrf.mxu1  ;;  %v1726_v19 = vsel %vm1722_vm1, %v1710_v50, 0.0  ;;  %v1567_v31 = vadd.f32 %v1566_v39, %v1524_v28 }
 0x208   :  { %1727 = vadd.xlane.f32.xlu0 %v1726_v19 }
 0x209   :  { %v1681_v26 = vmax.f32 %v1651_v38, 0.0  ;;  %v1610_v60 = vadd.f32 %v1609_v40, %v1567_v31 }
 0x20a   :  { %v1531_v36 = vpop.f32.mrf.mxu3 }
 0x20b   :  { %v1694_v1 = vmax.f32 %v3457_v34, %v1681_v26  ;;  %v1532_v7 = vadd.f32 %v3433_v2, %v1531_v36 }
 0x20d   :  { %v1711_v44 = vmul.f32 %v3570_v12, %v1694_v1 }
 0x20e   :  { %v1652_v5 = vpop.f32.mrf.mxu2  ;;  %v1569_v3 = vpop.f32.mrf.mxu0 }
 0x20f   :  { %v1653_v45 = vadd.f32 %v1652_v5, %v1610_v60  ;;  %v1612_v48 = vpop.f32.mrf.mxu1  ;;  %v1729_v49 = vsel %vm1722_vm1, %v1711_v44, 0.0  ;;  %v1570_v14 = vadd.f32 %v1569_v3, %v1527_v4 }
 0x210   :  { %1730 = vadd.xlane.f32.xlu1 %v1729_v49 }
 0x211   :  { %v1682_v16 = vmax.f32 %v1653_v45, 0.0  ;;  %v1613_v54 = vadd.f32 %v1612_v48, %v1570_v14 }
 0x212   :  { %v1533_v53 = vpop.f32.mrf.mxu3 }
 0x213   :  { %v1695_v15 = vmax.f32 %v3476_v6, %v1682_v16  ;;  %v1534_v56 = vadd.f32 %v3433_v2, %v1533_v53 }
 0x215   :  { %v1712_v34 = vmul.f32 %v3570_v12, %v1695_v15 }
 0x216   :  { %v1655_v17 = vpop.f32.mrf.mxu2  ;;  %v1571_v35 = vpop.f32.mrf.mxu0 }
 0x217   :  { %v1656_v58 = vadd.f32 %v1655_v17, %v1613_v54  ;;  %v1614_v24 = vpop.f32.mrf.mxu1  ;;  %v1732_v42 = vsel %vm1722_vm1, %v1712_v34, 0.0  ;;  %v1572_v62 = vadd.f32 %v1571_v35, %v1529_v55 }
 0x218   :  { %1733 = vadd.xlane.f32.xlu1 %v1732_v42 }
 0x219   :  { %v1683_v61 = vmax.f32 %v1656_v58, 0.0  ;;  %v1615_v6 = vadd.f32 %v1614_v24, %v1572_v62 }
 0x21a   :  { %v1536_v33 = vpop.f32.mrf.mxu3 }
 0x21b   :  { %v1696_v63 = vmax.f32 %v3490_v52, %v1683_v61  ;;  %v1537_v40 = vadd.f32 %v3433_v2, %v1536_v33 }
 0x21d   :  { %v1713_v8 = vmul.f32 %v3570_v12, %v1696_v63 }
 0x21e   :  { %v1657_v25 = vpop.f32.mrf.mxu2  ;;  %v1574_v47 = vpop.f32.mrf.mxu0 }
 0x21f   :  { %v1658_v11 = vadd.f32 %v1657_v25, %v1615_v6  ;;  %v1617_v22 = vpop.f32.mrf.mxu1  ;;  %v1735_v27 = vsel %vm1722_vm1, %v1713_v8, 0.0  ;;  %v1575_v30 = vadd.f32 %v1574_v47, %v1532_v7 }
 0x220   :  { %1736 = vadd.xlane.f32.xlu2 %v1735_v27 }
 0x221   :  { %v1684_v32 = vmax.f32 %v1658_v11, 0.0  ;;  %v1618_v0 = vadd.f32 %v1617_v22, %v1575_v30 }
 0x222   :  { %v1538_v37 = vpop.f32.mrf.mxu3 }
 0x223   :  { %v1697_v59 = vmax.f32 %v3512_v57, %v1684_v32  ;;  %v1539_v49 = vadd.f32 %v3433_v2, %v1538_v37 }
 0x225   :  { %v1714_v52 = vmul.f32 %v3570_v12, %v1697_v59 }
 0x226   :  { %v1660_v9 = vpop.f32.mrf.mxu2  ;;  %v1576_v18 = vpop.f32.mrf.mxu0 }
 0x227   :  { %v1661_v20 = vadd.f32 %v1660_v9, %v1618_v0  ;;  %v1619_v13 = vpop.f32.mrf.mxu1  ;;  %v1738_v50 = vsel %vm1722_vm1, %v1714_v52, 0.0  ;;  %v1577_v38 = vadd.f32 %v1576_v18, %v1534_v56 }
 0x228   :  { %1739 = vadd.xlane.f32.xlu2 %v1738_v50 }
 0x229   :  { %v1685_v28 = vmax.f32 %v1661_v20, 0.0  ;;  %v1620_v57 = vadd.f32 %v1619_v13, %v1577_v38 }
 0x22a   :  { %v1541_v44 = vpop.f32.mrf.mxu3 }
 0x22b   :  { %v1698_v39 = vmax.f32 %v3520_v21, %v1685_v28  ;;  %v1542_v58 = vadd.f32 %v3433_v2, %v1541_v44 }
 0x22d   :  { %v1715_v19 = vmul.f32 %v3570_v12, %v1698_v39 }
 0x22e   :  { %v1662_v29 = vpop.f32.mrf.mxu2  ;;  %v1579_v31 = vpop.f32.mrf.mxu0 }
 0x22f   :  { %v1663_v26 = vadd.f32 %v1662_v29, %v1620_v57  ;;  %v1622_v1 = vpop.f32.mrf.mxu1  ;;  %v1741_v4 = vsel %vm1722_vm1, %v1715_v19, 0.0  ;;  %v1580_v60 = vadd.f32 %v1579_v31, %v1537_v40 }
 0x230   :  { %1742 = vadd.xlane.f32.xlu0 %v1741_v4 }
 0x231   :  { %v1686_v5 = vmax.f32 %v1663_v26, 0.0  ;;  %v1623_v3 = vadd.f32 %v1622_v1, %v1580_v60 }
 0x232   :  { %v1543_v54 = vpop.f32.mrf.mxu3 }
 0x233   :  { %v1699_v45 = vmax.f32 %v3539_v23, %v1686_v5  ;;  %v1544_v47 = vadd.f32 %v3433_v2, %v1543_v54 }
 0x235   :  { %v1716_v21 = vmul.f32 %v3570_v12, %v1699_v45 }
 0x236   :  { %v1665_v48 = vpop.f32.mrf.mxu2  ;;  %v1581_v36 = vpop.f32.mrf.mxu0 }
 0x237   :  { %v1666_v14 = vadd.f32 %v1665_v48, %v1623_v3  ;;  %v1624_v16 = vpop.f32.mrf.mxu1  ;;  %v1744_v15 = vsel %vm1722_vm1, %v1716_v21, 0.0  ;;  %v1582_v17 = vadd.f32 %v1581_v36, %v1539_v49 }
 0x238   :  { %1745 = vadd.xlane.f32.xlu1 %v1744_v15 }
 0x239   :  { %v1687_v34 = vmax.f32 %v1666_v14, 0.0  ;;  %v1625_v23 = vadd.f32 %v1624_v16, %v1582_v17 }
 0x23a   :  { %v1546_v7 = vpop.f32.mrf.mxu3 }
 0x23b   :  { %v1700_v55 = vmax.f32 %v3547_v43, %v1687_v34  ;;  %v1547_v9 = vadd.f32 %v3433_v2, %v1546_v7 }
 0x23d   :  { %v1717_v35 = vmul.f32 %v3570_v12, %v1700_v55 }
 0x23e   :  { %v1667_v24 = vpop.f32.mrf.mxu2  ;;  %v1584_v53 = vpop.f32.mrf.mxu0 }
 0x23f   :  { %v1668_v42 = vadd.f32 %v1667_v24, %v1625_v23  ;;  %v1627_v61 = vpop.f32.mrf.mxu1  ;;  %v1747_v62 = vsel %vm1722_vm1, %v1717_v35, 0.0  ;;  %v1585_v63 = vadd.f32 %v1584_v53, %v1542_v58 }
 0x240   :  { %1748 = vadd.xlane.f32.xlu2 %v1747_v62 }
 0x241   :  { %v1688_v6 = vmax.f32 %v1668_v42, 0.0  ;;  %v1628_v25 = vadd.f32 %v1627_v61, %v1585_v63 }
 0x242   :  { %v1548_v32 = vpop.f32.mrf.mxu3 }
 0x243   :  { %v1701_v8 = vmax.f32 %v3551_v10, %v1688_v6 }
 0x245   :  { %v1718_v43 = vmul.f32 %v3570_v12, %v1701_v8 }
 0x246   :  { %v1670_v11 = vpop.f32.mrf.mxu2  ;;  %v1586_v27 = vpop.f32.mrf.mxu0 }
 0x247   :  { %v1671_v22 = vadd.f32 %v1670_v11, %v1628_v25  ;;  %v1629_v30 = vpop.f32.mrf.mxu1  ;;  %v1750_v33 = vsel %vm1722_vm1, %v1718_v43, 0.0  ;;  %v1587_v0 = vadd.f32 %v1586_v27, %v1544_v47 }
 0x248   :  { %1751 = vadd.xlane.f32.xlu0 %v1750_v33 }
 0x249   :  { %v1689_v59 = vmax.f32 %v1671_v22, 0.0  ;;  %v1630_v10 = vadd.f32 %v1629_v30, %v1587_v0 }
 0x24b   :  { %v1702_v52 = vmax.f32 %v3556_v41, %v1689_v59 }
 0x24d   :  { %v1719_v56 = vmul.f32 %v3570_v12, %v1702_v52 }
 0x24e   :  { %v1672_v20 = vpop.f32.mrf.mxu2  ;;  %v1589_v13 = vpop.f32.mrf.mxu0 }
 0x24f   :  { %v1673_v18 = vadd.f32 %v1672_v20, %v1630_v10  ;;  %v1632_v50 = vpop.f32.mrf.mxu1  ;;  %v1753_v37 = vsel %vm1722_vm1, %v1719_v56, 0.0  ;;  %v1590_v28 = vadd.f32 %v1589_v13, %v1547_v9 }
 0x250   :  { %1754 = vadd.xlane.f32.xlu1 %v1753_v37 }
 0x251   :  { %v1690_v38 = vmax.f32 %v1673_v18, 0.0  ;;  %v1633_v40 = vadd.f32 %v1632_v50, %v1590_v28 }
 0x253   :  { %v1703_v39 = vmax.f32 %v3560_v46, %v1690_v38  ;;  %v1763_v46 = vstv %s3681_s4 }
 0x255   :  { %v1720_v57 = vmul.f32 %v3570_v12, %v1703_v39 }
 0x256   :  { %v1675_v41 = vpop.f32.mrf.mxu2  ;;  %v1591_v2 = vpop.f32.mrf.mxu0 }
 0x257   :  { %v1676_v19 = vadd.f32 %v1675_v41, %v1633_v40  ;;  %v1634_v29 = vpop.f32.mrf.mxu1  ;;  %v1756_v26 = vsel %vm1722_vm1, %v1720_v57, 0.0 }
 0x258   :  { %1757 = vadd.xlane.f32.xlu2 %v1756_v26 }
 0x259   :  { %v1691_v31 = vmax.f32 %v1676_v19, 0.0 }
 0x25b   :  { %v1704_v1 = vmax.f32 %v3563_v51, %v1691_v31 }
 0x25d   :  { %v1721_v4 = vmul.f32 %v3570_v12, %v1704_v1 }
 0x25e   :  { %v1677_v60 = vpop.f32.mrf.mxu2 }
 0x25f   :  { %v1759_v44 = vsel %vm1722_vm1, %v1721_v4, 0.0 }
 0x260   :  { %1760 = vadd.xlane.f32.xlu0 %v1759_v44 }
 0x273   :  { %v1725_v5 = vpop.xlane.xlu0 %1724 }
 0x274   :  { %v1764_v45 = vadd.f32 %v1763_v46, %v1725_v5 }
 0x276   :  { %v1777_v3 = vmax.f32 %v1764_v45, 0.0 }
 0x278   :  { %1791 = vst.msk [vmem:[%s3682_s5] sm:$0xff] %vm1790_vm2, %v1777_v3 }
 0x27b   :  { %v1728_v51 = vpop.xlane.xlu0 %1727 }
 0x27c   :  { %v1765_v21 = vadd.f32 %v1763_v46, %v1728_v51 }
 0x27e   :  { %v1778_v12 = vmax.f32 %v1765_v21, 0.0 }
 0x280   :  { %1792 = vst.msk [vmem:[%s3682_s5 + $0x8] sm:$0xff] %vm1790_vm2, %v1778_v12 }
 0x283   :  { %v1731_v48 = vpop.xlane.xlu1 %1730 }
 0x284   :  { %v1766_v49 = vadd.f32 %v1763_v46, %v1731_v48 }
 0x286   :  { %v1779_v14 = vmax.f32 %v1766_v49, 0.0 }
 0x288   :  { %1793 = vst.msk [vmem:[%s3682_s5 + $0x10] sm:$0xff] %vm1790_vm2, %v1779_v14 }
 0x28b   :  { %v1734_v36 = vpop.xlane.xlu1 %1733 }
 0x28c   :  { %v1767_v16 = vadd.f32 %v1763_v46, %v1734_v36 }
 0x28e   :  { %v1780_v15 = vmax.f32 %v1767_v16, 0.0 }
 0x290   :  { %1794 = vst.msk [vmem:[%s3682_s5 + $0x18] sm:$0xff] %vm1790_vm2, %v1780_v15 }
 0x293   :  { %v1737_v54 = vpop.xlane.xlu2 %1736 }
 0x294   :  { %v1768_v34 = vadd.f32 %v1763_v46, %v1737_v54 }
 0x296   :  { %v1781_v17 = vmax.f32 %v1768_v34, 0.0 }
 0x298   :  { %1795 = vst.msk [vmem:[%s3682_s5 + $0x20] sm:$0xff] %vm1790_vm2, %v1781_v17 }
 0x29b   :  { %v1740_v55 = vpop.xlane.xlu2 %1739 }
 0x29c   :  { %v1769_v58 = vadd.f32 %v1763_v46, %v1740_v55 }
 0x29e   :  { %v1782_v23 = vmax.f32 %v1769_v58, 0.0 }
 0x2a0   :  { %1796 = vst.msk [vmem:[%s3682_s5 + $0x28] sm:$0xff] %vm1790_vm2, %v1782_v23 }
 0x2a3   :  { %v1743_v35 = vpop.xlane.xlu0 %1742 }
 0x2a4   :  { %v1770_v24 = vadd.f32 %v1763_v46, %v1743_v35 }
 0x2a6   :  { %v1783_v42 = vmax.f32 %v1770_v24, 0.0 }
 0x2a8   :  { %1797 = vst.msk [vmem:[%s3682_s5 + $0x30] sm:$0xff] %vm1790_vm2, %v1783_v42 }
 0x2ab   :  { %v1746_v53 = vpop.xlane.xlu1 %1745 }
 0x2ac   :  { %v1771_v61 = vadd.f32 %v1763_v46, %v1746_v53 }
 0x2ae   :  { %v1784_v62 = vmax.f32 %v1771_v61, 0.0 }
 0x2b0   :  { %1798 = vst.msk [vmem:[%s3682_s5 + $0x38] sm:$0xff] %vm1790_vm2, %v1784_v62 }
 0x2b3   :  { %v1749_v63 = vpop.xlane.xlu2 %1748 }
 0x2b4   :  { %v1772_v7 = vadd.f32 %v1763_v46, %v1749_v63 }
 0x2b6   :  { %v1785_v6 = vmax.f32 %v1772_v7, 0.0 }
 0x2b8   :  { %1799 = vst.msk [vmem:[%s3682_s5 + $0x40] sm:$0xff] %vm1790_vm2, %v1785_v6 }
 0x2bb   :  { %v1752_v8 = vpop.xlane.xlu0 %1751 }
 0x2bc   :  { %v1773_v25 = vadd.f32 %v1763_v46, %v1752_v8 }
 0x2be   :  { %v1786_v43 = vmax.f32 %v1773_v25, 0.0 }
 0x2c0   :  { %1800 = vst.msk [vmem:[%s3682_s5 + $0x48] sm:$0xff] %vm1790_vm2, %v1786_v43 }
 0x2c3   :  { %v1755_v11 = vpop.xlane.xlu1 %1754 }
 0x2c4   :  { %v1774_v47 = vadd.f32 %v1763_v46, %v1755_v11 }
 0x2c6   :  { %v1787_v22 = vmax.f32 %v1774_v47, 0.0 }
 0x2c8   :  { %1801 = vst.msk [vmem:[%s3682_s5 + $0x50] sm:$0xff] %vm1790_vm2, %v1787_v22 }
 0x2cb   :  { %v1758_v27 = vpop.xlane.xlu2 %1757 }
 0x2cc   :  { %v1775_v30 = vadd.f32 %v1763_v46, %v1758_v27 }
 0x2ce   :  { %v1788_v33 = vmax.f32 %v1775_v30, 0.0 }
 0x2d0   :  { %1802 = vst.msk [vmem:[%s3682_s5 + $0x58] sm:$0xff] %vm1790_vm2, %v1788_v33 }
 0x2d3   :  { %v1761_v32 = vpop.xlane.xlu0 %1760 }
 0x2d4   :  { %v1776_v59 = vadd.f32 %v1763_v46, %v1761_v32 }
 0x2d6   :  { %v1789_v0 = vmax.f32 %v1776_v59, 0.0 }
 0x2d8   :  { %1803 = vst.msk [vmem:[%s3682_s5 + $0x60] sm:$0xff] %vm1790_vm2, %v1789_v0 }

</bundles_post_ra>
